<compile_context>
chip_gen: v5e
topology: v5e:2x2
jax: 0.10.0
libtpu: 0.0.40
codegen_flags: <defaults>
</compile_context>

<pallas_src>
import jax
import jax.numpy as jnp
from jax.experimental import pallas as pl
from jax.experimental.pallas import tpu as pltpu

HIDDEN = 256
LANES = 128   # lane-dense output width; column 0 = q1, column 1 = q2


def critic_kernel(s_ref, a_ref,
                  w1s_ref, w1a_ref, b1_ref,
                  w2_ref, b2_ref, w5_ref, b5_ref,
                  w3_ref, w6_ref, b36_ref,
                  out_ref):
    # ---- Layer 1, both heads fused into a single (in, 512) weight ----
    # cat([state, action]) @ W  ==  state @ W_s + action @ W_a
    h1 = (jnp.dot(s_ref[...], w1s_ref[...], preferred_element_type=jnp.float32)
          + jnp.dot(a_ref[...], w1a_ref[...], preferred_element_type=jnp.float32)
          + b1_ref[...])
    h1 = jnp.maximum(h1, 0.0)                      # f32 ReLU on the VPU
    h = h1[:, :HIDDEN].astype(jnp.bfloat16)        # Q1 branch (lane-aligned split)
    g = h1[:, HIDDEN:].astype(jnp.bfloat16)        # Q2 branch

    # ---- Layer 2 per head (256x256 bf16 matmuls, f32 accumulate) ----
    h2 = jnp.maximum(
        jnp.dot(h, w2_ref[...], preferred_element_type=jnp.float32) + b2_ref[...], 0.0)
    g2 = jnp.maximum(
        jnp.dot(g, w5_ref[...], preferred_element_type=jnp.float32) + b5_ref[...], 0.0)

    # ---- Layer 3, fused + lane-padded: one unmasked (TILE_B, 128) store ----
    out_ref[...] = (
        jnp.dot(h2.astype(jnp.bfloat16), w3_ref[...], preferred_element_type=jnp.float32)
        + jnp.dot(g2.astype(jnp.bfloat16), w6_ref[...], preferred_element_type=jnp.float32)
        + b36_ref[...])


def prepare_critic_params(params, state_dim):
    """One-time preparation (do NOT call per forward step):
    transpose to (in, out), fuse the two heads' layer-1 / layer-3 weights,
    lane-pad the output layer, and cast matmul weights to bf16."""
    # Fused layer 1: [w1 | w4]^T -> (in, 512), split into state/action rows.
    w14 = jnp.concatenate([params["w1"].T, params["w4"].T], axis=1)       # (in, 512)
    w1s = w14[:state_dim].astype(jnp.bfloat16)                            # (state_dim, 512)
    w1a = w14[state_dim:].astype(jnp.bfloat16)                            # (action_dim, 512)
    b1 = jnp.concatenate([params["b1"], params["b4"]]).reshape(1, 2 * HIDDEN).astype(jnp.float32)

    w2 = params["w2"].T.astype(jnp.bfloat16)                              # (256, 256)
    b2 = params["b2"].reshape(1, -1).astype(jnp.float32)
    w5 = params["w5"].T.astype(jnp.bfloat16)
    b5 = params["b5"].reshape(1, -1).astype(jnp.float32)

    # Fused, lane-padded layer 3: col 0 carries q1 (w3), col 1 carries q2 (w6).
    w3p = jnp.zeros((HIDDEN, LANES), jnp.float32).at[:, 0].set(params["w3"].reshape(-1))
    w6p = jnp.zeros((HIDDEN, LANES), jnp.float32).at[:, 1].set(params["w6"].reshape(-1))
    b36 = (jnp.zeros((1, LANES), jnp.float32)
           .at[0, 0].set(params["b3"][0])
           .at[0, 1].set(params["b6"][0]))

    return {
        "w1s": w1s, "w1a": w1a, "b1": b1,
        "w2": w2, "b2": b2, "w5": w5, "b5": b5,
        "w3": w3p.astype(jnp.bfloat16), "w6": w6p.astype(jnp.bfloat16), "b36": b36,
    }


def critic_forward(state, action, prep, *, tile_b=256):
    """Forward pass. `prep` comes from prepare_critic_params (already fused)."""
    B, sd = state.shape
    ad = action.shape[1]

    grid_b = pl.cdiv(B, tile_b)
    b_pad = grid_b * tile_b
    if b_pad != B:
        state = jnp.pad(state, ((0, b_pad - B), (0, 0)))
        action = jnp.pad(action, ((0, b_pad - B), (0, 0)))
    state = state.astype(jnp.bfloat16)
    action = action.astype(jnp.bfloat16)

    def resident(shape):
        # Full-array block, same block index every grid step -> stays in VMEM
        # (no re-DMA across batch tiles).
        return pl.BlockSpec(shape, lambda i: (0, 0))

    in_specs = [
        pl.BlockSpec((tile_b, sd), lambda i: (i, 0)),       # state tile
        pl.BlockSpec((tile_b, ad), lambda i: (i, 0)),       # action tile
        resident(prep["w1s"].shape), resident(prep["w1a"].shape), resident(prep["b1"].shape),
        resident(prep["w2"].shape), resident(prep["b2"].shape),
        resident(prep["w5"].shape), resident(prep["b5"].shape),
        resident(prep["w3"].shape), resident(prep["w6"].shape), resident(prep["b36"].shape),
    ]
    out_spec = pl.BlockSpec((tile_b, LANES), lambda i: (i, 0))

    in_dim = sd + ad
    flops = 2 * b_pad * (in_dim * 2 * HIDDEN + 2 * HIDDEN * HIDDEN + 2 * HIDDEN * LANES)
    bytes_accessed = (sum(int(x.size) * x.dtype.itemsize for x in prep.values())
                      + b_pad * (in_dim * 2 + LANES * 4))

    out = pl.pallas_call(
        critic_kernel,
        out_shape=jax.ShapeDtypeStruct((b_pad, LANES), jnp.float32),
        grid=(grid_b,),
        in_specs=in_specs,
        out_specs=out_spec,
        compiler_params=pltpu.CompilerParams(dimension_semantics=("parallel",)),
        cost_estimate=pl.CostEstimate(flops=flops, transcendentals=0,
                                      bytes_accessed=bytes_accessed),
    )(state, action,
      prep["w1s"], prep["w1a"], prep["b1"],
      prep["w2"], prep["b2"], prep["w5"], prep["b5"],
      prep["w3"], prep["w6"], prep["b36"])

    q1 = out[:B, 0:1]
    q2 = out[:B, 1:2]
    return q1, q2


def init_critic_params(state_dim, action_dim, key):
    """Deterministic init mimicking PyTorch nn.Linear default (U(-1/sqrt(fan_in), ...)).
    Stored in PyTorch layout: w{i}: (out, in), b{i}: (out,)."""
    in_dim = state_dim + action_dim
    dims = [
        (in_dim, 256), (256, 256), (256, 1),   # l1, l2, l3
        (in_dim, 256), (256, 256), (256, 1),   # l4, l5, l6
    ]
    params = {}
    for i, (fan_in, fan_out) in enumerate(dims, start=1):
        key, kw, kb = jax.random.split(key, 3)
        bound = 1.0 / jnp.sqrt(float(fan_in))
        params[f"w{i}"] = jax.random.uniform(
            kw, (fan_out, fan_in), jnp.float32, minval=-bound, maxval=bound)
        params[f"b{i}"] = jax.random.uniform(
            kb, (fan_out,), jnp.float32, minval=-bound, maxval=bound)
    return params


def critic_ref(state, action, params):
    """Pure-JAX f32 reference matching the PyTorch module."""
    sa = jnp.concatenate([state, action], axis=1)

    def lin(x, i):
        return x @ params[f"w{i}"].T + params[f"b{i}"]

    q1 = lin(jax.nn.relu(lin(jax.nn.relu(lin(sa, 1)), 2)), 3)
    q2 = lin(jax.nn.relu(lin(jax.nn.relu(lin(sa, 4)), 5)), 6)
    return q1, q2


if __name__ == "__main__":
    key = jax.random.PRNGKey(0)
    batch, state_dim, action_dim = 4, 6, 2

    k_params, k_state, k_action = jax.random.split(key, 3)
    params = init_critic_params(state_dim, action_dim, k_params)
    prep = prepare_critic_params(params, state_dim)   # one-time weight prep

    state = jax.random.normal(k_state, (batch, state_dim), jnp.float32)
    action = jax.random.normal(k_action, (batch, action_dim), jnp.float32)

    q1, q2 = critic_forward(state, action, prep)
    q1 = jax.block_until_ready(q1)
    q2 = jax.block_until_ready(q2)

    q1_ref, q2_ref = critic_ref(state, action, params)
    assert q1.shape == (batch, 1) and q2.shape == (batch, 1)
    # bf16 matmul inputs with f32 accumulation -> loose tolerance vs f32 ref.
    assert jnp.allclose(q1, q1_ref, atol=5e-2, rtol=5e-2), float(jnp.max(jnp.abs(q1 - q1_ref)))
    assert jnp.allclose(q2, q2_ref, atol=5e-2, rtol=5e-2), float(jnp.max(jnp.abs(q2 - q2_ref)))

    print("KERNEL_OK")
</pallas_src>

<mosaic_0001>
module attributes {stable_mosaic.version = 11 : i64} {
  func.func @critic_kernel(%arg0: i32, %arg1: memref<256x6xbf16, #tpu.memory_space<vmem>>, %arg2: memref<256x2xbf16, #tpu.memory_space<vmem>>, %arg3: memref<6x512xbf16, #tpu.memory_space<vmem>>, %arg4: memref<2x512xbf16, #tpu.memory_space<vmem>>, %arg5: memref<1x512xf32, #tpu.memory_space<vmem>>, %arg6: memref<256x256xbf16, #tpu.memory_space<vmem>>, %arg7: memref<1x256xf32, #tpu.memory_space<vmem>>, %arg8: memref<256x256xbf16, #tpu.memory_space<vmem>>, %arg9: memref<1x256xf32, #tpu.memory_space<vmem>>, %arg10: memref<256x128xbf16, #tpu.memory_space<vmem>>, %arg11: memref<256x128xbf16, #tpu.memory_space<vmem>>, %arg12: memref<1x128xf32, #tpu.memory_space<vmem>>, %arg13: memref<256x128xf32, #tpu.memory_space<vmem>>) attributes {dimension_semantics = [#tpu.dimension_semantics<parallel>], iteration_bounds = array<i64: 1>, scalar_prefetch = 0 : i64, scratch_operands = 0 : i64, tpu.core_type = #tpu.core_type<tc>, window_params = [{transform_indices = @transform_0, window_bounds = array<i64: 256, 6>}, {transform_indices = @transform_1, window_bounds = array<i64: 256, 2>}, {pipeline_mode = #tpu.pipeline_mode<synchronous>, transform_indices = @transform_2, window_bounds = array<i64: 6, 512>}, {pipeline_mode = #tpu.pipeline_mode<synchronous>, transform_indices = @transform_3, window_bounds = array<i64: 2, 512>}, {pipeline_mode = #tpu.pipeline_mode<synchronous>, transform_indices = @transform_4, window_bounds = array<i64: 1, 512>}, {pipeline_mode = #tpu.pipeline_mode<synchronous>, transform_indices = @transform_5, window_bounds = array<i64: 256, 256>}, {pipeline_mode = #tpu.pipeline_mode<synchronous>, transform_indices = @transform_6, window_bounds = array<i64: 1, 256>}, {pipeline_mode = #tpu.pipeline_mode<synchronous>, transform_indices = @transform_7, window_bounds = array<i64: 256, 256>}, {pipeline_mode = #tpu.pipeline_mode<synchronous>, transform_indices = @transform_8, window_bounds = array<i64: 1, 256>}, {pipeline_mode = #tpu.pipeline_mode<synchronous>, transform_indices = @transform_9, window_bounds = array<i64: 256, 128>}, {pipeline_mode = #tpu.pipeline_mode<synchronous>, transform_indices = @transform_10, window_bounds = array<i64: 256, 128>}, {pipeline_mode = #tpu.pipeline_mode<synchronous>, transform_indices = @transform_11, window_bounds = array<i64: 1, 128>}, {transform_indices = @transform_12, window_bounds = array<i64: 256, 128>}]} {
    %c0 = arith.constant 0 : index
    %c0_0 = arith.constant 0 : index
    %0 = vector.load %arg1[%c0, %c0_0] : memref<256x6xbf16, #tpu.memory_space<vmem>>, vector<256x6xbf16>
    %c0_1 = arith.constant 0 : index
    %c0_2 = arith.constant 0 : index
    %1 = vector.load %arg3[%c0_1, %c0_2] : memref<6x512xbf16, #tpu.memory_space<vmem>>, vector<6x512xbf16>
    %cst = arith.constant dense<0.000000e+00> : vector<256x512xf32>
    %2 = tpu.matmul %0, %1, %cst {dimension_numbers = #tpu.dot_dimension_numbers<[1], [0], [0], [1], [0, 0, 1, 1], [], []>} : vector<256x6xbf16>, vector<6x512xbf16>, vector<256x512xf32> -> vector<256x512xf32>
    %c0_3 = arith.constant 0 : index
    %c0_4 = arith.constant 0 : index
    %3 = vector.load %arg2[%c0_3, %c0_4] : memref<256x2xbf16, #tpu.memory_space<vmem>>, vector<256x2xbf16>
    %c0_5 = arith.constant 0 : index
    %c0_6 = arith.constant 0 : index
    %4 = vector.load %arg4[%c0_5, %c0_6] : memref<2x512xbf16, #tpu.memory_space<vmem>>, vector<2x512xbf16>
    %cst_7 = arith.constant dense<0.000000e+00> : vector<256x512xf32>
    %5 = tpu.matmul %3, %4, %cst_7 {dimension_numbers = #tpu.dot_dimension_numbers<[1], [0], [0], [1], [0, 0, 1, 1], [], []>} : vector<256x2xbf16>, vector<2x512xbf16>, vector<256x512xf32> -> vector<256x512xf32>
    %6 = arith.addf %2, %5 : vector<256x512xf32>
    %c0_8 = arith.constant 0 : index
    %c0_9 = arith.constant 0 : index
    %7 = vector.load %arg5[%c0_8, %c0_9] : memref<1x512xf32, #tpu.memory_space<vmem>>, vector<1x512xf32>
    %8 = vector.broadcast %7 : vector<1x512xf32> to vector<256x512xf32>
    %9 = arith.addf %6, %8 : vector<256x512xf32>
    %cst_10 = arith.constant 0.000000e+00 : f32
    %10 = vector.broadcast %cst_10 : f32 to vector<256x512xf32>
    %11 = arith.maximumf %9, %10 : vector<256x512xf32>
    %12 = vector.extract_strided_slice %11 {offsets = [0, 0], sizes = [256, 256], strides = [1, 1]} : vector<256x512xf32> to vector<256x256xf32>
    %13 = arith.truncf %12 : vector<256x256xf32> to vector<256x256xbf16>
    %14 = vector.extract_strided_slice %11 {offsets = [0, 256], sizes = [256, 256], strides = [1, 1]} : vector<256x512xf32> to vector<256x256xf32>
    %15 = arith.truncf %14 : vector<256x256xf32> to vector<256x256xbf16>
    %c0_11 = arith.constant 0 : index
    %c0_12 = arith.constant 0 : index
    %16 = vector.load %arg6[%c0_11, %c0_12] : memref<256x256xbf16, #tpu.memory_space<vmem>>, vector<256x256xbf16>
    %cst_13 = arith.constant dense<0.000000e+00> : vector<256x256xf32>
    %17 = tpu.matmul %13, %16, %cst_13 {dimension_numbers = #tpu.dot_dimension_numbers<[1], [0], [0], [1], [0, 0, 1, 1], [], []>} : vector<256x256xbf16>, vector<256x256xbf16>, vector<256x256xf32> -> vector<256x256xf32>
    %c0_14 = arith.constant 0 : index
    %c0_15 = arith.constant 0 : index
    %18 = vector.load %arg7[%c0_14, %c0_15] : memref<1x256xf32, #tpu.memory_space<vmem>>, vector<1x256xf32>
    %19 = vector.broadcast %18 : vector<1x256xf32> to vector<256x256xf32>
    %20 = arith.addf %17, %19 : vector<256x256xf32>
    %cst_16 = arith.constant 0.000000e+00 : f32
    %21 = vector.broadcast %cst_16 : f32 to vector<256x256xf32>
    %22 = arith.maximumf %20, %21 : vector<256x256xf32>
    %c0_17 = arith.constant 0 : index
    %c0_18 = arith.constant 0 : index
    %23 = vector.load %arg8[%c0_17, %c0_18] : memref<256x256xbf16, #tpu.memory_space<vmem>>, vector<256x256xbf16>
    %cst_19 = arith.constant dense<0.000000e+00> : vector<256x256xf32>
    %24 = tpu.matmul %15, %23, %cst_19 {dimension_numbers = #tpu.dot_dimension_numbers<[1], [0], [0], [1], [0, 0, 1, 1], [], []>} : vector<256x256xbf16>, vector<256x256xbf16>, vector<256x256xf32> -> vector<256x256xf32>
    %c0_20 = arith.constant 0 : index
    %c0_21 = arith.constant 0 : index
    %25 = vector.load %arg9[%c0_20, %c0_21] : memref<1x256xf32, #tpu.memory_space<vmem>>, vector<1x256xf32>
    %26 = vector.broadcast %25 : vector<1x256xf32> to vector<256x256xf32>
    %27 = arith.addf %24, %26 : vector<256x256xf32>
    %cst_22 = arith.constant 0.000000e+00 : f32
    %28 = vector.broadcast %cst_22 : f32 to vector<256x256xf32>
    %29 = arith.maximumf %27, %28 : vector<256x256xf32>
    %30 = arith.truncf %22 : vector<256x256xf32> to vector<256x256xbf16>
    %c0_23 = arith.constant 0 : index
    %c0_24 = arith.constant 0 : index
    %31 = vector.load %arg10[%c0_23, %c0_24] : memref<256x128xbf16, #tpu.memory_space<vmem>>, vector<256x128xbf16>
    %cst_25 = arith.constant dense<0.000000e+00> : vector<256x128xf32>
    %32 = tpu.matmul %30, %31, %cst_25 {dimension_numbers = #tpu.dot_dimension_numbers<[1], [0], [0], [1], [0, 0, 1, 1], [], []>} : vector<256x256xbf16>, vector<256x128xbf16>, vector<256x128xf32> -> vector<256x128xf32>
    %33 = arith.truncf %29 : vector<256x256xf32> to vector<256x256xbf16>
    %c0_26 = arith.constant 0 : index
    %c0_27 = arith.constant 0 : index
    %34 = vector.load %arg11[%c0_26, %c0_27] : memref<256x128xbf16, #tpu.memory_space<vmem>>, vector<256x128xbf16>
    %cst_28 = arith.constant dense<0.000000e+00> : vector<256x128xf32>
    %35 = tpu.matmul %33, %34, %cst_28 {dimension_numbers = #tpu.dot_dimension_numbers<[1], [0], [0], [1], [0, 0, 1, 1], [], []>} : vector<256x256xbf16>, vector<256x128xbf16>, vector<256x128xf32> -> vector<256x128xf32>
    %36 = arith.addf %32, %35 : vector<256x128xf32>
    %c0_29 = arith.constant 0 : index
    %c0_30 = arith.constant 0 : index
    %37 = vector.load %arg12[%c0_29, %c0_30] : memref<1x128xf32, #tpu.memory_space<vmem>>, vector<1x128xf32>
    %38 = vector.broadcast %37 : vector<1x128xf32> to vector<256x128xf32>
    %39 = arith.addf %36, %38 : vector<256x128xf32>
    %c0_31 = arith.constant 0 : index
    %c0_32 = arith.constant 0 : index
    %40 = vector.load %arg13[%c0_31, %c0_32] : memref<256x128xf32, #tpu.memory_space<vmem>>, vector<256x128xf32>
    tpu.vector_store %arg13[%c0_31, %c0_32], %39 {strides = array<i32>} : memref<256x128xf32, #tpu.memory_space<vmem>>, vector<256x128xf32>,
    return
  }
  func.func @transform_0(%arg0: i32) -> (i32, i32) {
    %c0_i32 = arith.constant 0 : i32
    %c0_i32_0 = arith.constant 0 : i32
    return %arg0, %c0_i32 : i32, i32
  }
  func.func @transform_1(%arg0: i32) -> (i32, i32) {
    %c0_i32 = arith.constant 0 : i32
    %c0_i32_0 = arith.constant 0 : i32
    return %arg0, %c0_i32 : i32, i32
  }
  func.func @transform_2(%arg0: i32) -> (i32, i32) {
    %c0_i32 = arith.constant 0 : i32
    %c0_i32_0 = arith.constant 0 : i32
    %c0_i32_1 = arith.constant 0 : i32
    return %c0_i32, %c0_i32_0 : i32, i32
  }
  func.func @transform_3(%arg0: i32) -> (i32, i32) {
    %c0_i32 = arith.constant 0 : i32
    %c0_i32_0 = arith.constant 0 : i32
    %c0_i32_1 = arith.constant 0 : i32
    return %c0_i32, %c0_i32_0 : i32, i32
  }
  func.func @transform_4(%arg0: i32) -> (i32, i32) {
    %c0_i32 = arith.constant 0 : i32
    %c0_i32_0 = arith.constant 0 : i32
    %c0_i32_1 = arith.constant 0 : i32
    return %c0_i32, %c0_i32_0 : i32, i32
  }
  func.func @transform_5(%arg0: i32) -> (i32, i32) {
    %c0_i32 = arith.constant 0 : i32
    %c0_i32_0 = arith.constant 0 : i32
    %c0_i32_1 = arith.constant 0 : i32
    return %c0_i32, %c0_i32_0 : i32, i32
  }
  func.func @transform_6(%arg0: i32) -> (i32, i32) {
    %c0_i32 = arith.constant 0 : i32
    %c0_i32_0 = arith.constant 0 : i32
    %c0_i32_1 = arith.constant 0 : i32
    return %c0_i32, %c0_i32_0 : i32, i32
  }
  func.func @transform_7(%arg0: i32) -> (i32, i32) {
    %c0_i32 = arith.constant 0 : i32
    %c0_i32_0 = arith.constant 0 : i32
    %c0_i32_1 = arith.constant 0 : i32
    return %c0_i32, %c0_i32_0 : i32, i32
  }
  func.func @transform_8(%arg0: i32) -> (i32, i32) {
    %c0_i32 = arith.constant 0 : i32
    %c0_i32_0 = arith.constant 0 : i32
    %c0_i32_1 = arith.constant 0 : i32
    return %c0_i32, %c0_i32_0 : i32, i32
  }
  func.func @transform_9(%arg0: i32) -> (i32, i32) {
    %c0_i32 = arith.constant 0 : i32
    %c0_i32_0 = arith.constant 0 : i32
    %c0_i32_1 = arith.constant 0 : i32
    return %c0_i32, %c0_i32_0 : i32, i32
  }
  func.func @transform_10(%arg0: i32) -> (i32, i32) {
    %c0_i32 = arith.constant 0 : i32
    %c0_i32_0 = arith.constant 0 : i32
    %c0_i32_1 = arith.constant 0 : i32
    return %c0_i32, %c0_i32_0 : i32, i32
  }
  func.func @transform_11(%arg0: i32) -> (i32, i32) {
    %c0_i32 = arith.constant 0 : i32
    %c0_i32_0 = arith.constant 0 : i32
    %c0_i32_1 = arith.constant 0 : i32
    return %c0_i32, %c0_i32_0 : i32, i32
  }
  func.func @transform_12(%arg0: i32) -> (i32, i32) {
    %c0_i32 = arith.constant 0 : i32
    %c0_i32_0 = arith.constant 0 : i32
    return %arg0, %c0_i32 : i32, i32
  }
}

</mosaic_0001>

<bundles_post_ra>
// kernel: tpu_custom_call.1
= control target key start
LH: loop header
LB: loop body
LE: loop exit
PB: predicated region body
PF: predicated region fallthrough
CT: control target
= control target key end

     0   :  { %17 = vsyncpa [#allocation3], 0  ;;  %s6084_s0 = inlined_call_operand.vmem [shape: bf16[256,6], index: 0, kind: input, shape index: {}]   ;;  %s6085_s1 = inlined_call_operand.vmem [shape: bf16[256,2], index: 1, kind: input, shape index: {}]   ;;  %s6086_s2 = inlined_call_operand.hbm [shape: bf16[6,512], index: 2, kind: input, shape index: {}]   ;;  %s6087_s3 = inlined_call_operand.vmem [shape: bf16[2,512], index: 3, kind: input, shape index: {}]   ;;  %s6088_s4 = inlined_call_operand.vmem [shape: f32[1,512], index: 4, kind: input, shape index: {}]   ;;  %s6089_s5 = inlined_call_operand.vmem [shape: bf16[256,256], index: 5, kind: input, shape index: {}]   ;;  %s6090_s6 = inlined_call_operand.vmem [shape: f32[1,256], index: 6, kind: input, shape index: {}]   ;;  %s6091_s7 = inlined_call_operand.hbm [shape: bf16[256,256], index: 7, kind: input, shape index: {}]   ;;  %s6092_s8 = inlined_call_operand.vmem [shape: f32[1,256], index: 8, kind: input, shape index: {}]   ;;  %s6093_s9 = inlined_call_operand.hbm [shape: bf16[256,128], index: 9, kind: input, shape index: {}]   ;;  %s6094_s10 = inlined_call_operand.hbm [shape: bf16[256,128], index: 10, kind: input, shape index: {}]   ;;  %s6095_s11 = inlined_call_operand.vmem [shape: f32[1,128], index: 11, kind: input, shape index: {}]   ;;  %s6096_s12 = inlined_call_operand.hbm [shape: f32[256,128], index: 12, kind: output, shape index: {}]  }
   0x1   :  { %18 = vsyncpa [#allocation6], 0 }
   0x2   :  { %19 = vsyncpa [#allocation9], 0  ;;  %s48_s23 = sshll.u32 %s6091_s7, 4  ;;  %s49_s23 = int_to_ptr.hbm [resolvable:$true] %s48_s23 }
   0x3   :  { %20 = vsyncpa [#allocation4], 0  ;;  %s4416_s24 = smov [#allocation5]   ;;  %s30_s28 = sshll.u32 %s6086_s2, 4  ;;  %s31_s28 = int_to_ptr.hbm [resolvable:$true] %s30_s28 }
   0x4   :  { %s50_s25 = sshll.u32 %s4416_s24, 4  ;;  %s4417_s29 = smov 128   ;;  %s51_s25 = int_to_ptr.vmem [resolvable:$true] %s50_s25 }
   0x5   :  { %s4418_s30 = smov 8   ;;  %s4419_s13 = smov [#allocation2]  }
   0x6   :  { %56 = dma.hbm_to_vmem [thread:$0]  %s49_s23, 4096, %s51_s25, [#allocation6], %s4417_s29, %s4417_s29, %s4418_s30  }
   0x7   :  { %s32_s14 = sshll.u32 %s4419_s13, 4  ;;  %s63_s16 = sshll.u32 %s6093_s9, 4  ;;  %s33_s14 = int_to_ptr.vmem [resolvable:$true] %s32_s14  ;;  %s64_s16 = int_to_ptr.hbm [resolvable:$true] %s63_s16 }
   0x8   :  { %35 = dma.hbm_to_vmem [thread:$0]  %s31_s28, 256, %s33_s14, [#allocation3]  }
   0x9   :  { %s4420_s17 = smov [#allocation7]   ;;  %s76_s20 = sshll.u32 %s6094_s10, 4  ;;  %s77_s20 = int_to_ptr.hbm [resolvable:$true] %s76_s20 }
   0xa   :  { %s65_s18 = sshll.u32 %s4420_s17, 4  ;;  %s4421_s21 = smov 64   ;;  %s66_s18 = int_to_ptr.vmem [resolvable:$true] %s65_s18 }
   0xb   :  { %s4422_s22 = smov 4   ;;  %s4423_s23 = smov [#allocation8]  }
   0xc   :  { %71 = dma.hbm_to_vmem [thread:$0]  %s64_s16, 2048, %s66_s18, [#allocation6], %s4421_s21, %s4421_s21, %s4422_s22  }
   0xd   :  { %s78_s24 = sshll.u32 %s4423_s23, 4  ;;  %s79_s24 = int_to_ptr.vmem [resolvable:$true] %s78_s24 }
   0xe   :  { %84 = dma.hbm_to_vmem [thread:$0]  %s77_s20, 2048, %s79_s24, [#allocation9], %s4421_s21, %s4421_s21, %s4422_s22  }
   0xf   :  { %4408 = dma.done.wait [#allocation3], 256  }
  0x10   :  { %4409 = vsyncadd [#allocation3], 4294967040 }
  0x11   :  { %4410 = dma.done.wait [#allocation6], 6144  }
  0x12   :  { %4411 = vsyncadd [#allocation6], 4294961152 }
  0x13   :  { %4412 = dma.done.wait [#allocation9], 2048  }
  0x14   :  { %4413 = vsyncadd [#allocation9], 4294965248  ;;  %v170_v0 = vld [vmem:[%s6087_s3] sm:$0xf]  ;;  %v137_v1 = vld [vmem:[#allocation2 + $0x8] sm:$0x77] }
  0x15   :  { %252 = vst [vmem:[#allocation1] ss:$9 sm:$0xff] %v170_v0  ;;  %v755_v2 = vunpack.c.l.b16 %v137_v1  ;;  %v756_v3 = vunpack.c.h.b16 %v137_v1  ;;  %v136_v4 = vld [vmem:[#allocation2] sm:$0x77]  ;;  %vm810_vm0 = vcmask 1042432   ;;  %vm306_vm1 = vcmask 1040384  }
  0x16   :  { %v753_v6 = vunpack.c.l.b16 %v136_v4  ;;  %v754_v7 = vunpack.c.h.b16 %v136_v4  ;;  %v4166_v19 = vld [vmem:[%s6085_s1] sm:$0xff]  ;;  %vm257_vm2 = vcmask 15360   ;;  %v4167_v24 = vld [vmem:[%s6085_s1 + $0x8] sm:$0xff]  ;;  %v4168_v25 = vld [vmem:[%s6085_s1 + $0x10] sm:$0xff]  ;;  %vm761_vm3 = vcmask 48128   ;;  %s3495_s3 = sshll.u32 %s6096_s12, 4  ;;  %s3496_s3 = int_to_ptr.hbm [resolvable:$true] %s3495_s3 }
  0x17   :  { %v759_v5 = vpack.c.b16 %v755_v2, %v755_v2  ;;  %v760_v8 = vpack.c.b16 %v756_v3, %v756_v3  ;;  %v4169_v26 = vld [vmem:[%s6085_s1 + $0x18] sm:$0xff]  ;;  %v4170_v27 = vld [vmem:[%s6085_s1 + $0x20] sm:$0xff]  ;;  %v4171_v28 = vld [vmem:[%s6085_s1 + $0x28] sm:$0xff] }
  0x18   :  { %v757_v13 = vpack.c.b16 %v753_v6, %v753_v6  ;;  %v758_v14 = vpack.c.b16 %v754_v7, %v754_v7  ;;  %v4172_v29 = vld [vmem:[%s6085_s1 + $0x30] sm:$0xff]  ;;  %v4173_v30 = vld [vmem:[%s6085_s1 + $0x38] sm:$0xff]  ;;  %v4174_v31 = vld [vmem:[%s6085_s1 + $0x40] sm:$0xff] }
  0x19   :  { %v818_v12 = vsel %vm810_vm0, %v759_v5, 0  ;;  %v821_v20 = vsel %vm810_vm0, %v760_v8, 0  ;;  %v4175_v40 = vld [vmem:[%s6085_s1 + $0x48] sm:$0xff]  ;;  %v4176_v49 = vld [vmem:[%s6085_s1 + $0x50] sm:$0xff]  ;;  %v4177_v58 = vld [vmem:[%s6085_s1 + $0x58] sm:$0xff] }
  0x1a   :  { %v812_v22 = vsel %vm810_vm0, %v757_v13, 0  ;;  %v815_v23 = vsel %vm810_vm0, %v758_v14, 0  ;;  %v4178_v3 = vld [vmem:[%s6085_s1 + $0x60] sm:$0xff] }
  0x1c   :  { %v253_v9 = vld [vmem:[#allocation1] sm:$0xff]  ;;  %v254_v10 = vld [vmem:[#allocation1 + $0x9] sm:$0xff]  ;;  %v255_v11 = vld [vmem:[#allocation1 + $0x12] sm:$0xff] }
  0x1d   :  { %v307_v15 = vsel %vm306_vm1, %v253_v9, 0  ;;  %v309_v16 = vsel %vm306_vm1, %v254_v10, 0  ;;  %v311_v17 = vsel %vm306_vm1, %v255_v11, 0  ;;  %v256_v18 = vld [vmem:[#allocation1 + $0x1b] sm:$0xff] }
  0x1e   :  { %322 = vmatpush.bf16.msra.mxu0 %v307_v15  ;;  %411 = vmatpush.bf16.msra.mxu1 %v309_v16  ;;  %v313_v21 = vsel %vm306_vm1, %v256_v18, 0 }
  0x1f   :  { %500 = vmatpush.bf16.msra.mxu2 %v311_v17  ;;  %589 = vmatpush.bf16.msra.mxu3 %v313_v21  ;;  %v4180_v21 = vld [vmem:[%s6085_s1 + $0x70] sm:$0xff] }
  0x21   :  { %3574 = vmatmul.msk.bf16.vlgmr.msra.gmra.mxu0 %vm257_vm2, %v4166_v19  ;;  %3590 = vmatmul.msk.bf16.vlgmr.msra.gmra.mxu1 %vm257_vm2, %v4166_v19 }
  0x22   :  { %3606 = vmatmul.msk.bf16.vlgmr.msra.gmra.mxu2 %vm257_vm2, %v4166_v19  ;;  %3622 = vmatmul.msk.bf16.vlgmr.msra.gmra.mxu3 %vm257_vm2, %v4166_v19 }
  0x23   :  { %1008 = vmatpush.bf16.msrb.mxu2 %v818_v12  ;;  %1097 = vmatpush.bf16.msrb.mxu3 %v821_v20  ;;  %v4179_v12 = vld [vmem:[%s6085_s1 + $0x68] sm:$0xff] }
  0x24   :  { %830 = vmatpush.bf16.msrb.mxu0 %v812_v22  ;;  %919 = vmatpush.bf16.msrb.mxu1 %v815_v23 }
  0x31   :  { %3575 = vmatmul.msk.bf16.gmra.mxu0 %vm257_vm2, %v4167_v24  ;;  %3591 = vmatmul.msk.bf16.gmra.mxu1 %vm257_vm2, %v4167_v24 }
  0x32   :  { %3607 = vmatmul.msk.bf16.gmra.mxu2 %vm257_vm2, %v4167_v24  ;;  %3623 = vmatmul.msk.bf16.gmra.mxu3 %vm257_vm2, %v4167_v24  ;;  %v4196_v24 = vld [vmem:[%s6089_s5 + $0x74] sm:$0xf] }
  0x41   :  { %3576 = vmatmul.msk.bf16.gmra.mxu0 %vm257_vm2, %v4168_v25  ;;  %3592 = vmatmul.msk.bf16.gmra.mxu1 %vm257_vm2, %v4168_v25 }
  0x42   :  { %3608 = vmatmul.msk.bf16.gmra.mxu2 %vm257_vm2, %v4168_v25  ;;  %3624 = vmatmul.msk.bf16.gmra.mxu3 %vm257_vm2, %v4168_v25  ;;  %v3826_v25 = vld [vmem:[%s6089_s5 + $0x78] sm:$0xf0] }
  0x51   :  { %3577 = vmatmul.msk.bf16.gmra.mxu0 %vm257_vm2, %v4169_v26  ;;  %3593 = vmatmul.msk.bf16.gmra.mxu1 %vm257_vm2, %v4169_v26 }
  0x52   :  { %3609 = vmatmul.msk.bf16.gmra.mxu2 %vm257_vm2, %v4169_v26  ;;  %3625 = vmatmul.msk.bf16.gmra.mxu3 %vm257_vm2, %v4169_v26  ;;  %v4212_v26 = vld [vmem:[%s6089_s5 + $0xf4] sm:$0xf] }
  0x61   :  { %3578 = vmatmul.msk.bf16.gmra.mxu0 %vm257_vm2, %v4170_v27  ;;  %3594 = vmatmul.msk.bf16.gmra.mxu1 %vm257_vm2, %v4170_v27 }
  0x62   :  { %3610 = vmatmul.msk.bf16.gmra.mxu2 %vm257_vm2, %v4170_v27  ;;  %3626 = vmatmul.msk.bf16.gmra.mxu3 %vm257_vm2, %v4170_v27  ;;  %v3829_v27 = vor.u32 %v4196_v24, %v3826_v25  ;;  %v4213_v24 = vld [vmem:[%s6089_s5 + $0xf4] sm:$0xf0] }
  0x64   :  { %1885 = vmatpush.bf16.msra.mxu2 %v3829_v27 }
  0x71   :  { %3579 = vmatmul.msk.bf16.gmra.mxu0 %vm257_vm2, %v4171_v28  ;;  %3595 = vmatmul.msk.bf16.gmra.mxu1 %vm257_vm2, %v4171_v28 }
  0x72   :  { %3611 = vmatmul.msk.bf16.gmra.mxu2 %vm257_vm2, %v4171_v28  ;;  %3627 = vmatmul.msk.bf16.gmra.mxu3 %vm257_vm2, %v4171_v28  ;;  %v3890_v28 = vld [vmem:[%s6089_s5 + $0xf8] sm:$0xf0] }
  0x81   :  { %3580 = vmatmul.msk.bf16.gmra.mxu0 %vm257_vm2, %v4172_v29  ;;  %3596 = vmatmul.msk.bf16.gmra.mxu1 %vm257_vm2, %v4172_v29 }
  0x82   :  { %3612 = vmatmul.msk.bf16.gmra.mxu2 %vm257_vm2, %v4172_v29  ;;  %3628 = vmatmul.msk.bf16.gmra.mxu3 %vm257_vm2, %v4172_v29  ;;  %v3893_v29 = vor.u32 %v4212_v26, %v3890_v28  ;;  %v4181_v28 = vld [vmem:[%s6085_s1 + $0x78] sm:$0xff] }
  0x84   :  { %1974 = vmatpush.bf16.msra.mxu3 %v3893_v29 }
  0x91   :  { %3581 = vmatmul.msk.bf16.gmra.mxu0 %vm257_vm2, %v4173_v30  ;;  %3597 = vmatmul.msk.bf16.gmra.mxu1 %vm257_vm2, %v4173_v30 }
  0x92   :  { %3613 = vmatmul.msk.bf16.gmra.mxu2 %vm257_vm2, %v4173_v30  ;;  %3629 = vmatmul.msk.bf16.gmra.mxu3 %vm257_vm2, %v4173_v30 }
  0x9e   :  { %v4571_v32 = vpop.f32.mrf.mxu0  ;;  %v4573_v33 = vpop.f32.mrf.mxu1 }
  0xa1   :  { %3582 = vmatmul.msk.bf16.gmra.mxu0 %vm257_vm2, %v4174_v31  ;;  %3598 = vmatmul.msk.bf16.gmra.mxu1 %vm257_vm2, %v4174_v31 }
  0xa2   :  { %3614 = vmatmul.msk.bf16.gmra.mxu2 %vm257_vm2, %v4174_v31  ;;  %3630 = vmatmul.msk.bf16.gmra.mxu3 %vm257_vm2, %v4174_v31 }
  0xa5   :  { %v4579_v34 = vpop.f32.mrf.mxu2  ;;  %v4581_v35 = vpop.f32.mrf.mxu3 }
  0xa6   :  { %v4583_v36 = vpop.f32.mrf.mxu0  ;;  %v4585_v37 = vpop.f32.mrf.mxu1 }
  0xad   :  { %v4587_v38 = vpop.f32.mrf.mxu2  ;;  %v4589_v39 = vpop.f32.mrf.mxu3 }
  0xae   :  { %v4594_v41 = vpop.f32.mrf.mxu0  ;;  %v4596_v42 = vpop.f32.mrf.mxu1 }
  0xb1   :  { %3583 = vmatmul.msk.bf16.gmra.mxu0 %vm257_vm2, %v4175_v40  ;;  %3599 = vmatmul.msk.bf16.gmra.mxu1 %vm257_vm2, %v4175_v40 }
  0xb2   :  { %3615 = vmatmul.msk.bf16.gmra.mxu2 %vm257_vm2, %v4175_v40  ;;  %3631 = vmatmul.msk.bf16.gmra.mxu3 %vm257_vm2, %v4175_v40  ;;  %v3824_v40 = vld [vmem:[%s6089_s5 + $0x70] sm:$0xf] }
  0xb5   :  { %v4602_v43 = vpop.f32.mrf.mxu2  ;;  %v4604_v44 = vpop.f32.mrf.mxu3 }
  0xb6   :  { %v4606_v45 = vpop.f32.mrf.mxu0  ;;  %v4608_v46 = vpop.f32.mrf.mxu1 }
  0xbd   :  { %v4610_v47 = vpop.f32.mrf.mxu2  ;;  %v4612_v48 = vpop.f32.mrf.mxu3 }
  0xbe   :  { %v4617_v50 = vpop.f32.mrf.mxu0  ;;  %v4619_v51 = vpop.f32.mrf.mxu1 }
  0xc1   :  { %3584 = vmatmul.msk.bf16.gmra.mxu0 %vm257_vm2, %v4176_v49  ;;  %3600 = vmatmul.msk.bf16.gmra.mxu1 %vm257_vm2, %v4176_v49 }
  0xc2   :  { %3616 = vmatmul.msk.bf16.gmra.mxu2 %vm257_vm2, %v4176_v49  ;;  %3632 = vmatmul.msk.bf16.gmra.mxu3 %vm257_vm2, %v4176_v49  ;;  %v4197_v49 = vld [vmem:[%s6089_s5 + $0x74] sm:$0xf0] }
  0xc5   :  { %v4625_v52 = vpop.f32.mrf.mxu2  ;;  %v4627_v53 = vpop.f32.mrf.mxu3 }
  0xc6   :  { %v4629_v54 = vpop.f32.mrf.mxu0  ;;  %v4631_v55 = vpop.f32.mrf.mxu1 }
  0xcd   :  { %v4633_v56 = vpop.f32.mrf.mxu2  ;;  %v4635_v57 = vpop.f32.mrf.mxu3 }
  0xce   :  { %v4640_v59 = vpop.f32.mrf.mxu0  ;;  %v4642_v60 = vpop.f32.mrf.mxu1 }
  0xd1   :  { %3585 = vmatmul.msk.bf16.gmra.mxu0 %vm257_vm2, %v4177_v58  ;;  %3601 = vmatmul.msk.bf16.gmra.mxu1 %vm257_vm2, %v4177_v58 }
  0xd2   :  { %3617 = vmatmul.msk.bf16.gmra.mxu2 %vm257_vm2, %v4177_v58  ;;  %3633 = vmatmul.msk.bf16.gmra.mxu3 %vm257_vm2, %v4177_v58  ;;  %v3888_v58 = vld [vmem:[%s6089_s5 + $0xf0] sm:$0xf] }
  0xd3   :  { %v3889_v25 = vor.u32 %v4213_v24, %v3888_v58 }
  0xd5   :  { %v4648_v61 = vpop.f32.mrf.mxu2  ;;  %v4650_v62 = vpop.f32.mrf.mxu3  ;;  %1796 = vmatpush.bf16.msra.mxu1 %v3889_v25  ;;  %v4150_v25 = vld [vmem:[%s6084_s0] sm:$0xff] }
  0xd6   :  { %v4652_v63 = vpop.f32.mrf.mxu0  ;;  %v4654_v0 = vpop.f32.mrf.mxu1 }
  0xdd   :  { %v4656_v1 = vpop.f32.mrf.mxu2  ;;  %v4658_v2 = vpop.f32.mrf.mxu3 }
  0xde   :  { %v4663_v4 = vpop.f32.mrf.mxu0  ;;  %v4665_v5 = vpop.f32.mrf.mxu1 }
  0xe1   :  { %3586 = vmatmul.msk.bf16.gmra.mxu0 %vm257_vm2, %v4178_v3  ;;  %3602 = vmatmul.msk.bf16.gmra.mxu1 %vm257_vm2, %v4178_v3 }
  0xe2   :  { %3618 = vmatmul.msk.bf16.gmra.mxu2 %vm257_vm2, %v4178_v3  ;;  %3634 = vmatmul.msk.bf16.gmra.mxu3 %vm257_vm2, %v4178_v3 }
  0xe5   :  { %v4671_v6 = vpop.f32.mrf.mxu2  ;;  %v4673_v7 = vpop.f32.mrf.mxu3 }
  0xe6   :  { %v4675_v8 = vpop.f32.mrf.mxu0  ;;  %v4677_v9 = vpop.f32.mrf.mxu1 }
  0xed   :  { %v4679_v10 = vpop.f32.mrf.mxu2  ;;  %v4681_v11 = vpop.f32.mrf.mxu3 }
  0xee   :  { %v4686_v13 = vpop.f32.mrf.mxu0  ;;  %v4688_v14 = vpop.f32.mrf.mxu1 }
  0xf1   :  { %3587 = vmatmul.msk.bf16.gmra.mxu0 %vm257_vm2, %v4179_v12  ;;  %3603 = vmatmul.msk.bf16.gmra.mxu1 %vm257_vm2, %v4179_v12 }
  0xf2   :  { %3619 = vmatmul.msk.bf16.gmra.mxu2 %vm257_vm2, %v4179_v12  ;;  %3635 = vmatmul.msk.bf16.gmra.mxu3 %vm257_vm2, %v4179_v12 }
  0xf5   :  { %v4694_v15 = vpop.f32.mrf.mxu2  ;;  %v4696_v16 = vpop.f32.mrf.mxu3 }
  0xf6   :  { %6104 = vst [vmem:[#allocation15_spill] sm:$0xff] %v4696_v16  ;;  %v4698_v17 = vpop.f32.mrf.mxu0  ;;  %v4700_v18 = vpop.f32.mrf.mxu1 }
  0xfd   :  { %v4702_v19 = vpop.f32.mrf.mxu2  ;;  %v4704_v20 = vpop.f32.mrf.mxu3 }
  0xfe   :  { %6105 = vst [vmem:[#allocation16_spill] sm:$0xff] %v4702_v19  ;;  %v4709_v22 = vpop.f32.mrf.mxu0  ;;  %v4711_v23 = vpop.f32.mrf.mxu1 }
  0xff   :  { %6106 = vst [vmem:[#allocation17_spill] sm:$0xff] %v4704_v20 }
 0x100   :  { %6107 = vst [vmem:[#allocation18_spill] sm:$0xff] %v4709_v22 }
 0x101   :  { %6108 = vst [vmem:[#allocation19_spill] sm:$0xff] %v4711_v23  ;;  %3588 = vmatmul.msk.bf16.gmra.mxu0 %vm257_vm2, %v4180_v21  ;;  %3604 = vmatmul.msk.bf16.gmra.mxu1 %vm257_vm2, %v4180_v21 }
 0x102   :  { %3620 = vmatmul.msk.bf16.gmra.mxu2 %vm257_vm2, %v4180_v21  ;;  %3636 = vmatmul.msk.bf16.gmra.mxu3 %vm257_vm2, %v4180_v21  ;;  %v3825_v21 = vor.u32 %v4197_v49, %v3824_v40 }
 0x104   :  { %1707 = vmatpush.bf16.msra.mxu0 %v3825_v21 }
 0x105   :  { %v4729_v30 = vpop.f32.mrf.mxu2  ;;  %v4731_v31 = vpop.f32.mrf.mxu3 }
 0x106   :  { %6109 = vst [vmem:[#allocation20_spill] sm:$0xff] %v4729_v30  ;;  %v4742_v3 = vpop.f32.mrf.mxu0  ;;  %v4744_v12 = vpop.f32.mrf.mxu1 }
 0x107   :  { %6110 = vst [vmem:[#allocation21_spill] sm:$0xff] %v4731_v31 }
 0x108   :  { %6111 = vst [vmem:[#allocation22_spill] sm:$0xff] %v4742_v3 }
 0x109   :  { %6112 = vst [vmem:[#allocation23_spill] sm:$0xff] %v4744_v12 }
 0x10d   :  { %v4749_v26 = vpop.f32.mrf.mxu2  ;;  %v4751_v27 = vpop.f32.mrf.mxu3 }
 0x10e   :  { %6113 = vst [vmem:[#allocation24_spill] sm:$0xff] %v4749_v26  ;;  %v4756_v31 = vpop.f32.mrf.mxu0  ;;  %v4758_v30 = vpop.f32.mrf.mxu1  ;;  %v4151_v26 = vld [vmem:[%s6084_s0 + $0x8] sm:$0xff] }
 0x10f   :  { %6114 = vst [vmem:[#allocation25_spill] sm:$0xff] %v4751_v27 }
 0x110   :  { %6115 = vst [vmem:[#allocation26_spill] sm:$0xff] %v4756_v31 }
 0x111   :  { %6116 = vst [vmem:[#allocation27_spill] sm:$0xff] %v4758_v30  ;;  %3589 = vmatmul.msk.bf16.gmra.mxu0 %vm257_vm2, %v4181_v28  ;;  %3605 = vmatmul.msk.bf16.gmra.mxu1 %vm257_vm2, %v4181_v28 }
 0x112   :  { %3621 = vmatmul.msk.bf16.gmra.mxu2 %vm257_vm2, %v4181_v28  ;;  %3637 = vmatmul.msk.bf16.gmra.mxu3 %vm257_vm2, %v4181_v28  ;;  %v4194_v28 = vld [vmem:[%s6089_s5 + $0x64] sm:$0xf] }
 0x115   :  { %v4764_v29 = vpop.f32.mrf.mxu2  ;;  %v4766_v40 = vpop.f32.mrf.mxu3 }
 0x116   :  { %6117 = vst [vmem:[#allocation28_spill] sm:$0xff] %v4764_v29  ;;  %v4768_v49 = vpop.f32.mrf.mxu0  ;;  %v4770_v58 = vpop.f32.mrf.mxu1 }
 0x117   :  { %6118 = vst [vmem:[#allocation29_spill] sm:$0xff] %v4766_v40 }
 0x118   :  { %6119 = vst [vmem:[#allocation30_spill] sm:$0xff] %v4768_v49  ;;  %v4195_v49 = vld [vmem:[%s6089_s5 + $0x64] sm:$0xf0] }
 0x119   :  { %6120 = vst [vmem:[#allocation31_spill] sm:$0xff] %v4770_v58  ;;  %v3816_v58 = vld [vmem:[%s6089_s5 + $0x60] sm:$0xf] }
 0x11d   :  { %v4772_v21 = vpop.f32.mrf.mxu2  ;;  %v4774_v24 = vpop.f32.mrf.mxu3 }
 0x11e   :  { %6121 = vst [vmem:[#allocation32_spill] sm:$0xff] %v4772_v21  ;;  %v4779_v30 = vpop.f32.mrf.mxu0  ;;  %v4781_v31 = vpop.f32.mrf.mxu1  ;;  %v3882_v21 = vld [vmem:[%s6089_s5 + $0xe8] sm:$0xf0] }
 0x11f   :  { %6122 = vst [vmem:[#allocation33_spill] sm:$0xff] %v4774_v24  ;;  %v3818_v24 = vld [vmem:[%s6089_s5 + $0x68] sm:$0xf0] }
 0x120   :  { %6123 = vst [vmem:[#allocation34_spill] sm:$0xff] %v4779_v30  ;;  %v3821_v30 = vor.u32 %v4194_v28, %v3818_v24  ;;  %v3880_v24 = vld [vmem:[%s6089_s5 + $0xe0] sm:$0xf] }
 0x121   :  { %6124 = vst [vmem:[#allocation35_spill] sm:$0xff] %v4781_v31  ;;  %3702 = vmatmul.msk.bf16.vlgmr.msrb.gmra.mxu0 %vm761_vm3, %v4150_v25  ;;  %3718 = vmatmul.msk.bf16.vlgmr.msrb.gmra.mxu1 %vm761_vm3, %v4150_v25  ;;  %v4210_v31 = vld [vmem:[%s6089_s5 + $0xe4] sm:$0xf] }
 0x122   :  { %3734 = vmatmul.msk.bf16.vlgmr.msrb.gmra.mxu2 %vm761_vm3, %v4150_v25  ;;  %3750 = vmatmul.msk.bf16.vlgmr.msrb.gmra.mxu3 %vm761_vm3, %v4150_v25  ;;  %v3885_v40 = vor.u32 %v4210_v31, %v3882_v21  ;;  %v3817_v21 = vor.u32 %v4195_v49, %v3816_v58 }
 0x123   :  { %1886 = vmatpush.bf16.msra.mxu2 %v3821_v30  ;;  %v4211_v30 = vld [vmem:[%s6089_s5 + $0xe4] sm:$0xf0] }
 0x124   :  { %1975 = vmatpush.bf16.msra.mxu3 %v3885_v40  ;;  %1708 = vmatpush.bf16.msra.mxu0 %v3817_v21 }
 0x125   :  { %v4799_v29 = vpop.f32.mrf.mxu2  ;;  %v4801_v25 = vpop.f32.mrf.mxu3 }
 0x126   :  { %6125 = vst [vmem:[#allocation36_spill] sm:$0xff] %v4799_v29  ;;  %v4812_v28 = vpop.f32.mrf.mxu0  ;;  %v4814_v31 = vpop.f32.mrf.mxu1 }
 0x127   :  { %6126 = vst [vmem:[#allocation37_spill] sm:$0xff] %v4801_v25  ;;  %v3881_v25 = vor.u32 %v4211_v30, %v3880_v24  ;;  %v4152_v30 = vld [vmem:[%s6084_s0 + $0x10] sm:$0xff] }
 0x128   :  { %6127 = vst [vmem:[#allocation38_spill] sm:$0xff] %v4812_v28 }
 0x129   :  { %6128 = vst [vmem:[#allocation39_spill] sm:$0xff] %v4814_v31  ;;  %1797 = vmatpush.bf16.msra.mxu1 %v3881_v25 }
 0x12d   :  { %v4819_v29 = vpop.f32.mrf.mxu2  ;;  %v4821_v27 = vpop.f32.mrf.mxu3 }
 0x12e   :  { %6129 = vst [vmem:[#allocation40_spill] sm:$0xff] %v4819_v29  ;;  %v4826_v28 = vpop.f32.mrf.mxu0  ;;  %v4828_v31 = vpop.f32.mrf.mxu1  ;;  %v4153_v29 = vld [vmem:[%s6084_s0 + $0x18] sm:$0xff] }
 0x12f   :  { %6130 = vst [vmem:[#allocation41_spill] sm:$0xff] %v4821_v27 }
 0x130   :  { %6131 = vst [vmem:[#allocation42_spill] sm:$0xff] %v4826_v28 }
 0x131   :  { %6132 = vst [vmem:[#allocation43_spill] sm:$0xff] %v4828_v31  ;;  %3703 = vmatmul.msk.bf16.gmra.mxu0 %vm761_vm3, %v4151_v26  ;;  %3719 = vmatmul.msk.bf16.gmra.mxu1 %vm761_vm3, %v4151_v26 }
 0x132   :  { %3735 = vmatmul.msk.bf16.gmra.mxu2 %vm761_vm3, %v4151_v26  ;;  %3751 = vmatmul.msk.bf16.gmra.mxu3 %vm761_vm3, %v4151_v26  ;;  %v4192_v26 = vld [vmem:[%s6089_s5 + $0x54] sm:$0xf] }
 0x135   :  { %v4834_v40 = vpop.f32.mrf.mxu2  ;;  %v4836_v49 = vpop.f32.mrf.mxu3 }
 0x136   :  { %6133 = vst [vmem:[#allocation44_spill] sm:$0xff] %v4834_v40  ;;  %v4838_v58 = vpop.f32.mrf.mxu0  ;;  %v4840_v25 = vpop.f32.mrf.mxu1 }
 0x137   :  { %6134 = vst [vmem:[#allocation45_spill] sm:$0xff] %v4836_v49 }
 0x138   :  { %6135 = vst [vmem:[#allocation46_spill] sm:$0xff] %v4838_v58  ;;  %v4193_v58 = vld [vmem:[%s6089_s5 + $0x54] sm:$0xf0] }
 0x139   :  { %6136 = vst [vmem:[#allocation47_spill] sm:$0xff] %v4840_v25  ;;  %v3808_v25 = vld [vmem:[%s6089_s5 + $0x50] sm:$0xf] }
 0x13d   :  { %v4842_v24 = vpop.f32.mrf.mxu2  ;;  %v4844_v21 = vpop.f32.mrf.mxu3 }
 0x13e   :  { %6137 = vst [vmem:[#allocation48_spill] sm:$0xff] %v4842_v24  ;;  %v4849_v31 = vpop.f32.mrf.mxu0  ;;  %v4851_v28 = vpop.f32.mrf.mxu1  ;;  %v3874_v24 = vld [vmem:[%s6089_s5 + $0xd8] sm:$0xf0] }
 0x13f   :  { %6138 = vst [vmem:[#allocation49_spill] sm:$0xff] %v4844_v21  ;;  %v3810_v21 = vld [vmem:[%s6089_s5 + $0x58] sm:$0xf0] }
 0x140   :  { %6139 = vst [vmem:[#allocation50_spill] sm:$0xff] %v4849_v31  ;;  %v3813_v31 = vor.u32 %v4192_v26, %v3810_v21  ;;  %v3872_v21 = vld [vmem:[%s6089_s5 + $0xd0] sm:$0xf] }
 0x141   :  { %6140 = vst [vmem:[#allocation51_spill] sm:$0xff] %v4851_v28  ;;  %3704 = vmatmul.msk.bf16.gmra.mxu0 %vm761_vm3, %v4152_v30  ;;  %3720 = vmatmul.msk.bf16.gmra.mxu1 %vm761_vm3, %v4152_v30  ;;  %v4208_v28 = vld [vmem:[%s6089_s5 + $0xd4] sm:$0xf] }
 0x142   :  { %3736 = vmatmul.msk.bf16.gmra.mxu2 %vm761_vm3, %v4152_v30  ;;  %3752 = vmatmul.msk.bf16.gmra.mxu3 %vm761_vm3, %v4152_v30  ;;  %v3877_v49 = vor.u32 %v4208_v28, %v3874_v24  ;;  %v3809_v24 = vor.u32 %v4193_v58, %v3808_v25 }
 0x143   :  { %1887 = vmatpush.bf16.msra.mxu2 %v3813_v31  ;;  %v4209_v31 = vld [vmem:[%s6089_s5 + $0xd4] sm:$0xf0] }
 0x144   :  { %1976 = vmatpush.bf16.msra.mxu3 %v3877_v49  ;;  %1709 = vmatpush.bf16.msra.mxu0 %v3809_v24 }
 0x145   :  { %v4869_v40 = vpop.f32.mrf.mxu2  ;;  %v4871_v30 = vpop.f32.mrf.mxu3 }
 0x146   :  { %6141 = vst [vmem:[#allocation52_spill] sm:$0xff] %v4869_v40  ;;  %v4882_v26 = vpop.f32.mrf.mxu0  ;;  %v4884_v28 = vpop.f32.mrf.mxu1 }
 0x147   :  { %6142 = vst [vmem:[#allocation53_spill] sm:$0xff] %v4871_v30  ;;  %v3873_v30 = vor.u32 %v4209_v31, %v3872_v21  ;;  %v4154_v31 = vld [vmem:[%s6084_s0 + $0x20] sm:$0xff] }
 0x148   :  { %6143 = vst [vmem:[#allocation54_spill] sm:$0xff] %v4882_v26 }
 0x149   :  { %6144 = vst [vmem:[#allocation55_spill] sm:$0xff] %v4884_v28  ;;  %1798 = vmatpush.bf16.msra.mxu1 %v3873_v30 }
 0x14d   :  { %v4889_v40 = vpop.f32.mrf.mxu2  ;;  %v4891_v27 = vpop.f32.mrf.mxu3 }
 0x14e   :  { %6145 = vst [vmem:[#allocation56_spill] sm:$0xff] %v4889_v40  ;;  %v4896_v26 = vpop.f32.mrf.mxu0  ;;  %v4898_v28 = vpop.f32.mrf.mxu1  ;;  %v4155_v40 = vld [vmem:[%s6084_s0 + $0x28] sm:$0xff] }
 0x14f   :  { %6146 = vst [vmem:[#allocation57_spill] sm:$0xff] %v4891_v27 }
 0x150   :  { %6147 = vst [vmem:[#allocation58_spill] sm:$0xff] %v4896_v26 }
 0x151   :  { %6148 = vst [vmem:[#allocation59_spill] sm:$0xff] %v4898_v28  ;;  %3705 = vmatmul.msk.bf16.gmra.mxu0 %vm761_vm3, %v4153_v29  ;;  %3721 = vmatmul.msk.bf16.gmra.mxu1 %vm761_vm3, %v4153_v29 }
 0x152   :  { %3737 = vmatmul.msk.bf16.gmra.mxu2 %vm761_vm3, %v4153_v29  ;;  %3753 = vmatmul.msk.bf16.gmra.mxu3 %vm761_vm3, %v4153_v29  ;;  %v4190_v29 = vld [vmem:[%s6089_s5 + $0x44] sm:$0xf] }
 0x155   :  { %v4904_v49 = vpop.f32.mrf.mxu2  ;;  %v4906_v58 = vpop.f32.mrf.mxu3 }
 0x156   :  { %6149 = vst [vmem:[#allocation60_spill] sm:$0xff] %v4904_v49  ;;  %v4908_v25 = vpop.f32.mrf.mxu0  ;;  %v4910_v30 = vpop.f32.mrf.mxu1 }
 0x157   :  { %6150 = vst [vmem:[#allocation61_spill] sm:$0xff] %v4906_v58 }
 0x158   :  { %6151 = vst [vmem:[#allocation62_spill] sm:$0xff] %v4908_v25  ;;  %v4191_v25 = vld [vmem:[%s6089_s5 + $0x44] sm:$0xf0] }
 0x159   :  { %6152 = vst [vmem:[#allocation63_spill] sm:$0xff] %v4910_v30  ;;  %v3800_v30 = vld [vmem:[%s6089_s5 + $0x40] sm:$0xf] }
 0x15d   :  { %v4912_v21 = vpop.f32.mrf.mxu2  ;;  %v4914_v24 = vpop.f32.mrf.mxu3 }
 0x15e   :  { %6153 = vst [vmem:[#allocation64_spill] sm:$0xff] %v4912_v21  ;;  %v4919_v28 = vpop.f32.mrf.mxu0  ;;  %v4921_v26 = vpop.f32.mrf.mxu1  ;;  %v3866_v21 = vld [vmem:[%s6089_s5 + $0xc8] sm:$0xf0] }
 0x15f   :  { %6154 = vst [vmem:[#allocation65_spill] sm:$0xff] %v4914_v24  ;;  %v3802_v24 = vld [vmem:[%s6089_s5 + $0x48] sm:$0xf0] }
 0x160   :  { %6155 = vst [vmem:[#allocation66_spill] sm:$0xff] %v4919_v28  ;;  %v3805_v28 = vor.u32 %v4190_v29, %v3802_v24  ;;  %v3864_v24 = vld [vmem:[%s6089_s5 + $0xc0] sm:$0xf] }
 0x161   :  { %6156 = vst [vmem:[#allocation67_spill] sm:$0xff] %v4921_v26  ;;  %3706 = vmatmul.msk.bf16.gmra.mxu0 %vm761_vm3, %v4154_v31  ;;  %3722 = vmatmul.msk.bf16.gmra.mxu1 %vm761_vm3, %v4154_v31  ;;  %v4206_v26 = vld [vmem:[%s6089_s5 + $0xc4] sm:$0xf] }
 0x162   :  { %3738 = vmatmul.msk.bf16.gmra.mxu2 %vm761_vm3, %v4154_v31  ;;  %3754 = vmatmul.msk.bf16.gmra.mxu3 %vm761_vm3, %v4154_v31  ;;  %v3869_v58 = vor.u32 %v4206_v26, %v3866_v21  ;;  %v3801_v21 = vor.u32 %v4191_v25, %v3800_v30 }
 0x163   :  { %1888 = vmatpush.bf16.msra.mxu2 %v3805_v28  ;;  %v4207_v28 = vld [vmem:[%s6089_s5 + $0xc4] sm:$0xf0] }
 0x164   :  { %1977 = vmatpush.bf16.msra.mxu3 %v3869_v58  ;;  %1710 = vmatpush.bf16.msra.mxu0 %v3801_v21 }
 0x165   :  { %v4939_v49 = vpop.f32.mrf.mxu2  ;;  %v4941_v31 = vpop.f32.mrf.mxu3 }
 0x166   :  { %6157 = vst [vmem:[#allocation68_spill] sm:$0xff] %v4939_v49  ;;  %v4952_v29 = vpop.f32.mrf.mxu0  ;;  %v4954_v26 = vpop.f32.mrf.mxu1 }
 0x167   :  { %6158 = vst [vmem:[#allocation69_spill] sm:$0xff] %v4941_v31  ;;  %v3865_v31 = vor.u32 %v4207_v28, %v3864_v24  ;;  %v4156_v28 = vld [vmem:[%s6084_s0 + $0x30] sm:$0xff] }
 0x168   :  { %6159 = vst [vmem:[#allocation70_spill] sm:$0xff] %v4952_v29 }
 0x169   :  { %6160 = vst [vmem:[#allocation71_spill] sm:$0xff] %v4954_v26  ;;  %1799 = vmatpush.bf16.msra.mxu1 %v3865_v31 }
 0x16d   :  { %v4959_v49 = vpop.f32.mrf.mxu2  ;;  %v4961_v27 = vpop.f32.mrf.mxu3 }
 0x16e   :  { %6161 = vst [vmem:[#allocation72_spill] sm:$0xff] %v4959_v49  ;;  %v4966_v29 = vpop.f32.mrf.mxu0  ;;  %v4968_v26 = vpop.f32.mrf.mxu1 }
 0x16f   :  { %6162 = vst [vmem:[#allocation73_spill] sm:$0xff] %v4961_v27  ;;  %v3792_v27 = vld [vmem:[%s6089_s5 + $0x30] sm:$0xf] }
 0x170   :  { %6163 = vst [vmem:[#allocation74_spill] sm:$0xff] %v4966_v29 }
 0x171   :  { %6164 = vst [vmem:[#allocation75_spill] sm:$0xff] %v4968_v26  ;;  %3707 = vmatmul.msk.bf16.gmra.mxu0 %vm761_vm3, %v4155_v40  ;;  %3723 = vmatmul.msk.bf16.gmra.mxu1 %vm761_vm3, %v4155_v40 }
 0x172   :  { %3739 = vmatmul.msk.bf16.gmra.mxu2 %vm761_vm3, %v4155_v40  ;;  %3755 = vmatmul.msk.bf16.gmra.mxu3 %vm761_vm3, %v4155_v40  ;;  %v4188_v40 = vld [vmem:[%s6089_s5 + $0x34] sm:$0xf] }
 0x175   :  { %v4974_v58 = vpop.f32.mrf.mxu2  ;;  %v4976_v25 = vpop.f32.mrf.mxu3 }
 0x176   :  { %6165 = vst [vmem:[#allocation76_spill] sm:$0xff] %v4974_v58  ;;  %v4978_v30 = vpop.f32.mrf.mxu0  ;;  %v4980_v31 = vpop.f32.mrf.mxu1 }
 0x177   :  { %6166 = vst [vmem:[#allocation77_spill] sm:$0xff] %v4976_v25 }
 0x178   :  { %6167 = vst [vmem:[#allocation78_spill] sm:$0xff] %v4978_v30 }
 0x179   :  { %6168 = vst [vmem:[#allocation79_spill] sm:$0xff] %v4980_v31 }
 0x17d   :  { %v4982_v24 = vpop.f32.mrf.mxu2  ;;  %v4984_v21 = vpop.f32.mrf.mxu3 }
 0x17e   :  { %6169 = vst [vmem:[#allocation80_spill] sm:$0xff] %v4982_v24  ;;  %v4989_v26 = vpop.f32.mrf.mxu0  ;;  %v4991_v29 = vpop.f32.mrf.mxu1  ;;  %v3858_v24 = vld [vmem:[%s6089_s5 + $0xb8] sm:$0xf0] }
 0x17f   :  { %6170 = vst [vmem:[#allocation81_spill] sm:$0xff] %v4984_v21  ;;  %v3794_v21 = vld [vmem:[%s6089_s5 + $0x38] sm:$0xf0] }
 0x180   :  { %6171 = vst [vmem:[#allocation82_spill] sm:$0xff] %v4989_v26  ;;  %v3797_v26 = vor.u32 %v4188_v40, %v3794_v21  ;;  %v4189_v21 = vld [vmem:[%s6089_s5 + $0x34] sm:$0xf0]  ;;  %v3856_v40 = vld [vmem:[%s6089_s5 + $0xb0] sm:$0xf] }
 0x181   :  { %6172 = vst [vmem:[#allocation83_spill] sm:$0xff] %v4991_v29  ;;  %3708 = vmatmul.msk.bf16.gmra.mxu0 %vm761_vm3, %v4156_v28  ;;  %3724 = vmatmul.msk.bf16.gmra.mxu1 %vm761_vm3, %v4156_v28  ;;  %v4204_v29 = vld [vmem:[%s6089_s5 + $0xb4] sm:$0xf] }
 0x182   :  { %3740 = vmatmul.msk.bf16.gmra.mxu2 %vm761_vm3, %v4156_v28  ;;  %3756 = vmatmul.msk.bf16.gmra.mxu3 %vm761_vm3, %v4156_v28  ;;  %v3861_v58 = vor.u32 %v4204_v29, %v3858_v24  ;;  %v4205_v29 = vld [vmem:[%s6089_s5 + $0xb4] sm:$0xf0] }
 0x183   :  { %1889 = vmatpush.bf16.msra.mxu2 %v3797_v26  ;;  %v3857_v24 = vor.u32 %v4205_v29, %v3856_v40 }
 0x184   :  { %1978 = vmatpush.bf16.msra.mxu3 %v3861_v58 }
 0x185   :  { %v5009_v25 = vpop.f32.mrf.mxu2  ;;  %v5011_v28 = vpop.f32.mrf.mxu3  ;;  %1800 = vmatpush.bf16.msra.mxu1 %v3857_v24  ;;  %v4158_v24 = vld [vmem:[%s6084_s0 + $0x40] sm:$0xff] }
 0x186   :  { %6173 = vst [vmem:[#allocation84_spill] sm:$0xff] %v5009_v25  ;;  %v5013_v31 = vpop.f32.mrf.mxu0  ;;  %v5015_v30 = vpop.f32.mrf.mxu1  ;;  %v4157_v25 = vld [vmem:[%s6084_s0 + $0x38] sm:$0xff] }
 0x187   :  { %6174 = vst [vmem:[#allocation85_spill] sm:$0xff] %v5011_v28  ;;  %v3793_v28 = vor.u32 %v4189_v21, %v3792_v27 }
 0x188   :  { %6175 = vst [vmem:[#allocation86_spill] sm:$0xff] %v5013_v31 }
 0x189   :  { %6176 = vst [vmem:[#allocation87_spill] sm:$0xff] %v5015_v30  ;;  %1711 = vmatpush.bf16.msra.mxu0 %v3793_v28 }
 0x18d   :  { %v5029_v26 = vpop.f32.mrf.mxu2  ;;  %v5031_v58 = vpop.f32.mrf.mxu3 }
 0x18e   :  { %6177 = vst [vmem:[#allocation88_spill] sm:$0xff] %v5029_v26  ;;  %v5036_v30 = vpop.f32.mrf.mxu0  ;;  %v5038_v31 = vpop.f32.mrf.mxu1 }
 0x18f   :  { %6178 = vst [vmem:[#allocation89_spill] sm:$0xff] %v5031_v58 }
 0x190   :  { %6179 = vst [vmem:[#allocation90_spill] sm:$0xff] %v5036_v30 }
 0x191   :  { %6180 = vst [vmem:[#allocation91_spill] sm:$0xff] %v5038_v31  ;;  %3709 = vmatmul.msk.bf16.gmra.mxu0 %vm761_vm3, %v4157_v25  ;;  %3725 = vmatmul.msk.bf16.gmra.mxu1 %vm761_vm3, %v4157_v25 }
 0x192   :  { %3741 = vmatmul.msk.bf16.gmra.mxu2 %vm761_vm3, %v4157_v25  ;;  %3757 = vmatmul.msk.bf16.gmra.mxu3 %vm761_vm3, %v4157_v25  ;;  %v1179_v25 = vld [vmem:[%s6088_s4] sm:$0xf] }
 0x193   :  { %v5088_v22 = vperm.slane %v1179_v25, 2  ;;  %v5090_v20 = vperm.slane %v1179_v25, 3 }
 0x195   :  { %v5044_v27 = vpop.f32.mrf.mxu2  ;;  %v5046_v21 = vpop.f32.mrf.mxu3 }
 0x196   :  { %6181 = vst [vmem:[#allocation92_spill] sm:$0xff] %v5044_v27  ;;  %v5048_v40 = vpop.f32.mrf.mxu0  ;;  %v5050_v28 = vpop.f32.mrf.mxu1  ;;  %v5065_v27 = vperm.slane %v1179_v25, 0 }
 0x197   :  { %6182 = vst [vmem:[#allocation93_spill] sm:$0xff] %v5046_v21 }
 0x198   :  { %6183 = vst [vmem:[#allocation94_spill] sm:$0xff] %v5048_v40  ;;  %v3786_v40 = vld [vmem:[%s6089_s5 + $0x28] sm:$0xf0] }
 0x199   :  { %6184 = vst [vmem:[#allocation95_spill] sm:$0xff] %v5050_v28  ;;  %v4186_v28 = vld [vmem:[%s6089_s5 + $0x24] sm:$0xf] }
 0x19a   :  { %v3789_v26 = vor.u32 %v4186_v28, %v3786_v40 }
 0x19c   :  { %1890 = vmatpush.bf16.msra.mxu2 %v3789_v26 }
 0x19d   :  { %v5052_v29 = vpop.f32.mrf.mxu2  ;;  %v5054_v31 = vpop.f32.mrf.mxu3 }
 0x19e   :  { %6185 = vst [vmem:[#allocation96_spill] sm:$0xff] %v5052_v29  ;;  %v832_v30 = vpop.f32.mrf.mxu0  ;;  %v921_v58 = vpop.f32.mrf.mxu1  ;;  %v5068_v29 = vperm.slane %v1179_v25, 1 }
 0x19f   :  { %6186 = vst [vmem:[#allocation97_spill] sm:$0xff] %v5054_v31  ;;  %v833_v21 = vadd.f32 %v832_v30, %v4571_v32  ;;  %v922_v31 = vadd.f32 %v921_v58, %v4573_v33  ;;  %v4202_v32 = vld [vmem:[%s6089_s5 + $0xa4] sm:$0xf]  ;;  %v3850_v33 = vld [vmem:[%s6089_s5 + $0xa8] sm:$0xf0] }
 0x1a1   :  { %3710 = vmatmul.msk.bf16.gmra.mxu0 %vm761_vm3, %v4158_v24  ;;  %3726 = vmatmul.msk.bf16.gmra.mxu1 %vm761_vm3, %v4158_v24  ;;  %v1189_v49 = vadd.f32 %v5065_v27, %v833_v21  ;;  %v1190_v12 = vadd.f32 %v5068_v29, %v922_v31 }
 0x1a2   :  { %3742 = vmatmul.msk.bf16.gmra.mxu2 %vm761_vm3, %v4158_v24  ;;  %3758 = vmatmul.msk.bf16.gmra.mxu3 %vm761_vm3, %v4158_v24  ;;  %v3853_v24 = vor.u32 %v4202_v32, %v3850_v33 }
 0x1a3   :  { %v1317_v33 = vmax.f32 %v1189_v49, 0.0  ;;  %v1318_v21 = vmax.f32 %v1190_v12, 0.0  ;;  %v3848_v49 = vld [vmem:[%s6089_s5 + $0xa0] sm:$0xf] }
 0x1a4   :  { %1979 = vmatpush.bf16.msra.mxu3 %v3853_v24 }
 0x1a5   :  { %v1010_v30 = vpop.f32.mrf.mxu2  ;;  %v1099_v58 = vpop.f32.mrf.mxu3 }
 0x1a6   :  { %v834_v3 = vpop.f32.mrf.mxu0  ;;  %v923_v23 = vpop.f32.mrf.mxu1  ;;  %v1011_v31 = vadd.f32 %v1010_v30, %v4579_v34  ;;  %v1100_v16 = vadd.f32 %v1099_v58, %v4581_v35  ;;  %v4203_v34 = vld [vmem:[%s6089_s5 + $0xa4] sm:$0xf0] }
 0x1a7   :  { %v835_v40 = vadd.f32 %v834_v3, %v4583_v36  ;;  %v924_v28 = vadd.f32 %v923_v23, %v4585_v37  ;;  %v3784_v36 = vld [vmem:[%s6089_s5 + $0x20] sm:$0xf]  ;;  %v4187_v37 = vld [vmem:[%s6089_s5 + $0x24] sm:$0xf0]  ;;  %v3849_v35 = vor.u32 %v4203_v34, %v3848_v49 }
 0x1a8   :  { %v3785_v26 = vor.u32 %v4187_v37, %v3784_v36  ;;  %v1191_v24 = vadd.f32 %v5088_v22, %v1011_v31 }
 0x1a9   :  { %v1193_v19 = vadd.f32 %v5065_v27, %v835_v40  ;;  %v1194_v32 = vadd.f32 %v5068_v29, %v924_v28  ;;  %v1192_v40 = vadd.f32 %v5090_v20, %v1100_v16  ;;  %1801 = vmatpush.bf16.msra.mxu1 %v3849_v35 }
 0x1aa   :  { %1712 = vmatpush.bf16.msra.mxu0 %v3785_v26 }
 0x1ab   :  { %v1321_v23 = vmax.f32 %v1193_v19, 0.0  ;;  %v1322_v3 = vmax.f32 %v1194_v32, 0.0  ;;  %v4159_v19 = vld [vmem:[%s6084_s0 + $0x48] sm:$0xff] }
 0x1ad   :  { %v5108_v12 = vpack.c.bf16 %v1321_v23, %v1317_v33  ;;  %v5110_v25 = vpack.c.bf16 %v1322_v3, %v1318_v21  ;;  %v1012_v30 = vpop.f32.mrf.mxu2  ;;  %v1101_v58 = vpop.f32.mrf.mxu3  ;;  %v1319_v23 = vmax.f32 %v1191_v24, 0.0  ;;  %v1320_v3 = vmax.f32 %v1192_v40, 0.0 }
 0x1ae   :  { %v1013_v28 = vadd.f32 %v1012_v30, %v4587_v38  ;;  %v1102_v32 = vadd.f32 %v1101_v58, %v4589_v39  ;;  %v837_v36 = vpop.f32.mrf.mxu0  ;;  %v926_v33 = vpop.f32.mrf.mxu1 }
 0x1af   :  { %v838_v38 = vadd.f32 %v837_v36, %v4594_v41  ;;  %v927_v39 = vadd.f32 %v926_v33, %v4596_v42 }
 0x1b0   :  { %v1195_v21 = vadd.f32 %v5088_v22, %v1013_v28  ;;  %v1196_v37 = vadd.f32 %v5090_v20, %v1102_v32 }
 0x1b1   :  { %3711 = vmatmul.msk.bf16.gmra.mxu0 %vm761_vm3, %v4159_v19  ;;  %3727 = vmatmul.msk.bf16.gmra.mxu1 %vm761_vm3, %v4159_v19  ;;  %v1197_v24 = vadd.f32 %v5065_v27, %v838_v38  ;;  %v1198_v40 = vadd.f32 %v5068_v29, %v927_v39 }
 0x1b2   :  { %v1323_v31 = vmax.f32 %v1195_v21, 0.0  ;;  %v1324_v26 = vmax.f32 %v1196_v37, 0.0  ;;  %3743 = vmatmul.msk.bf16.gmra.mxu2 %vm761_vm3, %v4159_v19  ;;  %3759 = vmatmul.msk.bf16.gmra.mxu3 %vm761_vm3, %v4159_v19 }
 0x1b3   :  { %v1325_v33 = vmax.f32 %v1197_v24, 0.0  ;;  %v1326_v21 = vmax.f32 %v1198_v40, 0.0 }
 0x1b4   :  { %v5127_v16 = vpack.c.bf16 %v1323_v31, %v1319_v23  ;;  %v5129_v49 = vpack.c.bf16 %v1324_v26, %v1320_v3 }
 0x1b5   :  { %v1015_v34 = vpop.f32.mrf.mxu2  ;;  %v1104_v35 = vpop.f32.mrf.mxu3 }
 0x1b6   :  { %v839_v30 = vpop.f32.mrf.mxu0  ;;  %v928_v58 = vpop.f32.mrf.mxu1  ;;  %v1016_v41 = vadd.f32 %v1015_v34, %v4602_v43  ;;  %v1105_v42 = vadd.f32 %v1104_v35, %v4604_v44  ;;  %v4160_v43 = vld [vmem:[%s6084_s0 + $0x50] sm:$0xff] }
 0x1b7   :  { %v840_v28 = vadd.f32 %v839_v30, %v4606_v45  ;;  %v929_v19 = vadd.f32 %v928_v58, %v4608_v46 }
 0x1b8   :  { %v1199_v3 = vadd.f32 %v5088_v22, %v1016_v41  ;;  %v1200_v31 = vadd.f32 %v5090_v20, %v1105_v42  ;;  %v3778_v42 = vld [vmem:[%s6089_s5 + $0x18] sm:$0xf0] }
 0x1b9   :  { %v1201_v32 = vadd.f32 %v5065_v27, %v840_v28  ;;  %v1202_v36 = vadd.f32 %v5068_v29, %v929_v19 }
 0x1ba   :  { %v1327_v24 = vmax.f32 %v1199_v3, 0.0  ;;  %v1328_v40 = vmax.f32 %v1200_v31, 0.0 }
 0x1bb   :  { %v1329_v37 = vmax.f32 %v1201_v32, 0.0  ;;  %v1330_v23 = vmax.f32 %v1202_v36, 0.0  ;;  %v4200_v36 = vld [vmem:[%s6089_s5 + $0x94] sm:$0xf] }
 0x1bd   :  { %v1017_v26 = vpop.f32.mrf.mxu2  ;;  %v1106_v45 = vpop.f32.mrf.mxu3  ;;  %v5144_v46 = vpack.c.bf16 %v1329_v37, %v1325_v33  ;;  %v5146_v44 = vpack.c.bf16 %v1330_v23, %v1326_v21 }
 0x1be   :  { %v1018_v38 = vadd.f32 %v1017_v26, %v4610_v47  ;;  %v1107_v39 = vadd.f32 %v1106_v45, %v4612_v48  ;;  %v842_v34 = vpop.f32.mrf.mxu0  ;;  %v931_v35 = vpop.f32.mrf.mxu1  ;;  %v4184_v48 = vld [vmem:[%s6089_s5 + $0x14] sm:$0xf] }
 0x1bf   :  { %v843_v41 = vadd.f32 %v842_v34, %v4617_v50  ;;  %v932_v47 = vadd.f32 %v931_v35, %v4619_v51  ;;  %v3781_v32 = vor.u32 %v4184_v48, %v3778_v42  ;;  %v3842_v50 = vld [vmem:[%s6089_s5 + $0x98] sm:$0xf0] }
 0x1c0   :  { %v1203_v30 = vadd.f32 %v5088_v22, %v1018_v38  ;;  %v1204_v58 = vadd.f32 %v5090_v20, %v1107_v39  ;;  %v3845_v23 = vor.u32 %v4200_v36, %v3842_v50  ;;  %v4161_v42 = vld [vmem:[%s6084_s0 + $0x58] sm:$0xff] }
 0x1c1   :  { %3712 = vmatmul.msk.bf16.gmra.mxu0 %vm761_vm3, %v4160_v43  ;;  %3728 = vmatmul.msk.bf16.gmra.mxu1 %vm761_vm3, %v4160_v43  ;;  %v1205_v3 = vadd.f32 %v5065_v27, %v843_v41  ;;  %v1206_v31 = vadd.f32 %v5068_v29, %v932_v47  ;;  %v3840_v41 = vld [vmem:[%s6089_s5 + $0x90] sm:$0xf] }
 0x1c2   :  { %v1331_v28 = vmax.f32 %v1203_v30, 0.0  ;;  %v1332_v19 = vmax.f32 %v1204_v58, 0.0  ;;  %3744 = vmatmul.msk.bf16.gmra.mxu2 %vm761_vm3, %v4160_v43  ;;  %3760 = vmatmul.msk.bf16.gmra.mxu3 %vm761_vm3, %v4160_v43 }
 0x1c3   :  { %1891 = vmatpush.bf16.msra.mxu2 %v3781_v32  ;;  %1980 = vmatpush.bf16.msra.mxu3 %v3845_v23  ;;  %v1333_v35 = vmax.f32 %v1205_v3, 0.0  ;;  %v1334_v30 = vmax.f32 %v1206_v31, 0.0 }
 0x1c4   :  { %v5170_v51 = vpack.c.bf16 %v1331_v28, %v1327_v24  ;;  %v5172_v33 = vpack.c.bf16 %v1332_v19, %v1328_v40  ;;  %v3776_v40 = vld [vmem:[%s6089_s5 + $0x10] sm:$0xf] }
 0x1c5   :  { %v1020_v21 = vpop.f32.mrf.mxu2  ;;  %v1109_v37 = vpop.f32.mrf.mxu3 }
 0x1c6   :  { %v844_v26 = vpop.f32.mrf.mxu0  ;;  %v933_v45 = vpop.f32.mrf.mxu1  ;;  %v1021_v58 = vadd.f32 %v1020_v21, %v4625_v52  ;;  %v1110_v24 = vadd.f32 %v1109_v37, %v4627_v53  ;;  %v4201_v52 = vld [vmem:[%s6089_s5 + $0x94] sm:$0xf0] }
 0x1c7   :  { %v845_v43 = vadd.f32 %v844_v26, %v4629_v54  ;;  %v934_v38 = vadd.f32 %v933_v45, %v4631_v55  ;;  %v4185_v54 = vld [vmem:[%s6089_s5 + $0x14] sm:$0xf0]  ;;  %v3841_v53 = vor.u32 %v4201_v52, %v3840_v41 }
 0x1c8   :  { %v3777_v19 = vor.u32 %v4185_v54, %v3776_v40  ;;  %v1207_v50 = vadd.f32 %v5088_v22, %v1021_v58  ;;  %v1208_v21 = vadd.f32 %v5090_v20, %v1110_v24 }
 0x1c9   :  { %v1209_v39 = vadd.f32 %v5065_v27, %v845_v43  ;;  %v1210_v34 = vadd.f32 %v5068_v29, %v934_v38  ;;  %1802 = vmatpush.bf16.msra.mxu1 %v3841_v53 }
 0x1ca   :  { %1713 = vmatpush.bf16.msra.mxu0 %v3777_v19  ;;  %v1335_v43 = vmax.f32 %v1207_v50, 0.0  ;;  %v1336_v38 = vmax.f32 %v1208_v21, 0.0 }
 0x1cb   :  { %v1337_v55 = vmax.f32 %v1209_v39, 0.0  ;;  %v1338_v28 = vmax.f32 %v1210_v34, 0.0 }
 0x1cd   :  { %v1022_v47 = vpop.f32.mrf.mxu2  ;;  %v1111_v48 = vpop.f32.mrf.mxu3  ;;  %v5197_v32 = vpack.c.bf16 %v1337_v55, %v1333_v35  ;;  %v5199_v36 = vpack.c.bf16 %v1338_v28, %v1334_v30 }
 0x1ce   :  { %v1023_v37 = vadd.f32 %v1022_v47, %v4633_v56  ;;  %v1112_v23 = vadd.f32 %v1111_v48, %v4635_v57  ;;  %v847_v3 = vpop.f32.mrf.mxu0  ;;  %v936_v31 = vpop.f32.mrf.mxu1 }
 0x1cf   :  { %v848_v56 = vadd.f32 %v847_v3, %v4640_v59  ;;  %v937_v57 = vadd.f32 %v936_v31, %v4642_v60 }
 0x1d0   :  { %v1211_v26 = vadd.f32 %v5088_v22, %v1023_v37  ;;  %v1212_v45 = vadd.f32 %v5090_v20, %v1112_v23 }
 0x1d1   :  { %3713 = vmatmul.msk.bf16.gmra.mxu0 %vm761_vm3, %v4161_v42  ;;  %3729 = vmatmul.msk.bf16.gmra.mxu1 %vm761_vm3, %v4161_v42  ;;  %v1213_v55 = vadd.f32 %v5065_v27, %v848_v56  ;;  %v1214_v28 = vadd.f32 %v5068_v29, %v937_v57 }
 0x1d2   :  { %v1339_v39 = vmax.f32 %v1211_v26, 0.0  ;;  %v1340_v34 = vmax.f32 %v1212_v45, 0.0  ;;  %3745 = vmatmul.msk.bf16.gmra.mxu2 %vm761_vm3, %v4161_v42  ;;  %3761 = vmatmul.msk.bf16.gmra.mxu3 %vm761_vm3, %v4161_v42 }
 0x1d3   :  { %v1341_v47 = vmax.f32 %v1213_v55, 0.0  ;;  %v1342_v48 = vmax.f32 %v1214_v28, 0.0 }
 0x1d4   :  { %v5213_v35 = vpack.c.bf16 %v1339_v39, %v1335_v43  ;;  %v5215_v30 = vpack.c.bf16 %v1340_v34, %v1336_v38 }
 0x1d5   :  { %v1025_v58 = vpop.f32.mrf.mxu2  ;;  %v1114_v24 = vpop.f32.mrf.mxu3 }
 0x1d6   :  { %v849_v40 = vpop.f32.mrf.mxu0  ;;  %v938_v54 = vpop.f32.mrf.mxu1  ;;  %v1026_v59 = vadd.f32 %v1025_v58, %v4648_v61  ;;  %v1115_v60 = vadd.f32 %v1114_v24, %v4650_v62  ;;  %v4162_v61 = vld [vmem:[%s6084_s0 + $0x60] sm:$0xff]  ;;  %v3770_v24 = vld [vmem:[%s6089_s5 + $0x8] sm:$0xf0] }
 0x1d7   :  { %v850_v19 = vadd.f32 %v849_v40, %v4652_v63  ;;  %v939_v41 = vadd.f32 %v938_v54, %v4654_v0  ;;  %v4198_v54 = vld [vmem:[%s6089_s5 + $0x84] sm:$0xf] }
 0x1d8   :  { %v1215_v21 = vadd.f32 %v5088_v22, %v1026_v59  ;;  %v1216_v37 = vadd.f32 %v5090_v20, %v1115_v60 }
 0x1d9   :  { %v1217_v52 = vadd.f32 %v5065_v27, %v850_v19  ;;  %v1218_v53 = vadd.f32 %v5068_v29, %v939_v41 }
 0x1da   :  { %v1343_v39 = vmax.f32 %v1215_v21, 0.0  ;;  %v1344_v34 = vmax.f32 %v1216_v37, 0.0 }
 0x1db   :  { %v1345_v42 = vmax.f32 %v1217_v52, 0.0  ;;  %v1346_v50 = vmax.f32 %v1218_v53, 0.0 }
 0x1dd   :  { %v1027_v23 = vpop.f32.mrf.mxu2  ;;  %v1116_v63 = vpop.f32.mrf.mxu3  ;;  %v5230_v0 = vpack.c.bf16 %v1345_v42, %v1341_v47  ;;  %v5232_v62 = vpack.c.bf16 %v1346_v50, %v1342_v48 }
 0x1de   :  { %v1028_v3 = vadd.f32 %v1027_v23, %v4656_v1  ;;  %v1117_v31 = vadd.f32 %v1116_v63, %v4658_v2  ;;  %v852_v26 = vpop.f32.mrf.mxu0  ;;  %v941_v45 = vpop.f32.mrf.mxu1  ;;  %v4182_v2 = vld [vmem:[%s6089_s5 + $0x4] sm:$0xf] }
 0x1df   :  { %v853_v58 = vadd.f32 %v852_v26, %v4663_v4  ;;  %v942_v1 = vadd.f32 %v941_v45, %v4665_v5  ;;  %v3773_v40 = vor.u32 %v4182_v2, %v3770_v24  ;;  %v3834_v4 = vld [vmem:[%s6089_s5 + $0x88] sm:$0xf0]  ;;  %v3832_v26 = vld [vmem:[%s6089_s5 + $0x80] sm:$0xf] }
 0x1e0   :  { %v1219_v43 = vadd.f32 %v5088_v22, %v1028_v3  ;;  %v1220_v38 = vadd.f32 %v5090_v20, %v1117_v31  ;;  %v3837_v41 = vor.u32 %v4198_v54, %v3834_v4 }
 0x1e1   :  { %3714 = vmatmul.msk.bf16.gmra.mxu0 %vm761_vm3, %v4162_v61  ;;  %3730 = vmatmul.msk.bf16.gmra.mxu1 %vm761_vm3, %v4162_v61  ;;  %v1221_v59 = vadd.f32 %v5065_v27, %v853_v58  ;;  %v1222_v60 = vadd.f32 %v5068_v29, %v942_v1 }
 0x1e2   :  { %v1347_v56 = vmax.f32 %v1219_v43, 0.0  ;;  %v1348_v57 = vmax.f32 %v1220_v38, 0.0  ;;  %3746 = vmatmul.msk.bf16.gmra.mxu2 %vm761_vm3, %v4162_v61  ;;  %3762 = vmatmul.msk.bf16.gmra.mxu3 %vm761_vm3, %v4162_v61  ;;  %v3768_v61 = vld [vmem:[%s6089_s5] sm:$0xf]  ;;  %v4163_v38 = vld [vmem:[%s6084_s0 + $0x68] sm:$0xff] }
 0x1e3   :  { %1892 = vmatpush.bf16.msra.mxu2 %v3773_v40  ;;  %1981 = vmatpush.bf16.msra.mxu3 %v3837_v41  ;;  %v1349_v21 = vmax.f32 %v1221_v59, 0.0  ;;  %v1350_v37 = vmax.f32 %v1222_v60, 0.0 }
 0x1e4   :  { %v5256_v5 = vpack.c.bf16 %v1347_v56, %v1343_v39  ;;  %v5258_v55 = vpack.c.bf16 %v1348_v57, %v1344_v34 }
 0x1e5   :  { %v1030_v28 = vpop.f32.mrf.mxu2  ;;  %v1119_v19 = vpop.f32.mrf.mxu3 }
 0x1e6   :  { %v854_v52 = vpop.f32.mrf.mxu0  ;;  %v943_v53 = vpop.f32.mrf.mxu1  ;;  %v1031_v23 = vadd.f32 %v1030_v28, %v4671_v6  ;;  %v1120_v63 = vadd.f32 %v1119_v19, %v4673_v7  ;;  %v4199_v6 = vld [vmem:[%s6089_s5 + $0x84] sm:$0xf0] }
 0x1e7   :  { %v855_v47 = vadd.f32 %v854_v52, %v4675_v8  ;;  %v944_v48 = vadd.f32 %v943_v53, %v4677_v9  ;;  %v4183_v8 = vld [vmem:[%s6089_s5 + $0x4] sm:$0xf0]  ;;  %v3833_v7 = vor.u32 %v4199_v6, %v3832_v26 }
 0x1e8   :  { %v3769_v31 = vor.u32 %v4183_v8, %v3768_v61  ;;  %v1223_v56 = vadd.f32 %v5088_v22, %v1031_v23  ;;  %v1224_v57 = vadd.f32 %v5090_v20, %v1120_v63  ;;  %v6187_v23 = vld [vmem:[#allocation15_spill] sm:$0xff] }
 0x1e9   :  { %v1225_v42 = vadd.f32 %v5065_v27, %v855_v47  ;;  %v1226_v50 = vadd.f32 %v5068_v29, %v944_v48  ;;  %1803 = vmatpush.bf16.msra.mxu1 %v3833_v7 }
 0x1ea   :  { %1714 = vmatpush.bf16.msra.mxu0 %v3769_v31  ;;  %v1351_v4 = vmax.f32 %v1223_v56, 0.0  ;;  %v1352_v28 = vmax.f32 %v1224_v57, 0.0  ;;  %v6189_v56 = vld [vmem:[#allocation17_spill] sm:$0xff] }
 0x1eb   :  { %v1353_v9 = vmax.f32 %v1225_v42, 0.0  ;;  %v1354_v3 = vmax.f32 %v1226_v50, 0.0 }
 0x1ed   :  { %v1032_v45 = vpop.f32.mrf.mxu2  ;;  %v1121_v43 = vpop.f32.mrf.mxu3  ;;  %v5283_v39 = vpack.c.bf16 %v1353_v9, %v1349_v21  ;;  %v5285_v34 = vpack.c.bf16 %v1354_v3, %v1350_v37 }
 0x1ee   :  { %v1033_v58 = vadd.f32 %v1032_v45, %v4679_v10  ;;  %v1122_v1 = vadd.f32 %v1121_v43, %v4681_v11  ;;  %v857_v2 = vpop.f32.mrf.mxu0  ;;  %v946_v24 = vpop.f32.mrf.mxu1  ;;  %v6188_v43 = vld [vmem:[#allocation16_spill] sm:$0xff] }
 0x1ef   :  { %v858_v10 = vadd.f32 %v857_v2, %v4686_v13  ;;  %v947_v11 = vadd.f32 %v946_v24, %v4688_v14 }
 0x1f0   :  { %v1227_v40 = vadd.f32 %v5088_v22, %v1033_v58  ;;  %v1228_v54 = vadd.f32 %v5090_v20, %v1122_v1 }
 0x1f1   :  { %3715 = vmatmul.msk.bf16.gmra.mxu0 %vm761_vm3, %v4163_v38  ;;  %3731 = vmatmul.msk.bf16.gmra.mxu1 %vm761_vm3, %v4163_v38  ;;  %v1229_v42 = vadd.f32 %v5065_v27, %v858_v10  ;;  %v1230_v50 = vadd.f32 %v5068_v29, %v947_v11  ;;  %v6191_v10 = vld [vmem:[#allocation19_spill] sm:$0xff] }
 0x1f2   :  { %v1355_v19 = vmax.f32 %v1227_v40, 0.0  ;;  %v1356_v41 = vmax.f32 %v1228_v54, 0.0  ;;  %3747 = vmatmul.msk.bf16.gmra.mxu2 %vm761_vm3, %v4163_v38  ;;  %3763 = vmatmul.msk.bf16.gmra.mxu3 %vm761_vm3, %v4163_v38 }
 0x1f3   :  { %v1357_v8 = vmax.f32 %v1229_v42, 0.0  ;;  %v1358_v9 = vmax.f32 %v1230_v50, 0.0  ;;  %v4018_v42 = vld [vmem:[#allocation5 + $0xf8] sm:$0xf0] }
 0x1f4   :  { %v5299_v59 = vpack.c.bf16 %v1355_v19, %v1351_v4  ;;  %v5301_v60 = vpack.c.bf16 %v1356_v41, %v1352_v28  ;;  %v6190_v19 = vld [vmem:[#allocation18_spill] sm:$0xff] }
 0x1f5   :  { %v1035_v52 = vpop.f32.mrf.mxu2  ;;  %v1124_v53 = vpop.f32.mrf.mxu3 }
 0x1f6   :  { %v859_v47 = vpop.f32.mrf.mxu0  ;;  %v948_v48 = vpop.f32.mrf.mxu1  ;;  %v1036_v13 = vadd.f32 %v1035_v52, %v4694_v15  ;;  %v1125_v14 = vadd.f32 %v1124_v53, %v6187_v23  ;;  %v4164_v15 = vld [vmem:[%s6084_s0 + $0x70] sm:$0xff]  ;;  %v4228_v52 = vld [vmem:[#allocation5 + $0x74] sm:$0xf] }
 0x1f7   :  { %v860_v21 = vadd.f32 %v859_v47, %v4698_v17  ;;  %v949_v37 = vadd.f32 %v948_v48, %v4700_v18  ;;  %v3954_v53 = vld [vmem:[#allocation5 + $0x78] sm:$0xf0]  ;;  %v4244_v48 = vld [vmem:[#allocation5 + $0xf4] sm:$0xf] }
 0x1f8   :  { %v1231_v26 = vadd.f32 %v5088_v22, %v1036_v13  ;;  %v1232_v6 = vadd.f32 %v5090_v20, %v1125_v14  ;;  %v3957_v47 = vor.u32 %v4228_v52, %v3954_v53  ;;  %v4021_v23 = vor.u32 %v4244_v48, %v4018_v42  ;;  %v6196_v48 = vld [vmem:[#allocation24_spill] sm:$0xff] }
 0x1f9   :  { %v1233_v63 = vadd.f32 %v5065_v27, %v860_v21  ;;  %v1234_v61 = vadd.f32 %v5068_v29, %v949_v37 }
 0x1fa   :  { %v1359_v40 = vmax.f32 %v1231_v26, 0.0  ;;  %v1360_v54 = vmax.f32 %v1232_v6, 0.0  ;;  %2503 = vmatpush.bf16.msrb.mxu2 %v3957_v47  ;;  %2592 = vmatpush.bf16.msrb.mxu3 %v4021_v23 }
 0x1fb   :  { %v1361_v3 = vmax.f32 %v1233_v63, 0.0  ;;  %v1362_v31 = vmax.f32 %v1234_v61, 0.0 }
 0x1fd   :  { %v1037_v7 = vpop.f32.mrf.mxu2  ;;  %v1126_v17 = vpop.f32.mrf.mxu3  ;;  %v5316_v18 = vpack.c.bf16 %v1361_v3, %v1357_v8  ;;  %v5318_v45 = vpack.c.bf16 %v1362_v31, %v1358_v9  ;;  %v6192_v9 = vld [vmem:[#allocation22_spill] sm:$0xff]  ;;  %v6193_v31 = vld [vmem:[#allocation23_spill] sm:$0xff] }
 0x1fe   :  { %v1038_v38 = vadd.f32 %v1037_v7, %v6188_v43  ;;  %v1127_v57 = vadd.f32 %v1126_v17, %v6189_v56  ;;  %v862_v58 = vpop.f32.mrf.mxu0  ;;  %v951_v1 = vpop.f32.mrf.mxu1  ;;  %v6194_v43 = vld [vmem:[#allocation20_spill] sm:$0xff]  ;;  %v6195_v56 = vld [vmem:[#allocation21_spill] sm:$0xff] }
 0x1ff   :  { %v863_v41 = vadd.f32 %v862_v58, %v6190_v19  ;;  %v952_v11 = vadd.f32 %v951_v1, %v6191_v10  ;;  %v3952_v58 = vld [vmem:[#allocation5 + $0x70] sm:$0xf]  ;;  %v4229_v1 = vld [vmem:[#allocation5 + $0x74] sm:$0xf0]  ;;  %v4165_v10 = vld [vmem:[%s6084_s0 + $0x78] sm:$0xff] }
 0x200   :  { %v1235_v2 = vadd.f32 %v5088_v22, %v1038_v38  ;;  %v1236_v24 = vadd.f32 %v5090_v20, %v1127_v57 }
 0x201   :  { %3716 = vmatmul.msk.bf16.gmra.mxu0 %vm761_vm3, %v4164_v15  ;;  %3732 = vmatmul.msk.bf16.gmra.mxu1 %vm761_vm3, %v4164_v15  ;;  %v1237_v14 = vadd.f32 %v5065_v27, %v863_v41  ;;  %v1238_v63 = vadd.f32 %v5068_v29, %v952_v11 }
 0x202   :  { %v1363_v4 = vmax.f32 %v1235_v2, 0.0  ;;  %v1364_v28 = vmax.f32 %v1236_v24, 0.0  ;;  %3748 = vmatmul.msk.bf16.gmra.mxu2 %vm761_vm3, %v4164_v15  ;;  %3764 = vmatmul.msk.bf16.gmra.mxu3 %vm761_vm3, %v4164_v15 }
 0x203   :  { %v1365_v17 = vmax.f32 %v1237_v14, 0.0  ;;  %v1366_v15 = vmax.f32 %v1238_v63, 0.0 }
 0x204   :  { %v5330_v50 = vpack.c.bf16 %v1363_v4, %v1359_v40  ;;  %v5332_v21 = vpack.c.bf16 %v1364_v28, %v1360_v54  ;;  %v3953_v40 = vor.u32 %v4229_v1, %v3952_v58  ;;  %v4016_v54 = vld [vmem:[#allocation5 + $0xf0] sm:$0xf]  ;;  %v4245_v4 = vld [vmem:[#allocation5 + $0xf4] sm:$0xf0] }
 0x205   :  { %v1040_v37 = vpop.f32.mrf.mxu2  ;;  %v1129_v13 = vpop.f32.mrf.mxu3  ;;  %v4017_v28 = vor.u32 %v4245_v4, %v4016_v54  ;;  %v6201_v54 = vld [vmem:[#allocation31_spill] sm:$0xff] }
 0x206   :  { %v864_v61 = vpop.f32.mrf.mxu0  ;;  %v953_v8 = vpop.f32.mrf.mxu1  ;;  %v1041_v38 = vadd.f32 %v1040_v37, %v6194_v43  ;;  %v1130_v57 = vadd.f32 %v1129_v13, %v6195_v56  ;;  %2325 = vmatpush.bf16.msrb.mxu0 %v3953_v40  ;;  %v6197_v37 = vld [vmem:[#allocation25_spill] sm:$0xff] }
 0x207   :  { %v865_v3 = vadd.f32 %v864_v61, %v6192_v9  ;;  %v954_v26 = vadd.f32 %v953_v8, %v6193_v31  ;;  %2414 = vmatpush.bf16.msrb.mxu1 %v4017_v28  ;;  %v6202_v28 = vld [vmem:[#allocation28_spill] sm:$0xff] }
 0x208   :  { %v1239_v53 = vadd.f32 %v5088_v22, %v1041_v38  ;;  %v1240_v47 = vadd.f32 %v5090_v20, %v1130_v57 }
 0x209   :  { %v1241_v6 = vadd.f32 %v5065_v27, %v865_v3  ;;  %v1242_v7 = vadd.f32 %v5068_v29, %v954_v26  ;;  %v6198_v26 = vld [vmem:[#allocation26_spill] sm:$0xff] }
 0x20a   :  { %v1367_v8 = vmax.f32 %v1239_v53, 0.0  ;;  %v1368_v9 = vmax.f32 %v1240_v47, 0.0 }
 0x20b   :  { %v1369_v2 = vmax.f32 %v1241_v6, 0.0  ;;  %v1370_v24 = vmax.f32 %v1242_v7, 0.0  ;;  %v6199_v7 = vld [vmem:[#allocation27_spill] sm:$0xff] }
 0x20d   :  { %v1042_v19 = vpop.f32.mrf.mxu2  ;;  %v1131_v41 = vpop.f32.mrf.mxu3  ;;  %v5345_v11 = vpack.c.bf16 %v1369_v2, %v1365_v17  ;;  %v5347_v52 = vpack.c.bf16 %v1370_v24, %v1366_v15  ;;  %v6200_v24 = vld [vmem:[#allocation30_spill] sm:$0xff] }
 0x20e   :  { %v1043_v42 = vadd.f32 %v1042_v19, %v6196_v48  ;;  %v1132_v13 = vadd.f32 %v1131_v41, %v6197_v37  ;;  %v867_v23 = vpop.f32.mrf.mxu0  ;;  %v956_v14 = vpop.f32.mrf.mxu1  ;;  %v6203_v41 = vld [vmem:[#allocation29_spill] sm:$0xff] }
 0x20f   :  { %v868_v6 = vadd.f32 %v867_v23, %v6198_v26  ;;  %v957_v17 = vadd.f32 %v956_v14, %v6199_v7  ;;  %v6205_v26 = vld [vmem:[#allocation33_spill] sm:$0xff] }
 0x210   :  { %v1243_v63 = vadd.f32 %v5088_v22, %v1043_v42  ;;  %v1244_v61 = vadd.f32 %v5090_v20, %v1132_v13 }
 0x211   :  { %3717 = vmatmul.msk.bf16.gmra.mxu0 %vm761_vm3, %v4165_v10  ;;  %3733 = vmatmul.msk.bf16.gmra.mxu1 %vm761_vm3, %v4165_v10  ;;  %v1245_v1 = vadd.f32 %v5065_v27, %v868_v6  ;;  %v1246_v2 = vadd.f32 %v5068_v29, %v957_v17 }
 0x212   :  { %v1371_v3 = vmax.f32 %v1243_v63, 0.0  ;;  %v1372_v31 = vmax.f32 %v1244_v61, 0.0  ;;  %3749 = vmatmul.msk.bf16.gmra.mxu2 %vm761_vm3, %v4165_v10  ;;  %3765 = vmatmul.msk.bf16.gmra.mxu3 %vm761_vm3, %v4165_v10 }
 0x213   :  { %v1373_v48 = vmax.f32 %v1245_v1, 0.0  ;;  %v1374_v42 = vmax.f32 %v1246_v2, 0.0 }
 0x214   :  { %v5361_v15 = vpack.c.bf16 %v1371_v3, %v1367_v8  ;;  %v5363_v43 = vpack.c.bf16 %v1372_v31, %v1368_v9  ;;  %v6204_v3 = vld [vmem:[#allocation32_spill] sm:$0xff] }
 0x215   :  { %v1045_v38 = vpop.f32.mrf.mxu2  ;;  %v1134_v56 = vpop.f32.mrf.mxu3 }
 0x216   :  { %v869_v57 = vpop.f32.mrf.mxu0  ;;  %v958_v58 = vpop.f32.mrf.mxu1  ;;  %v1046_v19 = vadd.f32 %v1045_v38, %v6202_v28  ;;  %v1135_v10 = vadd.f32 %v1134_v56, %v6203_v41  ;;  %v4226_v28 = vld [vmem:[#allocation5 + $0x64] sm:$0xf] }
 0x217   :  { %v870_v40 = vadd.f32 %v869_v57, %v6200_v24  ;;  %v959_v4 = vadd.f32 %v958_v58, %v6201_v54  ;;  %v6206_v24 = vld [vmem:[#allocation34_spill] sm:$0xff]  ;;  %v6207_v54 = vld [vmem:[#allocation35_spill] sm:$0xff] }
 0x218   :  { %v1247_v23 = vadd.f32 %v5088_v22, %v1046_v19  ;;  %v1248_v14 = vadd.f32 %v5090_v20, %v1135_v10  ;;  %v3946_v19 = vld [vmem:[#allocation5 + $0x68] sm:$0xf0]  ;;  %v4242_v10 = vld [vmem:[#allocation5 + $0xe4] sm:$0xf] }
 0x219   :  { %v1249_v53 = vadd.f32 %v5065_v27, %v870_v40  ;;  %v1250_v47 = vadd.f32 %v5068_v29, %v959_v4  ;;  %v3949_v41 = vor.u32 %v4226_v28, %v3946_v19  ;;  %v4243_v28 = vld [vmem:[#allocation5 + $0xe4] sm:$0xf0] }
 0x21a   :  { %v1375_v57 = vmax.f32 %v1247_v23, 0.0  ;;  %v1376_v58 = vmax.f32 %v1248_v14, 0.0 }
 0x21b   :  { %v1377_v37 = vmax.f32 %v1249_v53, 0.0  ;;  %v1378_v13 = vmax.f32 %v1250_v47, 0.0  ;;  %v4010_v53 = vld [vmem:[#allocation5 + $0xe8] sm:$0xf0]  ;;  %2504 = vmatpush.bf16.msrb.mxu2 %v3949_v41 }
 0x21d   :  { %v1047_v63 = vpop.f32.mrf.mxu2  ;;  %v1136_v61 = vpop.f32.mrf.mxu3  ;;  %v5375_v8 = vpack.c.bf16 %v1377_v37, %v1373_v48  ;;  %v5377_v9 = vpack.c.bf16 %v1378_v13, %v1374_v42  ;;  %v4013_v13 = vor.u32 %v4242_v10, %v4010_v53 }
 0x21e   :  { %v1048_v31 = vadd.f32 %v1047_v63, %v6204_v3  ;;  %v1137_v6 = vadd.f32 %v1136_v61, %v6205_v26  ;;  %v872_v7 = vpop.f32.mrf.mxu0  ;;  %v961_v17 = vpop.f32.mrf.mxu1  ;;  %v6209_v3 = vld [vmem:[#allocation39_spill] sm:$0xff] }
 0x21f   :  { %v873_v40 = vadd.f32 %v872_v7, %v6206_v24  ;;  %v962_v4 = vadd.f32 %v961_v17, %v6207_v54  ;;  %2593 = vmatpush.bf16.msrb.mxu3 %v4013_v13 }
 0x220   :  { %v1251_v38 = vadd.f32 %v5088_v22, %v1048_v31  ;;  %v1252_v56 = vadd.f32 %v5090_v20, %v1137_v6 }
 0x221   :  { %1715 = vmatmul.bf16.vlgmr.msra.gmra.mxu0 %v5108_v12  ;;  %1804 = vmatmul.bf16.vlgmr.msra.gmra.mxu1 %v5110_v25  ;;  %v1253_v23 = vadd.f32 %v5065_v27, %v873_v40  ;;  %v1254_v14 = vadd.f32 %v5068_v29, %v962_v4  ;;  %v4008_v4 = vld [vmem:[#allocation5 + $0xe0] sm:$0xf] }
 0x222   :  { %v1379_v1 = vmax.f32 %v1251_v38, 0.0  ;;  %v1380_v2 = vmax.f32 %v1252_v56, 0.0  ;;  %1893 = vmatmul.bf16.vlgmr.msra.gmra.mxu2 %v5108_v12  ;;  %1982 = vmatmul.bf16.vlgmr.msra.gmra.mxu3 %v5110_v25  ;;  %v6208_v25 = vld [vmem:[#allocation38_spill] sm:$0xff]  ;;  %v6210_v38 = vld [vmem:[#allocation36_spill] sm:$0xff]  ;;  %v4009_v19 = vor.u32 %v4243_v28, %v4008_v4 }
 0x223   :  { %v1381_v7 = vmax.f32 %v1253_v23, 0.0  ;;  %v1382_v17 = vmax.f32 %v1254_v14, 0.0 }
 0x224   :  { %v5389_v47 = vpack.c.bf16 %v1379_v1, %v1375_v57  ;;  %v5391_v48 = vpack.c.bf16 %v1380_v2, %v1376_v58  ;;  %v6211_v57 = vld [vmem:[#allocation37_spill] sm:$0xff]  ;;  %v3944_v1 = vld [vmem:[#allocation5 + $0x60] sm:$0xf]  ;;  %v4227_v2 = vld [vmem:[#allocation5 + $0x64] sm:$0xf0]  ;;  %2415 = vmatpush.bf16.msrb.mxu1 %v4009_v19 }
 0x225   :  { %v1050_v42 = vpop.f32.mrf.mxu2  ;;  %v1139_v37 = vpop.f32.mrf.mxu3  ;;  %v3945_v54 = vor.u32 %v4227_v2, %v3944_v1 }
 0x226   :  { %v874_v63 = vpop.f32.mrf.mxu0  ;;  %v963_v12 = vpop.f32.mrf.mxu1  ;;  %v1051_v56 = vadd.f32 %v1050_v42, %v6210_v38  ;;  %v1140_v58 = vadd.f32 %v1139_v37, %v6211_v57  ;;  %v6212_v37 = vld [vmem:[#allocation40_spill] sm:$0xff]  ;;  %v6214_v38 = vld [vmem:[#allocation42_spill] sm:$0xff]  ;;  %v6215_v57 = vld [vmem:[#allocation43_spill] sm:$0xff] }
 0x227   :  { %v875_v61 = vadd.f32 %v874_v63, %v6208_v25  ;;  %v964_v31 = vadd.f32 %v963_v12, %v6209_v3  ;;  %2326 = vmatpush.bf16.msrb.mxu0 %v3945_v54  ;;  %v6213_v63 = vld [vmem:[#allocation41_spill] sm:$0xff] }
 0x228   :  { %v1255_v23 = vadd.f32 %v5088_v22, %v1051_v56  ;;  %v1256_v42 = vadd.f32 %v5090_v20, %v1140_v58 }
 0x229   :  { %v1257_v26 = vadd.f32 %v5065_v27, %v875_v61  ;;  %v1258_v6 = vadd.f32 %v5068_v29, %v964_v31 }
 0x22b   :  { %v1385_v24 = vmax.f32 %v1257_v26, 0.0  ;;  %v1386_v40 = vmax.f32 %v1258_v6, 0.0  ;;  %v1383_v26 = vmax.f32 %v1255_v23, 0.0  ;;  %v1384_v6 = vmax.f32 %v1256_v42, 0.0  ;;  %v6218_v23 = vld [vmem:[#allocation44_spill] sm:$0xff] }
 0x22d   :  { %v1052_v41 = vpop.f32.mrf.mxu2  ;;  %v1141_v10 = vpop.f32.mrf.mxu3  ;;  %v5401_v53 = vpack.c.bf16 %v1385_v24, %v1381_v7  ;;  %v5403_v13 = vpack.c.bf16 %v1386_v40, %v1382_v17 }
 0x22e   :  { %v1053_v14 = vadd.f32 %v1052_v41, %v6212_v37  ;;  %v1142_v12 = vadd.f32 %v1141_v10, %v6213_v63  ;;  %v877_v25 = vpop.f32.mrf.mxu0  ;;  %v966_v61 = vpop.f32.mrf.mxu1  ;;  %v6216_v41 = vld [vmem:[#allocation46_spill] sm:$0xff]  ;;  %v6217_v10 = vld [vmem:[#allocation47_spill] sm:$0xff]  ;;  %v6219_v37 = vld [vmem:[#allocation45_spill] sm:$0xff] }
 0x22f   :  { %v878_v56 = vadd.f32 %v877_v25, %v6214_v38  ;;  %v967_v58 = vadd.f32 %v966_v61, %v6215_v57  ;;  %v6220_v57 = vld [vmem:[#allocation48_spill] sm:$0xff] }
 0x230   :  { %v1259_v3 = vadd.f32 %v5088_v22, %v1053_v14  ;;  %v1260_v31 = vadd.f32 %v5090_v20, %v1142_v12 }
 0x231   :  { %1720 = vmatmul.bf16.gmra.mxu0 %v5144_v46  ;;  %1809 = vmatmul.bf16.gmra.mxu1 %v5146_v44  ;;  %v1261_v28 = vadd.f32 %v5065_v27, %v878_v56  ;;  %v1262_v19 = vadd.f32 %v5068_v29, %v967_v58 }
 0x232   :  { %v1387_v7 = vmax.f32 %v1259_v3, 0.0  ;;  %v1388_v17 = vmax.f32 %v1260_v31, 0.0  ;;  %1898 = vmatmul.bf16.gmra.mxu2 %v5144_v46  ;;  %1987 = vmatmul.bf16.gmra.mxu3 %v5146_v44 }
 0x233   :  { %v1389_v25 = vmax.f32 %v1261_v28, 0.0  ;;  %v1390_v61 = vmax.f32 %v1262_v19, 0.0 }
 0x234   :  { %v5417_v1 = vpack.c.bf16 %v1387_v7, %v1383_v26  ;;  %v5419_v2 = vpack.c.bf16 %v1388_v17, %v1384_v6 }
 0x235   :  { %v1055_v24 = vpop.f32.mrf.mxu2  ;;  %v1144_v40 = vpop.f32.mrf.mxu3 }
 0x236   :  { %v879_v54 = vpop.f32.mrf.mxu0  ;;  %v968_v4 = vpop.f32.mrf.mxu1  ;;  %v1056_v42 = vadd.f32 %v1055_v24, %v6218_v23  ;;  %v1145_v14 = vadd.f32 %v1144_v40, %v6219_v37  ;;  %v6221_v24 = vld [vmem:[#allocation49_spill] sm:$0xff]  ;;  %v6222_v23 = vld [vmem:[#allocation50_spill] sm:$0xff]  ;;  %v6223_v37 = vld [vmem:[#allocation51_spill] sm:$0xff] }
 0x237   :  { %v880_v46 = vadd.f32 %v879_v54, %v6216_v41  ;;  %v969_v44 = vadd.f32 %v968_v4, %v6217_v10 }
 0x238   :  { %v1263_v26 = vadd.f32 %v5088_v22, %v1056_v42  ;;  %v1264_v6 = vadd.f32 %v5090_v20, %v1145_v14 }
 0x239   :  { %v1265_v63 = vadd.f32 %v5065_v27, %v880_v46  ;;  %v1266_v12 = vadd.f32 %v5068_v29, %v969_v44 }
 0x23a   :  { %v1391_v41 = vmax.f32 %v1263_v26, 0.0  ;;  %v1392_v46 = vmax.f32 %v1264_v6, 0.0 }
 0x23b   :  { %v1393_v3 = vmax.f32 %v1265_v63, 0.0  ;;  %v1394_v31 = vmax.f32 %v1266_v12, 0.0  ;;  %v4224_v63 = vld [vmem:[#allocation5 + $0x54] sm:$0xf]  ;;  %v3938_v12 = vld [vmem:[#allocation5 + $0x58] sm:$0xf0] }
 0x23d   :  { %v1057_v7 = vpop.f32.mrf.mxu2  ;;  %v1146_v17 = vpop.f32.mrf.mxu3  ;;  %v5431_v38 = vpack.c.bf16 %v1393_v3, %v1389_v25  ;;  %v5433_v56 = vpack.c.bf16 %v1394_v31, %v1390_v61  ;;  %v3941_v25 = vor.u32 %v4224_v63, %v3938_v12  ;;  %v4240_v61 = vld [vmem:[#allocation5 + $0xd4] sm:$0xf]  ;;  %v4002_v3 = vld [vmem:[#allocation5 + $0xd8] sm:$0xf0] }
 0x23e   :  { %v1058_v58 = vadd.f32 %v1057_v7, %v6220_v57  ;;  %v1147_v40 = vadd.f32 %v1146_v17, %v6221_v24  ;;  %v882_v54 = vpop.f32.mrf.mxu0  ;;  %v971_v4 = vpop.f32.mrf.mxu1  ;;  %v4005_v17 = vor.u32 %v4240_v61, %v4002_v3  ;;  %v4000_v61 = vld [vmem:[#allocation5 + $0xd0] sm:$0xf]  ;;  %v4241_v3 = vld [vmem:[#allocation5 + $0xd4] sm:$0xf0] }
 0x23f   :  { %v883_v42 = vadd.f32 %v882_v54, %v6222_v23  ;;  %v972_v14 = vadd.f32 %v971_v4, %v6223_v37  ;;  %2505 = vmatpush.bf16.msrb.mxu2 %v3941_v25  ;;  %v6225_v54 = vld [vmem:[#allocation55_spill] sm:$0xff]  ;;  %v6227_v23 = vld [vmem:[#allocation53_spill] sm:$0xff] }
 0x240   :  { %v1267_v28 = vadd.f32 %v5088_v22, %v1058_v58  ;;  %v1268_v19 = vadd.f32 %v5090_v20, %v1147_v40  ;;  %2594 = vmatpush.bf16.msrb.mxu3 %v4005_v17  ;;  %v3936_v37 = vld [vmem:[#allocation5 + $0x50] sm:$0xf] }
 0x241   :  { %1725 = vmatmul.bf16.gmra.mxu0 %v5197_v32  ;;  %1814 = vmatmul.bf16.gmra.mxu1 %v5199_v36  ;;  %v1269_v57 = vadd.f32 %v5065_v27, %v883_v42  ;;  %v1270_v58 = vadd.f32 %v5068_v29, %v972_v14  ;;  %v4225_v14 = vld [vmem:[#allocation5 + $0x54] sm:$0xf0] }
 0x242   :  { %v1395_v10 = vmax.f32 %v1267_v28, 0.0  ;;  %v1396_v44 = vmax.f32 %v1268_v19, 0.0  ;;  %1903 = vmatmul.bf16.gmra.mxu2 %v5197_v32  ;;  %1992 = vmatmul.bf16.gmra.mxu3 %v5199_v36  ;;  %v6224_v36 = vld [vmem:[#allocation54_spill] sm:$0xff]  ;;  %v3937_v25 = vor.u32 %v4225_v14, %v3936_v37 }
 0x244   :  { %v5445_v31 = vpack.c.bf16 %v1395_v10, %v1391_v41  ;;  %v5447_v26 = vpack.c.bf16 %v1396_v44, %v1392_v46  ;;  %v1397_v41 = vmax.f32 %v1269_v57, 0.0  ;;  %v1398_v46 = vmax.f32 %v1270_v58, 0.0  ;;  %v6226_v10 = vld [vmem:[#allocation52_spill] sm:$0xff]  ;;  %2327 = vmatpush.bf16.msrb.mxu0 %v3937_v25 }
 0x245   :  { %v1060_v6 = vpop.f32.mrf.mxu2  ;;  %v1149_v7 = vpop.f32.mrf.mxu3 }
 0x246   :  { %v884_v24 = vpop.f32.mrf.mxu0  ;;  %v973_v32 = vpop.f32.mrf.mxu1  ;;  %v1061_v44 = vadd.f32 %v1060_v6, %v6226_v10  ;;  %v1150_v42 = vadd.f32 %v1149_v7, %v6227_v23  ;;  %v6228_v7 = vld [vmem:[#allocation56_spill] sm:$0xff] }
 0x247   :  { %v885_v40 = vadd.f32 %v884_v24, %v6224_v36  ;;  %v974_v4 = vadd.f32 %v973_v32, %v6225_v54  ;;  %v4001_v24 = vor.u32 %v4241_v3, %v4000_v61  ;;  %v6229_v54 = vld [vmem:[#allocation57_spill] sm:$0xff] }
 0x248   :  { %v1271_v57 = vadd.f32 %v5088_v22, %v1061_v44  ;;  %v1272_v6 = vadd.f32 %v5090_v20, %v1150_v42  ;;  %v6230_v42 = vld [vmem:[#allocation58_spill] sm:$0xff] }
 0x249   :  { %v1273_v28 = vadd.f32 %v5065_v27, %v885_v40  ;;  %v1274_v19 = vadd.f32 %v5068_v29, %v974_v4  ;;  %2416 = vmatpush.bf16.msrb.mxu1 %v4001_v24 }
 0x24b   :  { %v1401_v63 = vmax.f32 %v1273_v28, 0.0  ;;  %v1402_v12 = vmax.f32 %v1274_v19, 0.0 }
 0x24d   :  { %v1062_v32 = vpop.f32.mrf.mxu2  ;;  %v1151_v17 = vpop.f32.mrf.mxu3  ;;  %v5457_v36 = vpack.c.bf16 %v1401_v63, %v1397_v41  ;;  %v5459_v40 = vpack.c.bf16 %v1402_v12, %v1398_v46  ;;  %v1399_v41 = vmax.f32 %v1271_v57, 0.0  ;;  %v1400_v46 = vmax.f32 %v1272_v6, 0.0  ;;  %v6231_v63 = vld [vmem:[#allocation59_spill] sm:$0xff] }
 0x24e   :  { %v1063_v58 = vadd.f32 %v1062_v32, %v6228_v7  ;;  %v1152_v4 = vadd.f32 %v1151_v17, %v6229_v54  ;;  %v887_v28 = vpop.f32.mrf.mxu0  ;;  %v976_v19 = vpop.f32.mrf.mxu1  ;;  %v6233_v7 = vld [vmem:[#allocation62_spill] sm:$0xff]  ;;  %v6235_v54 = vld [vmem:[#allocation60_spill] sm:$0xff] }
 0x24f   :  { %v888_v14 = vadd.f32 %v887_v28, %v6230_v42  ;;  %v977_v12 = vadd.f32 %v976_v19, %v6231_v63  ;;  %v6236_v28 = vld [vmem:[#allocation61_spill] sm:$0xff] }
 0x250   :  { %v1275_v10 = vadd.f32 %v5088_v22, %v1063_v58  ;;  %v1276_v23 = vadd.f32 %v5090_v20, %v1152_v4  ;;  %v6234_v58 = vld [vmem:[#allocation63_spill] sm:$0xff] }
 0x251   :  { %1730 = vmatmul.bf16.gmra.mxu0 %v5230_v0  ;;  %1819 = vmatmul.bf16.gmra.mxu1 %v5232_v62  ;;  %v1277_v57 = vadd.f32 %v5065_v27, %v888_v14  ;;  %v1278_v6 = vadd.f32 %v5068_v29, %v977_v12 }
 0x252   :  { %v1403_v44 = vmax.f32 %v1275_v10, 0.0  ;;  %v1404_v37 = vmax.f32 %v1276_v23, 0.0  ;;  %1908 = vmatmul.bf16.gmra.mxu2 %v5230_v0  ;;  %1997 = vmatmul.bf16.gmra.mxu3 %v5232_v62 }
 0x254   :  { %v5473_v25 = vpack.c.bf16 %v1403_v44, %v1399_v41  ;;  %v5475_v61 = vpack.c.bf16 %v1404_v37, %v1400_v46  ;;  %v1405_v41 = vmax.f32 %v1277_v57, 0.0  ;;  %v1406_v46 = vmax.f32 %v1278_v6, 0.0 }
 0x255   :  { %v1065_v3 = vpop.f32.mrf.mxu2  ;;  %v1154_v24 = vpop.f32.mrf.mxu3 }
 0x256   :  { %6232 = vst [vmem:[#allocation15_spill] sm:$0xff] %v5475_v61  ;;  %v889_v32 = vpop.f32.mrf.mxu0  ;;  %v978_v17 = vpop.f32.mrf.mxu1  ;;  %v1066_v4 = vadd.f32 %v1065_v3, %v6235_v54  ;;  %v1155_v19 = vadd.f32 %v1154_v24, %v6236_v28  ;;  %v6237_v3 = vld [vmem:[#allocation64_spill] sm:$0xff]  ;;  %v3992_v61 = vld [vmem:[#allocation5 + $0xc0] sm:$0xf] }
 0x257   :  { %v890_v0 = vadd.f32 %v889_v32, %v6233_v7  ;;  %v979_v62 = vadd.f32 %v978_v17, %v6234_v58  ;;  %v6238_v7 = vld [vmem:[#allocation65_spill] sm:$0xff] }
 0x258   :  { %v1279_v42 = vadd.f32 %v5088_v22, %v1066_v4  ;;  %v1280_v14 = vadd.f32 %v5090_v20, %v1155_v19 }
 0x259   :  { %v1281_v10 = vadd.f32 %v5065_v27, %v890_v0  ;;  %v1282_v23 = vadd.f32 %v5068_v29, %v979_v62 }
 0x25a   :  { %v1407_v54 = vmax.f32 %v1279_v42, 0.0  ;;  %v1408_v4 = vmax.f32 %v1280_v14, 0.0  ;;  %v3994_v42 = vld [vmem:[#allocation5 + $0xc8] sm:$0xf0] }
 0x25b   :  { %v1409_v44 = vmax.f32 %v1281_v10, 0.0  ;;  %v1410_v37 = vmax.f32 %v1282_v23, 0.0  ;;  %v6239_v10 = vld [vmem:[#allocation66_spill] sm:$0xff] }
 0x25d   :  { %v1067_v63 = vpop.f32.mrf.mxu2  ;;  %v1156_v12 = vpop.f32.mrf.mxu3  ;;  %v5487_v32 = vpack.c.bf16 %v1409_v44, %v1405_v41  ;;  %v5489_v17 = vpack.c.bf16 %v1410_v37, %v1406_v46  ;;  %v6240_v41 = vld [vmem:[#allocation67_spill] sm:$0xff]  ;;  %v3930_v37 = vld [vmem:[#allocation5 + $0x48] sm:$0xf0] }
 0x25e   :  { %v1068_v24 = vadd.f32 %v1067_v63, %v6237_v3  ;;  %v1157_v0 = vadd.f32 %v1156_v12, %v6238_v7  ;;  %v892_v58 = vpop.f32.mrf.mxu0  ;;  %v981_v62 = vpop.f32.mrf.mxu1  ;;  %v4222_v44 = vld [vmem:[#allocation5 + $0x44] sm:$0xf] }
 0x25f   :  { %v893_v23 = vadd.f32 %v892_v58, %v6239_v10  ;;  %v982_v46 = vadd.f32 %v981_v62, %v6240_v41  ;;  %v3933_v63 = vor.u32 %v4222_v44, %v3930_v37  ;;  %v4238_v12 = vld [vmem:[#allocation5 + $0xc4] sm:$0xf]  ;;  %v6245_v44 = vld [vmem:[#allocation68_spill] sm:$0xff] }
 0x260   :  { %v1283_v57 = vadd.f32 %v5088_v22, %v1068_v24  ;;  %v1284_v6 = vadd.f32 %v5090_v20, %v1157_v0  ;;  %v3997_v0 = vor.u32 %v4238_v12, %v3994_v42  ;;  %v6244_v10 = vld [vmem:[#allocation71_spill] sm:$0xff]  ;;  %v6246_v12 = vld [vmem:[#allocation69_spill] sm:$0xff] }
 0x261   :  { %1735 = vmatmul.bf16.gmra.mxu0 %v5283_v39  ;;  %1824 = vmatmul.bf16.gmra.mxu1 %v5285_v34  ;;  %v1285_v58 = vadd.f32 %v5065_v27, %v893_v23  ;;  %v1286_v62 = vadd.f32 %v5068_v29, %v982_v46  ;;  %v3928_v42 = vld [vmem:[#allocation5 + $0x40] sm:$0xf]  ;;  %v4223_v46 = vld [vmem:[#allocation5 + $0x44] sm:$0xf0] }
 0x262   :  { %v1411_v28 = vmax.f32 %v1283_v57, 0.0  ;;  %v1412_v19 = vmax.f32 %v1284_v6, 0.0  ;;  %1913 = vmatmul.bf16.gmra.mxu2 %v5283_v39  ;;  %2002 = vmatmul.bf16.gmra.mxu3 %v5285_v34  ;;  %v6243_v34 = vld [vmem:[#allocation70_spill] sm:$0xff] }
 0x263   :  { %2506 = vmatpush.bf16.msrb.mxu2 %v3933_v63  ;;  %2595 = vmatpush.bf16.msrb.mxu3 %v3997_v0  ;;  %v3929_v63 = vor.u32 %v4223_v46, %v3928_v42  ;;  %v6250_v42 = vld [vmem:[#allocation75_spill] sm:$0xff] }
 0x264   :  { %v5501_v14 = vpack.c.bf16 %v1411_v28, %v1407_v54  ;;  %v5503_v3 = vpack.c.bf16 %v1412_v19, %v1408_v4  ;;  %v1413_v28 = vmax.f32 %v1285_v58, 0.0  ;;  %v1414_v19 = vmax.f32 %v1286_v62, 0.0 }
 0x265   :  { %v1070_v24 = vpop.f32.mrf.mxu2  ;;  %v1159_v7 = vpop.f32.mrf.mxu3  ;;  %2328 = vmatpush.bf16.msrb.mxu0 %v3929_v63 }
 0x266   :  { %6241 = vst [vmem:[#allocation16_spill] sm:$0xff] %v5501_v14  ;;  %v894_v57 = vpop.f32.mrf.mxu0  ;;  %v983_v39 = vpop.f32.mrf.mxu1  ;;  %v1071_v37 = vadd.f32 %v1070_v24, %v6245_v44  ;;  %v1160_v23 = vadd.f32 %v1159_v7, %v6246_v12  ;;  %v6247_v7 = vld [vmem:[#allocation72_spill] sm:$0xff] }
 0x267   :  { %6242 = vst [vmem:[#allocation17_spill] sm:$0xff] %v5503_v3  ;;  %v895_v6 = vadd.f32 %v894_v57, %v6243_v34  ;;  %v984_v41 = vadd.f32 %v983_v39, %v6244_v10  ;;  %v4239_v57 = vld [vmem:[#allocation5 + $0xc4] sm:$0xf0] }
 0x268   :  { %v3993_v34 = vor.u32 %v4239_v57, %v3992_v61  ;;  %v1287_v58 = vadd.f32 %v5088_v22, %v1071_v37  ;;  %v1288_v24 = vadd.f32 %v5090_v20, %v1160_v23  ;;  %v6249_v37 = vld [vmem:[#allocation74_spill] sm:$0xff] }
 0x269   :  { %v1289_v54 = vadd.f32 %v5065_v27, %v895_v6  ;;  %v1290_v4 = vadd.f32 %v5068_v29, %v984_v41  ;;  %v6248_v41 = vld [vmem:[#allocation73_spill] sm:$0xff] }
 0x26a   :  { %2417 = vmatpush.bf16.msrb.mxu1 %v3993_v34 }
 0x26b   :  { %v1417_v3 = vmax.f32 %v1289_v54, 0.0  ;;  %v1418_v14 = vmax.f32 %v1290_v4, 0.0 }
 0x26d   :  { %v1072_v39 = vpop.f32.mrf.mxu2  ;;  %v1161_v0 = vpop.f32.mrf.mxu3  ;;  %v5513_v6 = vpack.c.bf16 %v1417_v3, %v1413_v28  ;;  %v5515_v10 = vpack.c.bf16 %v1418_v14, %v1414_v19  ;;  %v1415_v14 = vmax.f32 %v1287_v58, 0.0  ;;  %v1416_v3 = vmax.f32 %v1288_v24, 0.0 }
 0x26e   :  { %v1073_v62 = vadd.f32 %v1072_v39, %v6247_v7  ;;  %v1162_v54 = vadd.f32 %v1161_v0, %v6248_v41  ;;  %v897_v4 = vpop.f32.mrf.mxu0  ;;  %v986_v44 = vpop.f32.mrf.mxu1  ;;  %v6254_v41 = vld [vmem:[#allocation79_spill] sm:$0xff] }
 0x26f   :  { %v898_v23 = vadd.f32 %v897_v4, %v6249_v37  ;;  %v987_v46 = vadd.f32 %v986_v44, %v6250_v42 }
 0x270   :  { %v1291_v61 = vadd.f32 %v5088_v22, %v1073_v62  ;;  %v1292_v12 = vadd.f32 %v5090_v20, %v1162_v54  ;;  %v6253_v62 = vld [vmem:[#allocation78_spill] sm:$0xff]  ;;  %v6255_v54 = vld [vmem:[#allocation76_spill] sm:$0xff] }
 0x271   :  { %1740 = vmatmul.bf16.gmra.mxu0 %v5316_v18  ;;  %1829 = vmatmul.bf16.gmra.mxu1 %v5318_v45  ;;  %v1293_v58 = vadd.f32 %v5065_v27, %v898_v23  ;;  %v1294_v24 = vadd.f32 %v5068_v29, %v987_v46 }
 0x272   :  { %v1419_v28 = vmax.f32 %v1291_v61, 0.0  ;;  %v1420_v19 = vmax.f32 %v1292_v12, 0.0  ;;  %1918 = vmatmul.bf16.gmra.mxu2 %v5316_v18  ;;  %2007 = vmatmul.bf16.gmra.mxu3 %v5318_v45  ;;  %v6256_v61 = vld [vmem:[#allocation77_spill] sm:$0xff] }
 0x274   :  { %v5529_v63 = vpack.c.bf16 %v1419_v28, %v1415_v14  ;;  %v5531_v57 = vpack.c.bf16 %v1420_v19, %v1416_v3  ;;  %v1421_v3 = vmax.f32 %v1293_v58, 0.0  ;;  %v1422_v28 = vmax.f32 %v1294_v24, 0.0 }
 0x275   :  { %v1075_v34 = vpop.f32.mrf.mxu2  ;;  %v1164_v39 = vpop.f32.mrf.mxu3 }
 0x276   :  { %6251 = vst [vmem:[#allocation18_spill] sm:$0xff] %v5529_v63  ;;  %v899_v0 = vpop.f32.mrf.mxu0  ;;  %v988_v7 = vpop.f32.mrf.mxu1  ;;  %v1076_v4 = vadd.f32 %v1075_v34, %v6255_v54  ;;  %v1165_v44 = vadd.f32 %v1164_v39, %v6256_v61  ;;  %v6257_v34 = vld [vmem:[#allocation80_spill] sm:$0xff]  ;;  %v3984_v63 = vld [vmem:[#allocation5 + $0xb0] sm:$0xf] }
 0x277   :  { %6252 = vst [vmem:[#allocation19_spill] sm:$0xff] %v5531_v57  ;;  %v900_v18 = vadd.f32 %v899_v0, %v6253_v62  ;;  %v989_v45 = vadd.f32 %v988_v7, %v6254_v41  ;;  %v6258_v41 = vld [vmem:[#allocation81_spill] sm:$0xff] }
 0x278   :  { %v1295_v23 = vadd.f32 %v5088_v22, %v1076_v4  ;;  %v1296_v42 = vadd.f32 %v5090_v20, %v1165_v44 }
 0x279   :  { %v1297_v12 = vadd.f32 %v5065_v27, %v900_v18  ;;  %v1298_v14 = vadd.f32 %v5068_v29, %v989_v45 }
 0x27a   :  { %v1423_v61 = vmax.f32 %v1295_v23, 0.0  ;;  %v1424_v4 = vmax.f32 %v1296_v42, 0.0  ;;  %v3986_v23 = vld [vmem:[#allocation5 + $0xb8] sm:$0xf0] }
 0x27b   :  { %v1425_v19 = vmax.f32 %v1297_v12, 0.0  ;;  %v1426_v37 = vmax.f32 %v1298_v14, 0.0  ;;  %v6259_v14 = vld [vmem:[#allocation82_spill] sm:$0xff] }
 0x27d   :  { %v1077_v46 = vpop.f32.mrf.mxu2  ;;  %v1166_v0 = vpop.f32.mrf.mxu3  ;;  %v5543_v62 = vpack.c.bf16 %v1425_v19, %v1421_v3  ;;  %v5545_v7 = vpack.c.bf16 %v1426_v37, %v1422_v28  ;;  %v6260_v28 = vld [vmem:[#allocation83_spill] sm:$0xff]  ;;  %v4220_v37 = vld [vmem:[#allocation5 + $0x34] sm:$0xf] }
 0x27e   :  { %v1078_v39 = vadd.f32 %v1077_v46, %v6257_v34  ;;  %v1167_v18 = vadd.f32 %v1166_v0, %v6258_v41  ;;  %v902_v54 = vpop.f32.mrf.mxu0  ;;  %v991_v45 = vpop.f32.mrf.mxu1  ;;  %v3922_v46 = vld [vmem:[#allocation5 + $0x38] sm:$0xf0]  ;;  %v4236_v34 = vld [vmem:[#allocation5 + $0xb4] sm:$0xf] }
 0x27f   :  { %v903_v3 = vadd.f32 %v902_v54, %v6259_v14  ;;  %v992_v19 = vadd.f32 %v991_v45, %v6260_v28  ;;  %v3925_v0 = vor.u32 %v4220_v37, %v3922_v46  ;;  %v6264_v28 = vld [vmem:[#allocation87_spill] sm:$0xff]  ;;  %v6265_v46 = vld [vmem:[#allocation84_spill] sm:$0xff] }
 0x280   :  { %v1299_v58 = vadd.f32 %v5088_v22, %v1078_v39  ;;  %v1300_v24 = vadd.f32 %v5090_v20, %v1167_v18 }
 0x281   :  { %1745 = vmatmul.bf16.gmra.mxu0 %v5345_v11  ;;  %1834 = vmatmul.bf16.gmra.mxu1 %v5347_v52  ;;  %v1301_v54 = vadd.f32 %v5065_v27, %v903_v3  ;;  %v1302_v45 = vadd.f32 %v5068_v29, %v992_v19  ;;  %v4221_v19 = vld [vmem:[#allocation5 + $0x34] sm:$0xf0] }
 0x282   :  { %v1427_v44 = vmax.f32 %v1299_v58, 0.0  ;;  %v1428_v12 = vmax.f32 %v1300_v24, 0.0  ;;  %1923 = vmatmul.bf16.gmra.mxu2 %v5345_v11  ;;  %2012 = vmatmul.bf16.gmra.mxu3 %v5347_v52  ;;  %v3989_v58 = vor.u32 %v4236_v34, %v3986_v23  ;;  %v6263_v52 = vld [vmem:[#allocation86_spill] sm:$0xff]  ;;  %v6266_v23 = vld [vmem:[#allocation85_spill] sm:$0xff] }
 0x283   :  { %2507 = vmatpush.bf16.msrb.mxu2 %v3925_v0 }
 0x284   :  { %v5557_v42 = vpack.c.bf16 %v1427_v44, %v1423_v61  ;;  %v5559_v39 = vpack.c.bf16 %v1428_v12, %v1424_v4  ;;  %2596 = vmatpush.bf16.msrb.mxu3 %v3989_v58  ;;  %v1429_v44 = vmax.f32 %v1301_v54, 0.0  ;;  %v1430_v12 = vmax.f32 %v1302_v45, 0.0 }
 0x285   :  { %v1080_v41 = vpop.f32.mrf.mxu2  ;;  %v1169_v18 = vpop.f32.mrf.mxu3 }
 0x286   :  { %6261 = vst [vmem:[#allocation22_spill] sm:$0xff] %v5557_v42  ;;  %v904_v24 = vpop.f32.mrf.mxu0  ;;  %v993_v11 = vpop.f32.mrf.mxu1  ;;  %v1081_v34 = vadd.f32 %v1080_v41, %v6265_v46  ;;  %v1170_v3 = vadd.f32 %v1169_v18, %v6266_v23  ;;  %v6267_v18 = vld [vmem:[#allocation88_spill] sm:$0xff] }
 0x287   :  { %6262 = vst [vmem:[#allocation23_spill] sm:$0xff] %v5559_v39  ;;  %v905_v14 = vadd.f32 %v904_v24, %v6263_v52  ;;  %v994_v37 = vadd.f32 %v993_v11, %v6264_v28  ;;  %v3920_v39 = vld [vmem:[#allocation5 + $0x30] sm:$0xf]  ;;  %v4237_v24 = vld [vmem:[#allocation5 + $0xb4] sm:$0xf0] }
 0x288   :  { %v3921_v0 = vor.u32 %v4221_v19, %v3920_v39  ;;  %v3985_v52 = vor.u32 %v4237_v24, %v3984_v63  ;;  %v1303_v54 = vadd.f32 %v5088_v22, %v1081_v34  ;;  %v1304_v41 = vadd.f32 %v5090_v20, %v1170_v3  ;;  %v6269_v34 = vld [vmem:[#allocation90_spill] sm:$0xff]  ;;  %v6270_v3 = vld [vmem:[#allocation91_spill] sm:$0xff] }
 0x289   :  { %v1305_v61 = vadd.f32 %v5065_v27, %v905_v14  ;;  %v1306_v4 = vadd.f32 %v5068_v29, %v994_v37  ;;  %v6268_v37 = vld [vmem:[#allocation89_spill] sm:$0xff] }
 0x28a   :  { %2329 = vmatpush.bf16.msrb.mxu0 %v3921_v0  ;;  %2418 = vmatpush.bf16.msrb.mxu1 %v3985_v52 }
 0x28b   :  { %v1433_v42 = vmax.f32 %v1305_v61, 0.0  ;;  %v1434_v57 = vmax.f32 %v1306_v4, 0.0 }
 0x28d   :  { %v1082_v11 = vpop.f32.mrf.mxu2  ;;  %v1171_v58 = vpop.f32.mrf.mxu3  ;;  %v5569_v14 = vpack.c.bf16 %v1433_v42, %v1429_v44  ;;  %v5571_v28 = vpack.c.bf16 %v1434_v57, %v1430_v12  ;;  %v1431_v57 = vmax.f32 %v1303_v54, 0.0  ;;  %v1432_v42 = vmax.f32 %v1304_v41, 0.0 }
 0x28e   :  { %v1083_v45 = vadd.f32 %v1082_v11, %v6267_v18  ;;  %v1172_v61 = vadd.f32 %v1171_v58, %v6268_v37  ;;  %v907_v4 = vpop.f32.mrf.mxu0  ;;  %v996_v39 = vpop.f32.mrf.mxu1  ;;  %v6272_v37 = vld [vmem:[#allocation95_spill] sm:$0xff] }
 0x28f   :  { %v908_v23 = vadd.f32 %v907_v4, %v6269_v34  ;;  %v997_v19 = vadd.f32 %v996_v39, %v6270_v3 }
 0x290   :  { %v1307_v63 = vadd.f32 %v5088_v22, %v1083_v45  ;;  %v1308_v46 = vadd.f32 %v5090_v20, %v1172_v61  ;;  %v6271_v45 = vld [vmem:[#allocation94_spill] sm:$0xff]  ;;  %v1541_v61 = vld [vmem:[%s6090_s6] sm:$0x3] }
 0x291   :  { %1750 = vmatmul.bf16.gmra.mxu0 %v5375_v8  ;;  %1839 = vmatmul.bf16.gmra.mxu1 %v5377_v9  ;;  %v1309_v54 = vadd.f32 %v5065_v27, %v908_v23  ;;  %v1310_v41 = vadd.f32 %v5068_v29, %v997_v19 }
 0x292   :  { %v1435_v44 = vmax.f32 %v1307_v63, 0.0  ;;  %v1436_v12 = vmax.f32 %v1308_v46, 0.0  ;;  %1928 = vmatmul.bf16.gmra.mxu2 %v5375_v8  ;;  %2017 = vmatmul.bf16.gmra.mxu3 %v5377_v9  ;;  %v6273_v63 = vld [vmem:[#allocation92_spill] sm:$0xff] }
 0x293   :  { %v1438_v34 = vmax.f32 %v1310_v41, 0.0 }
 0x294   :  { %v5585_v0 = vpack.c.bf16 %v1435_v44, %v1431_v57  ;;  %v5587_v24 = vpack.c.bf16 %v1436_v12, %v1432_v42  ;;  %v6274_v57 = vld [vmem:[#allocation93_spill] sm:$0xff]  ;;  %v5600_v44 = vperm.slane %v1541_v61, 0  ;;  %v1437_v12 = vmax.f32 %v1309_v54, 0.0 }
 0x295   :  { %v1085_v52 = vpop.f32.mrf.mxu2  ;;  %v1174_v11 = vpop.f32.mrf.mxu3 }
 0x296   :  { %v909_v58 = vpop.f32.mrf.mxu0  ;;  %v998_v18 = vpop.f32.mrf.mxu1  ;;  %v1086_v46 = vadd.f32 %v1085_v52, %v6273_v63  ;;  %v1175_v42 = vadd.f32 %v1174_v11, %v6274_v57 }
 0x297   :  { %v910_v8 = vadd.f32 %v909_v58, %v6271_v45  ;;  %v999_v9 = vadd.f32 %v998_v18, %v6272_v37  ;;  %v6276_v37 = vld [vmem:[#allocation97_spill] sm:$0xff] }
 0x299   :  { %v1313_v4 = vadd.f32 %v5065_v27, %v910_v8  ;;  %v1314_v39 = vadd.f32 %v5068_v29, %v999_v9  ;;  %v1311_v27 = vadd.f32 %v5088_v22, %v1086_v46  ;;  %v1312_v29 = vadd.f32 %v5090_v20, %v1175_v42  ;;  %v6275_v8 = vld [vmem:[#allocation96_spill] sm:$0xff] }
 0x29a   :  { %v5615_v46 = vperm.slane %v1541_v61, 1 }
 0x29b   :  { %v1441_v23 = vmax.f32 %v1313_v4, 0.0  ;;  %v1442_v3 = vmax.f32 %v1314_v39, 0.0  ;;  %v1439_v57 = vmax.f32 %v1311_v27, 0.0  ;;  %v1440_v42 = vmax.f32 %v1312_v29, 0.0 }
 0x29d   :  { %v1087_v19 = vpop.f32.mrf.mxu2  ;;  %v1176_v58 = vpop.f32.mrf.mxu3  ;;  %v5602_v18 = vpack.c.bf16 %v1441_v23, %v1437_v12  ;;  %v5604_v45 = vpack.c.bf16 %v1442_v3, %v1438_v34  ;;  %v4218_v23 = vld [vmem:[#allocation5 + $0x24] sm:$0xf]  ;;  %v3914_v3 = vld [vmem:[#allocation5 + $0x28] sm:$0xf0] }
 0x29e   :  { %v1088_v52 = vadd.f32 %v1087_v19, %v6275_v8  ;;  %v1177_v11 = vadd.f32 %v1176_v58, %v6276_v37  ;;  %v1716_v9 = vpop.f32.mrf.mxu0  ;;  %v1805_v63 = vpop.f32.mrf.mxu1  ;;  %v4234_v19 = vld [vmem:[#allocation5 + $0xa4] sm:$0xf] }
 0x29f   :  { %v1717_v54 = vadd.f32 %v1716_v9, %v5600_v44 }
 0x2a0   :  { %v1315_v41 = vadd.f32 %v5088_v22, %v1088_v52  ;;  %v1316_v4 = vadd.f32 %v5090_v20, %v1177_v11  ;;  %v3917_v22 = vor.u32 %v4218_v23, %v3914_v3  ;;  %v3978_v20 = vld [vmem:[#allocation5 + $0xa8] sm:$0xf0] }
 0x2a1   :  { %v1806_v39 = vadd.f32 %v1805_v63, %v1717_v54  ;;  %1755 = vmatmul.bf16.gmra.mxu0 %v5401_v53  ;;  %1844 = vmatmul.bf16.gmra.mxu1 %v5403_v13  ;;  %v3981_v37 = vor.u32 %v4234_v19, %v3978_v20  ;;  %v3912_v63 = vld [vmem:[#allocation5 + $0x20] sm:$0xf]  ;;  %v4219_v54 = vld [vmem:[#allocation5 + $0x24] sm:$0xf0] }
 0x2a2   :  { %v1443_v12 = vmax.f32 %v1315_v41, 0.0  ;;  %v1444_v34 = vmax.f32 %v1316_v4, 0.0  ;;  %1933 = vmatmul.bf16.gmra.mxu2 %v5401_v53  ;;  %2022 = vmatmul.bf16.gmra.mxu3 %v5403_v13 }
 0x2a3   :  { %2508 = vmatpush.bf16.msrb.mxu2 %v3917_v22  ;;  %2597 = vmatpush.bf16.msrb.mxu3 %v3981_v37  ;;  %v2063_v41 = vmax.f32 %v1806_v39, 0.0 }
 0x2a4   :  { %v5619_v58 = vpack.c.bf16 %v1443_v12, %v1439_v57  ;;  %v5621_v8 = vpack.c.bf16 %v1444_v34, %v1440_v42  ;;  %v3913_v57 = vor.u32 %v4219_v54, %v3912_v63  ;;  %v3976_v42 = vld [vmem:[#allocation5 + $0xa0] sm:$0xf]  ;;  %v4235_v12 = vld [vmem:[#allocation5 + $0xa4] sm:$0xf0] }
 0x2a5   :  { %v1894_v52 = vpop.f32.mrf.mxu2  ;;  %v1983_v61 = vpop.f32.mrf.mxu3  ;;  %v3977_v34 = vor.u32 %v4235_v12, %v3976_v42 }
 0x2a6   :  { %v1895_v27 = vadd.f32 %v1894_v52, %v5615_v46  ;;  %v1718_v29 = vpop.f32.mrf.mxu0  ;;  %v1807_v11 = vpop.f32.mrf.mxu1  ;;  %2330 = vmatpush.bf16.msrb.mxu0 %v3913_v57 }
 0x2a7   :  { %v1719_v53 = vadd.f32 %v1718_v29, %v5600_v44  ;;  %2419 = vmatpush.bf16.msrb.mxu1 %v3977_v34 }
 0x2a8   :  { %v1984_v13 = vadd.f32 %v1983_v61, %v1895_v27 }
 0x2a9   :  { %v1808_v9 = vadd.f32 %v1807_v11, %v1719_v53 }
 0x2aa   :  { %v2064_v39 = vmax.f32 %v1984_v13, 0.0 }
 0x2ab   :  { %v2065_v4 = vmax.f32 %v1808_v9, 0.0 }
 0x2ad   :  { %v5625_v23 = vpack.c.bf16 %v2065_v4, %v2063_v41  ;;  %v1896_v3 = vpop.f32.mrf.mxu2  ;;  %v1985_v19 = vpop.f32.mrf.mxu3 }
 0x2ae   :  { %v1897_v22 = vadd.f32 %v1896_v3, %v5615_v46  ;;  %v1721_v20 = vpop.f32.mrf.mxu0  ;;  %v1810_v52 = vpop.f32.mrf.mxu1 }
 0x2af   :  { %v1722_v61 = vadd.f32 %v1721_v20, %v5600_v44 }
 0x2b0   :  { %v1986_v37 = vadd.f32 %v1985_v19, %v1897_v22 }
 0x2b1   :  { %v1811_v27 = vadd.f32 %v1810_v52, %v1722_v61  ;;  %1760 = vmatmul.bf16.gmra.mxu0 %v5431_v38  ;;  %1849 = vmatmul.bf16.gmra.mxu1 %v5433_v56 }
 0x2b2   :  { %v2066_v29 = vmax.f32 %v1986_v37, 0.0  ;;  %1938 = vmatmul.bf16.gmra.mxu2 %v5431_v38  ;;  %2027 = vmatmul.bf16.gmra.mxu3 %v5433_v56 }
 0x2b3   :  { %v2067_v12 = vmax.f32 %v1811_v27, 0.0  ;;  %v4216_v27 = vld [vmem:[#allocation5 + $0x14] sm:$0xf] }
 0x2b4   :  { %v5633_v11 = vpack.c.bf16 %v2066_v29, %v2064_v39  ;;  %v3906_v29 = vld [vmem:[#allocation5 + $0x18] sm:$0xf0] }
 0x2b5   :  { %v1899_v53 = vpop.f32.mrf.mxu2  ;;  %v1988_v9 = vpop.f32.mrf.mxu3 }
 0x2b6   :  { %v1900_v63 = vadd.f32 %v1899_v53, %v5615_v46  ;;  %v1723_v54 = vpop.f32.mrf.mxu0  ;;  %v1812_v41 = vpop.f32.mrf.mxu1  ;;  %v3909_v53 = vor.u32 %v4216_v27, %v3906_v29 }
 0x2b7   :  { %v1724_v4 = vadd.f32 %v1723_v54, %v5600_v44 }
 0x2b8   :  { %v1989_v57 = vadd.f32 %v1988_v9, %v1900_v63  ;;  %v4232_v9 = vld [vmem:[#allocation5 + $0x94] sm:$0xf]  ;;  %v3970_v63 = vld [vmem:[#allocation5 + $0x98] sm:$0xf0]  ;;  %2509 = vmatpush.bf16.msrb.mxu2 %v3909_v53 }
 0x2b9   :  { %v1813_v42 = vadd.f32 %v1812_v41, %v1724_v4 }
 0x2ba   :  { %v2068_v37 = vmax.f32 %v1989_v57, 0.0 }
 0x2bb   :  { %v2069_v34 = vmax.f32 %v1813_v42, 0.0  ;;  %v3973_v42 = vor.u32 %v4232_v9, %v3970_v63 }
 0x2bd   :  { %v1901_v13 = vpop.f32.mrf.mxu2  ;;  %v1990_v3 = vpop.f32.mrf.mxu3  ;;  %v5637_v19 = vpack.c.bf16 %v2069_v34, %v2067_v12  ;;  %2598 = vmatpush.bf16.msrb.mxu3 %v3973_v42 }
 0x2be   :  { %v1902_v38 = vadd.f32 %v1901_v13, %v5615_v46  ;;  %v1726_v56 = vpop.f32.mrf.mxu0  ;;  %v1815_v22 = vpop.f32.mrf.mxu1 }
 0x2bf   :  { %v1727_v20 = vadd.f32 %v1726_v56, %v5600_v44 }
 0x2c0   :  { %v1991_v52 = vadd.f32 %v1990_v3, %v1902_v38  ;;  %v3904_v3 = vld [vmem:[#allocation5 + $0x10] sm:$0xf]  ;;  %v4217_v38 = vld [vmem:[#allocation5 + $0x14] sm:$0xf0] }
 0x2c1   :  { %v1816_v61 = vadd.f32 %v1815_v22, %v1727_v20  ;;  %1765 = vmatmul.bf16.gmra.mxu0 %v5457_v36  ;;  %1854 = vmatmul.bf16.gmra.mxu1 %v5459_v40  ;;  %v3905_v20 = vor.u32 %v4217_v38, %v3904_v3 }
 0x2c2   :  { %v2070_v39 = vmax.f32 %v1991_v52, 0.0  ;;  %1943 = vmatmul.bf16.gmra.mxu2 %v5457_v36  ;;  %2032 = vmatmul.bf16.gmra.mxu3 %v5459_v40  ;;  %v3968_v52 = vld [vmem:[#allocation5 + $0x90] sm:$0xf] }
 0x2c3   :  { %v2071_v56 = vmax.f32 %v1816_v61, 0.0  ;;  %2331 = vmatpush.bf16.msrb.mxu0 %v3905_v20 }
 0x2c4   :  { %v5645_v54 = vpack.c.bf16 %v2070_v39, %v2068_v37  ;;  %v4233_v37 = vld [vmem:[#allocation5 + $0x94] sm:$0xf0] }
 0x2c5   :  { %v1904_v41 = vpop.f32.mrf.mxu2  ;;  %v1993_v4 = vpop.f32.mrf.mxu3  ;;  %v3969_v39 = vor.u32 %v4233_v37, %v3968_v52 }
 0x2c6   :  { %v1905_v12 = vadd.f32 %v1904_v41, %v5615_v46  ;;  %v1728_v34 = vpop.f32.mrf.mxu0  ;;  %v1817_v13 = vpop.f32.mrf.mxu1 }
 0x2c7   :  { %v1729_v57 = vadd.f32 %v1728_v34, %v5600_v44  ;;  %2420 = vmatpush.bf16.msrb.mxu1 %v3969_v39 }
 0x2c8   :  { %v1994_v36 = vadd.f32 %v1993_v4, %v1905_v12 }
 0x2c9   :  { %v1818_v40 = vadd.f32 %v1817_v13, %v1729_v57 }
 0x2ca   :  { %v2072_v61 = vmax.f32 %v1994_v36, 0.0 }
 0x2cb   :  { %v2073_v22 = vmax.f32 %v1818_v40, 0.0 }
 0x2cd   :  { %v1906_v27 = vpop.f32.mrf.mxu2  ;;  %v1995_v29 = vpop.f32.mrf.mxu3  ;;  %v5649_v9 = vpack.c.bf16 %v2073_v22, %v2071_v56 }
 0x2ce   :  { %v1907_v53 = vadd.f32 %v1906_v27, %v5615_v46  ;;  %v1731_v63 = vpop.f32.mrf.mxu0  ;;  %v1820_v41 = vpop.f32.mrf.mxu1 }
 0x2cf   :  { %v1732_v4 = vadd.f32 %v1731_v63, %v5600_v44 }
 0x2d0   :  { %v1996_v42 = vadd.f32 %v1995_v29, %v1907_v53 }
 0x2d1   :  { %v1821_v12 = vadd.f32 %v1820_v41, %v1732_v4  ;;  %1770 = vmatmul.bf16.gmra.mxu0 %v5487_v32  ;;  %1859 = vmatmul.bf16.gmra.mxu1 %v5489_v17 }
 0x2d2   :  { %v2074_v34 = vmax.f32 %v1996_v42, 0.0  ;;  %1948 = vmatmul.bf16.gmra.mxu2 %v5487_v32  ;;  %2037 = vmatmul.bf16.gmra.mxu3 %v5489_v17 }
 0x2d3   :  { %v2075_v37 = vmax.f32 %v1821_v12, 0.0  ;;  %v4214_v12 = vld [vmem:[#allocation5 + $0x4] sm:$0xf] }
 0x2d4   :  { %v5657_v13 = vpack.c.bf16 %v2074_v34, %v2072_v61  ;;  %v3898_v34 = vld [vmem:[#allocation5 + $0x8] sm:$0xf0] }
 0x2d5   :  { %v1909_v57 = vpop.f32.mrf.mxu2  ;;  %v1998_v40 = vpop.f32.mrf.mxu3 }
 0x2d6   :  { %v1910_v3 = vadd.f32 %v1909_v57, %v5615_v46  ;;  %v1733_v38 = vpop.f32.mrf.mxu0  ;;  %v1822_v56 = vpop.f32.mrf.mxu1  ;;  %v3901_v57 = vor.u32 %v4214_v12, %v3898_v34 }
 0x2d7   :  { %v1734_v22 = vadd.f32 %v1733_v38, %v5600_v44 }
 0x2d8   :  { %v1999_v20 = vadd.f32 %v1998_v40, %v1910_v3  ;;  %v4230_v40 = vld [vmem:[#allocation5 + $0x84] sm:$0xf]  ;;  %v3962_v3 = vld [vmem:[#allocation5 + $0x88] sm:$0xf0]  ;;  %2510 = vmatpush.bf16.msrb.mxu2 %v3901_v57 }
 0x2d9   :  { %v1823_v52 = vadd.f32 %v1822_v56, %v1734_v22 }
 0x2da   :  { %v2076_v42 = vmax.f32 %v1999_v20, 0.0 }
 0x2db   :  { %v2077_v39 = vmax.f32 %v1823_v52, 0.0  ;;  %v3965_v52 = vor.u32 %v4230_v40, %v3962_v3 }
 0x2dd   :  { %v1911_v36 = vpop.f32.mrf.mxu2  ;;  %v2000_v27 = vpop.f32.mrf.mxu3  ;;  %v5661_v29 = vpack.c.bf16 %v2077_v39, %v2075_v37  ;;  %2599 = vmatpush.bf16.msrb.mxu3 %v3965_v52 }
 0x2de   :  { %v1912_v32 = vadd.f32 %v1911_v36, %v5615_v46  ;;  %v1736_v17 = vpop.f32.mrf.mxu0  ;;  %v1825_v53 = vpop.f32.mrf.mxu1 }
 0x2df   :  { %v1737_v63 = vadd.f32 %v1736_v17, %v5600_v44 }
 0x2e0   :  { %v2001_v41 = vadd.f32 %v2000_v27, %v1912_v32  ;;  %v3896_v27 = vld [vmem:[#allocation5] sm:$0xf]  ;;  %v4215_v32 = vld [vmem:[#allocation5 + $0x4] sm:$0xf0] }
 0x2e1   :  { %v1826_v4 = vadd.f32 %v1825_v53, %v1737_v63  ;;  %1775 = vmatmul.bf16.gmra.mxu0 %v5513_v6  ;;  %1864 = vmatmul.bf16.gmra.mxu1 %v5515_v10  ;;  %v3897_v63 = vor.u32 %v4215_v32, %v3896_v27 }
 0x2e2   :  { %v2078_v61 = vmax.f32 %v2001_v41, 0.0  ;;  %1953 = vmatmul.bf16.gmra.mxu2 %v5513_v6  ;;  %2042 = vmatmul.bf16.gmra.mxu3 %v5515_v10  ;;  %v3960_v41 = vld [vmem:[#allocation5 + $0x80] sm:$0xf] }
 0x2e3   :  { %v2079_v17 = vmax.f32 %v1826_v4, 0.0  ;;  %2332 = vmatpush.bf16.msrb.mxu0 %v3897_v63 }
 0x2e4   :  { %v5669_v38 = vpack.c.bf16 %v2078_v61, %v2076_v42  ;;  %v4231_v42 = vld [vmem:[#allocation5 + $0x84] sm:$0xf0] }
 0x2e5   :  { %v1914_v56 = vpop.f32.mrf.mxu2  ;;  %v2003_v22 = vpop.f32.mrf.mxu3  ;;  %v3961_v61 = vor.u32 %v4231_v42, %v3960_v41 }
 0x2e6   :  { %v1915_v37 = vadd.f32 %v1914_v56, %v5615_v46  ;;  %v1738_v39 = vpop.f32.mrf.mxu0  ;;  %v1827_v36 = vpop.f32.mrf.mxu1 }
 0x2e7   :  { %v1739_v20 = vadd.f32 %v1738_v39, %v5600_v44  ;;  %2421 = vmatpush.bf16.msrb.mxu1 %v3961_v61 }
 0x2e8   :  { %v2004_v6 = vadd.f32 %v2003_v22, %v1915_v37 }
 0x2e9   :  { %v1828_v10 = vadd.f32 %v1827_v36, %v1739_v20 }
 0x2ea   :  { %v2080_v4 = vmax.f32 %v2004_v6, 0.0 }
 0x2eb   :  { %v2081_v53 = vmax.f32 %v1828_v10, 0.0 }
 0x2ed   :  { %v1916_v12 = vpop.f32.mrf.mxu2  ;;  %v2005_v34 = vpop.f32.mrf.mxu3  ;;  %v5673_v40 = vpack.c.bf16 %v2081_v53, %v2079_v17 }
 0x2ee   :  { %v1917_v57 = vadd.f32 %v1916_v12, %v5615_v46  ;;  %v1741_v3 = vpop.f32.mrf.mxu0  ;;  %v1830_v56 = vpop.f32.mrf.mxu1 }
 0x2ef   :  { %v1742_v22 = vadd.f32 %v1741_v3, %v5600_v44 }
 0x2f0   :  { %v2006_v52 = vadd.f32 %v2005_v34, %v1917_v57 }
 0x2f1   :  { %v1831_v37 = vadd.f32 %v1830_v56, %v1742_v22  ;;  %1780 = vmatmul.bf16.gmra.mxu0 %v5543_v62  ;;  %1869 = vmatmul.bf16.gmra.mxu1 %v5545_v7 }
 0x2f2   :  { %v2082_v39 = vmax.f32 %v2006_v52, 0.0  ;;  %1958 = vmatmul.bf16.gmra.mxu2 %v5543_v62  ;;  %2047 = vmatmul.bf16.gmra.mxu3 %v5545_v7 }
 0x2f3   :  { %v2083_v42 = vmax.f32 %v1831_v37, 0.0  ;;  %v4253_v37 = vld [vmem:[#allocation7 + $0x38] sm:$0xff] }
 0x2f4   :  { %v5681_v36 = vpack.c.bf16 %v2082_v39, %v2080_v4  ;;  %v4261_v39 = vld [vmem:[#allocation7 + $0x78] sm:$0xff]  ;;  %3243 = vmatpush.bf16.msra.mxu2 %v4253_v37 }
 0x2f5   :  { %v1919_v20 = vpop.f32.mrf.mxu2  ;;  %v2008_v10 = vpop.f32.mrf.mxu3  ;;  %3332 = vmatpush.bf16.msra.mxu3 %v4261_v39 }
 0x2f6   :  { %v1920_v27 = vadd.f32 %v1919_v20, %v5615_v46  ;;  %v1743_v32 = vpop.f32.mrf.mxu0  ;;  %v1832_v17 = vpop.f32.mrf.mxu1 }
 0x2f7   :  { %v1744_v53 = vadd.f32 %v1743_v32, %v5600_v44 }
 0x2f8   :  { %v2009_v63 = vadd.f32 %v2008_v10, %v1920_v27 }
 0x2f9   :  { %v1833_v41 = vadd.f32 %v1832_v17, %v1744_v53 }
 0x2fa   :  { %v2084_v52 = vmax.f32 %v2009_v63, 0.0 }
 0x2fb   :  { %v2085_v61 = vmax.f32 %v1833_v41, 0.0 }
 0x2fd   :  { %v1921_v6 = vpop.f32.mrf.mxu2  ;;  %v2010_v12 = vpop.f32.mrf.mxu3  ;;  %v5685_v34 = vpack.c.bf16 %v2085_v61, %v2083_v42  ;;  %v4269_v61 = vld [vmem:[#allocation8 + $0x38] sm:$0xff] }
 0x2fe   :  { %v1922_v62 = vadd.f32 %v1921_v6, %v5615_v46  ;;  %v1746_v7 = vpop.f32.mrf.mxu0  ;;  %v1835_v57 = vpop.f32.mrf.mxu1  ;;  %2969 = vmatpush.bf16.msra.mxu0 %v4269_v61 }
 0x2ff   :  { %v1747_v3 = vadd.f32 %v1746_v7, %v5600_v44 }
 0x300   :  { %v2011_v56 = vadd.f32 %v2010_v12, %v1922_v62 }
 0x301   :  { %v1836_v22 = vadd.f32 %v1835_v57, %v1747_v3  ;;  %1785 = vmatmul.bf16.gmra.mxu0 %v5569_v14  ;;  %1874 = vmatmul.bf16.gmra.mxu1 %v5571_v28 }
 0x302   :  { %v2086_v4 = vmax.f32 %v2011_v56, 0.0  ;;  %1963 = vmatmul.bf16.gmra.mxu2 %v5569_v14  ;;  %2052 = vmatmul.bf16.gmra.mxu3 %v5571_v28  ;;  %v4277_v14 = vld [vmem:[#allocation8 + $0x78] sm:$0xff] }
 0x303   :  { %v2087_v6 = vmax.f32 %v1836_v22, 0.0  ;;  %3058 = vmatpush.bf16.msra.mxu1 %v4277_v14 }
 0x304   :  { %v5693_v20 = vpack.c.bf16 %v2086_v4, %v2084_v52 }
 0x305   :  { %v1924_v10 = vpop.f32.mrf.mxu2  ;;  %v2013_v27 = vpop.f32.mrf.mxu3 }
 0x306   :  { %v1925_v32 = vadd.f32 %v1924_v10, %v5615_v46  ;;  %v1748_v17 = vpop.f32.mrf.mxu0  ;;  %v1837_v53 = vpop.f32.mrf.mxu1 }
 0x307   :  { %v1749_v41 = vadd.f32 %v1748_v17, %v5600_v44 }
 0x308   :  { %v2014_v63 = vadd.f32 %v2013_v27, %v1925_v32 }
 0x309   :  { %v1838_v42 = vadd.f32 %v1837_v53, %v1749_v41 }
 0x30a   :  { %v2088_v22 = vmax.f32 %v2014_v63, 0.0 }
 0x30b   :  { %v2089_v28 = vmax.f32 %v1838_v42, 0.0 }
 0x30d   :  { %v1926_v12 = vpop.f32.mrf.mxu2  ;;  %v2015_v62 = vpop.f32.mrf.mxu3  ;;  %v5697_v7 = vpack.c.bf16 %v2089_v28, %v2087_v6 }
 0x30e   :  { %v1927_v57 = vadd.f32 %v1926_v12, %v5615_v46  ;;  %v1751_v3 = vpop.f32.mrf.mxu0  ;;  %v1840_v56 = vpop.f32.mrf.mxu1 }
 0x30f   :  { %v1752_v52 = vadd.f32 %v1751_v3, %v5600_v44 }
 0x310   :  { %v2016_v4 = vadd.f32 %v2015_v62, %v1927_v57 }
 0x311   :  { %v1841_v37 = vadd.f32 %v1840_v56, %v1752_v52  ;;  %1790 = vmatmul.bf16.gmra.mxu0 %v5602_v18  ;;  %1879 = vmatmul.bf16.gmra.mxu1 %v5604_v45 }
 0x312   :  { %v2090_v39 = vmax.f32 %v2016_v4, 0.0  ;;  %1968 = vmatmul.bf16.gmra.mxu2 %v5602_v18  ;;  %2057 = vmatmul.bf16.gmra.mxu3 %v5604_v45 }
 0x313   :  { %v2091_v6 = vmax.f32 %v1841_v37, 0.0  ;;  %v4252_v37 = vld [vmem:[#allocation7 + $0x30] sm:$0xff] }
 0x314   :  { %v5705_v10 = vpack.c.bf16 %v2090_v39, %v2088_v22  ;;  %v4260_v39 = vld [vmem:[#allocation7 + $0x70] sm:$0xff]  ;;  %3244 = vmatpush.bf16.msra.mxu2 %v4252_v37 }
 0x315   :  { %v1929_v27 = vpop.f32.mrf.mxu2  ;;  %v2018_v32 = vpop.f32.mrf.mxu3  ;;  %3333 = vmatpush.bf16.msra.mxu3 %v4260_v39 }
 0x316   :  { %v1930_v17 = vadd.f32 %v1929_v27, %v5615_v46  ;;  %v1753_v53 = vpop.f32.mrf.mxu0  ;;  %v1842_v41 = vpop.f32.mrf.mxu1 }
 0x317   :  { %v1754_v42 = vadd.f32 %v1753_v53, %v5600_v44 }
 0x318   :  { %v2019_v61 = vadd.f32 %v2018_v32, %v1930_v17 }
 0x319   :  { %v1843_v14 = vadd.f32 %v1842_v41, %v1754_v42 }
 0x31a   :  { %v2092_v4 = vmax.f32 %v2019_v61, 0.0 }
 0x31b   :  { %v2093_v28 = vmax.f32 %v1843_v14, 0.0 }
 0x31d   :  { %v1931_v63 = vpop.f32.mrf.mxu2  ;;  %v2020_v12 = vpop.f32.mrf.mxu3  ;;  %v5709_v62 = vpack.c.bf16 %v2093_v28, %v2091_v6  ;;  %v4268_v28 = vld [vmem:[#allocation8 + $0x30] sm:$0xff] }
 0x31e   :  { %v1932_v18 = vadd.f32 %v1931_v63, %v5615_v46  ;;  %v1756_v45 = vpop.f32.mrf.mxu0  ;;  %v1845_v57 = vpop.f32.mrf.mxu1  ;;  %2970 = vmatpush.bf16.msra.mxu0 %v4268_v28 }
 0x31f   :  { %v1757_v3 = vadd.f32 %v1756_v45, %v5600_v44 }
 0x320   :  { %v2021_v56 = vadd.f32 %v2020_v12, %v1932_v18 }
 0x321   :  { %v1846_v52 = vadd.f32 %v1845_v57, %v1757_v3  ;;  %2333 = vmatmul.bf16.vlgmr.msrb.gmra.mxu0 %v5127_v16  ;;  %2422 = vmatmul.bf16.vlgmr.msrb.gmra.mxu1 %v5129_v49 }
 0x322   :  { %v2094_v22 = vmax.f32 %v2021_v56, 0.0  ;;  %2511 = vmatmul.bf16.vlgmr.msrb.gmra.mxu2 %v5127_v16  ;;  %2600 = vmatmul.bf16.vlgmr.msrb.gmra.mxu3 %v5129_v49  ;;  %v4276_v16 = vld [vmem:[#allocation8 + $0x70] sm:$0xff] }
 0x323   :  { %v2095_v63 = vmax.f32 %v1846_v52, 0.0  ;;  %3059 = vmatpush.bf16.msra.mxu1 %v4276_v16 }
 0x324   :  { %v5717_v27 = vpack.c.bf16 %v2094_v22, %v2092_v4 }
 0x325   :  { %v1934_v32 = vpop.f32.mrf.mxu2  ;;  %v2023_v17 = vpop.f32.mrf.mxu3 }
 0x326   :  { %v1935_v53 = vadd.f32 %v1934_v32, %v5615_v46  ;;  %v1758_v41 = vpop.f32.mrf.mxu0  ;;  %v1847_v42 = vpop.f32.mrf.mxu1 }
 0x327   :  { %v1759_v14 = vadd.f32 %v1758_v41, %v5600_v44 }
 0x328   :  { %v2024_v61 = vadd.f32 %v2023_v17, %v1935_v53 }
 0x329   :  { %v1848_v6 = vadd.f32 %v1847_v42, %v1759_v14 }
 0x32a   :  { %v2096_v52 = vmax.f32 %v2024_v61, 0.0 }
 0x32b   :  { %v2097_v49 = vmax.f32 %v1848_v6, 0.0 }
 0x32d   :  { %v1936_v12 = vpop.f32.mrf.mxu2  ;;  %v2025_v18 = vpop.f32.mrf.mxu3  ;;  %v5721_v45 = vpack.c.bf16 %v2097_v49, %v2095_v63 }
 0x32e   :  { %v1937_v57 = vadd.f32 %v1936_v12, %v5615_v46  ;;  %v1761_v3 = vpop.f32.mrf.mxu0  ;;  %v1850_v56 = vpop.f32.mrf.mxu1 }
 0x32f   :  { %v1762_v4 = vadd.f32 %v1761_v3, %v5600_v44 }
 0x330   :  { %v2026_v22 = vadd.f32 %v2025_v18, %v1937_v57 }
 0x331   :  { %v1851_v37 = vadd.f32 %v1850_v56, %v1762_v4  ;;  %2338 = vmatmul.bf16.gmra.mxu0 %v5170_v51  ;;  %2427 = vmatmul.bf16.gmra.mxu1 %v5172_v33 }
 0x332   :  { %v2098_v39 = vmax.f32 %v2026_v22, 0.0  ;;  %2516 = vmatmul.bf16.gmra.mxu2 %v5170_v51  ;;  %2605 = vmatmul.bf16.gmra.mxu3 %v5172_v33 }
 0x333   :  { %v2099_v63 = vmax.f32 %v1851_v37, 0.0  ;;  %v4251_v37 = vld [vmem:[#allocation7 + $0x28] sm:$0xff] }
 0x334   :  { %v5729_v32 = vpack.c.bf16 %v2098_v39, %v2096_v52  ;;  %v4259_v39 = vld [vmem:[#allocation7 + $0x68] sm:$0xff]  ;;  %3245 = vmatpush.bf16.msra.mxu2 %v4251_v37 }
 0x335   :  { %v1939_v17 = vpop.f32.mrf.mxu2  ;;  %v2028_v53 = vpop.f32.mrf.mxu3  ;;  %3334 = vmatpush.bf16.msra.mxu3 %v4259_v39 }
 0x336   :  { %v1940_v41 = vadd.f32 %v1939_v17, %v5615_v46  ;;  %v1763_v42 = vpop.f32.mrf.mxu0  ;;  %v1852_v14 = vpop.f32.mrf.mxu1 }
 0x337   :  { %v1764_v6 = vadd.f32 %v1763_v42, %v5600_v44 }
 0x338   :  { %v2029_v28 = vadd.f32 %v2028_v53, %v1940_v41 }
 0x339   :  { %v1853_v16 = vadd.f32 %v1852_v14, %v1764_v6 }
 0x33a   :  { %v2100_v22 = vmax.f32 %v2029_v28, 0.0 }
 0x33b   :  { %v2101_v49 = vmax.f32 %v1853_v16, 0.0 }
 0x33d   :  { %v1941_v61 = vpop.f32.mrf.mxu2  ;;  %v2030_v12 = vpop.f32.mrf.mxu3  ;;  %v5733_v18 = vpack.c.bf16 %v2101_v49, %v2099_v63  ;;  %v4267_v49 = vld [vmem:[#allocation8 + $0x28] sm:$0xff] }
 0x33e   :  { %v1942_v51 = vadd.f32 %v1941_v61, %v5615_v46  ;;  %v1766_v33 = vpop.f32.mrf.mxu0  ;;  %v1855_v57 = vpop.f32.mrf.mxu1  ;;  %2971 = vmatpush.bf16.msra.mxu0 %v4267_v49 }
 0x33f   :  { %v1767_v3 = vadd.f32 %v1766_v33, %v5600_v44 }
 0x340   :  { %v2031_v56 = vadd.f32 %v2030_v12, %v1942_v51 }
 0x341   :  { %v1856_v4 = vadd.f32 %v1855_v57, %v1767_v3  ;;  %2343 = vmatmul.bf16.gmra.mxu0 %v5213_v35  ;;  %2432 = vmatmul.bf16.gmra.mxu1 %v5215_v30 }
 0x342   :  { %v2102_v52 = vmax.f32 %v2031_v56, 0.0  ;;  %2521 = vmatmul.bf16.gmra.mxu2 %v5213_v35  ;;  %2610 = vmatmul.bf16.gmra.mxu3 %v5215_v30  ;;  %v4275_v35 = vld [vmem:[#allocation8 + $0x68] sm:$0xff] }
 0x343   :  { %v2103_v61 = vmax.f32 %v1856_v4, 0.0  ;;  %3060 = vmatpush.bf16.msra.mxu1 %v4275_v35 }
 0x344   :  { %v5741_v17 = vpack.c.bf16 %v2102_v52, %v2100_v22 }
 0x345   :  { %v1944_v53 = vpop.f32.mrf.mxu2  ;;  %v2033_v41 = vpop.f32.mrf.mxu3 }
 0x346   :  { %v1945_v42 = vadd.f32 %v1944_v53, %v5615_v46  ;;  %v1768_v14 = vpop.f32.mrf.mxu0  ;;  %v1857_v6 = vpop.f32.mrf.mxu1 }
 0x347   :  { %v1769_v16 = vadd.f32 %v1768_v14, %v5600_v44 }
 0x348   :  { %v2034_v28 = vadd.f32 %v2033_v41, %v1945_v42 }
 0x349   :  { %v1858_v63 = vadd.f32 %v1857_v6, %v1769_v16 }
 0x34a   :  { %v2104_v4 = vmax.f32 %v2034_v28, 0.0 }
 0x34b   :  { %v2105_v30 = vmax.f32 %v1858_v63, 0.0 }
 0x34d   :  { %v1946_v12 = vpop.f32.mrf.mxu2  ;;  %v2035_v51 = vpop.f32.mrf.mxu3  ;;  %v5745_v33 = vpack.c.bf16 %v2105_v30, %v2103_v61 }
 0x34e   :  { %v1947_v57 = vadd.f32 %v1946_v12, %v5615_v46  ;;  %v1771_v3 = vpop.f32.mrf.mxu0  ;;  %v1860_v56 = vpop.f32.mrf.mxu1 }
 0x34f   :  { %v1772_v22 = vadd.f32 %v1771_v3, %v5600_v44 }
 0x350   :  { %v2036_v52 = vadd.f32 %v2035_v51, %v1947_v57 }
 0x351   :  { %v1861_v37 = vadd.f32 %v1860_v56, %v1772_v22  ;;  %2348 = vmatmul.bf16.gmra.mxu0 %v5256_v5  ;;  %2437 = vmatmul.bf16.gmra.mxu1 %v5258_v55 }
 0x352   :  { %v2106_v39 = vmax.f32 %v2036_v52, 0.0  ;;  %2526 = vmatmul.bf16.gmra.mxu2 %v5256_v5  ;;  %2615 = vmatmul.bf16.gmra.mxu3 %v5258_v55 }
 0x353   :  { %v2107_v61 = vmax.f32 %v1861_v37, 0.0  ;;  %v4250_v37 = vld [vmem:[#allocation7 + $0x20] sm:$0xff] }
 0x354   :  { %v5753_v53 = vpack.c.bf16 %v2106_v39, %v2104_v4  ;;  %v4258_v39 = vld [vmem:[#allocation7 + $0x60] sm:$0xff]  ;;  %3246 = vmatpush.bf16.msra.mxu2 %v4250_v37 }
 0x355   :  { %v1949_v41 = vpop.f32.mrf.mxu2  ;;  %v2038_v42 = vpop.f32.mrf.mxu3  ;;  %3335 = vmatpush.bf16.msra.mxu3 %v4258_v39 }
 0x356   :  { %v1950_v14 = vadd.f32 %v1949_v41, %v5615_v46  ;;  %v1773_v6 = vpop.f32.mrf.mxu0  ;;  %v1862_v16 = vpop.f32.mrf.mxu1 }
 0x357   :  { %v1774_v63 = vadd.f32 %v1773_v6, %v5600_v44 }
 0x358   :  { %v2039_v49 = vadd.f32 %v2038_v42, %v1950_v14 }
 0x359   :  { %v1863_v35 = vadd.f32 %v1862_v16, %v1774_v63 }
 0x35a   :  { %v2108_v52 = vmax.f32 %v2039_v49, 0.0 }
 0x35b   :  { %v2109_v30 = vmax.f32 %v1863_v35, 0.0 }
 0x35d   :  { %v1951_v28 = vpop.f32.mrf.mxu2  ;;  %v2040_v12 = vpop.f32.mrf.mxu3  ;;  %v5757_v51 = vpack.c.bf16 %v2109_v30, %v2107_v61  ;;  %v4266_v30 = vld [vmem:[#allocation8 + $0x20] sm:$0xff] }
 0x35e   :  { %v1952_v5 = vadd.f32 %v1951_v28, %v5615_v46  ;;  %v1776_v55 = vpop.f32.mrf.mxu0  ;;  %v1865_v57 = vpop.f32.mrf.mxu1  ;;  %2972 = vmatpush.bf16.msra.mxu0 %v4266_v30 }
 0x35f   :  { %v1777_v3 = vadd.f32 %v1776_v55, %v5600_v44 }
 0x360   :  { %v2041_v56 = vadd.f32 %v2040_v12, %v1952_v5 }
 0x361   :  { %v1866_v22 = vadd.f32 %v1865_v57, %v1777_v3  ;;  %2353 = vmatmul.bf16.gmra.mxu0 %v5299_v59  ;;  %2442 = vmatmul.bf16.gmra.mxu1 %v5301_v60 }
 0x362   :  { %v2110_v4 = vmax.f32 %v2041_v56, 0.0  ;;  %2531 = vmatmul.bf16.gmra.mxu2 %v5299_v59  ;;  %2620 = vmatmul.bf16.gmra.mxu3 %v5301_v60  ;;  %v4274_v59 = vld [vmem:[#allocation8 + $0x60] sm:$0xff] }
 0x363   :  { %v2111_v28 = vmax.f32 %v1866_v22, 0.0  ;;  %3061 = vmatpush.bf16.msra.mxu1 %v4274_v59 }
 0x364   :  { %v5765_v41 = vpack.c.bf16 %v2110_v4, %v2108_v52 }
 0x365   :  { %v1954_v42 = vpop.f32.mrf.mxu2  ;;  %v2043_v14 = vpop.f32.mrf.mxu3 }
 0x366   :  { %v1955_v6 = vadd.f32 %v1954_v42, %v5615_v46  ;;  %v1778_v16 = vpop.f32.mrf.mxu0  ;;  %v1867_v63 = vpop.f32.mrf.mxu1 }
 0x367   :  { %v1779_v35 = vadd.f32 %v1778_v16, %v5600_v44 }
 0x368   :  { %v2044_v49 = vadd.f32 %v2043_v14, %v1955_v6 }
 0x369   :  { %v1868_v61 = vadd.f32 %v1867_v63, %v1779_v35 }
 0x36a   :  { %v2112_v22 = vmax.f32 %v2044_v49, 0.0 }
 0x36b   :  { %v2113_v60 = vmax.f32 %v1868_v61, 0.0 }
 0x36d   :  { %v1956_v12 = vpop.f32.mrf.mxu2  ;;  %v2045_v5 = vpop.f32.mrf.mxu3  ;;  %v5769_v55 = vpack.c.bf16 %v2113_v60, %v2111_v28 }
 0x36e   :  { %v1957_v57 = vadd.f32 %v1956_v12, %v5615_v46  ;;  %v1781_v3 = vpop.f32.mrf.mxu0  ;;  %v1870_v56 = vpop.f32.mrf.mxu1 }
 0x36f   :  { %v1782_v52 = vadd.f32 %v1781_v3, %v5600_v44 }
 0x370   :  { %v2046_v4 = vadd.f32 %v2045_v5, %v1957_v57 }
 0x371   :  { %v1871_v37 = vadd.f32 %v1870_v56, %v1782_v52  ;;  %2358 = vmatmul.bf16.gmra.mxu0 %v5330_v50  ;;  %2447 = vmatmul.bf16.gmra.mxu1 %v5332_v21 }
 0x372   :  { %v2114_v39 = vmax.f32 %v2046_v4, 0.0  ;;  %2536 = vmatmul.bf16.gmra.mxu2 %v5330_v50  ;;  %2625 = vmatmul.bf16.gmra.mxu3 %v5332_v21 }
 0x373   :  { %v2115_v28 = vmax.f32 %v1871_v37, 0.0  ;;  %v4249_v37 = vld [vmem:[#allocation7 + $0x18] sm:$0xff] }
 0x374   :  { %v5777_v42 = vpack.c.bf16 %v2114_v39, %v2112_v22  ;;  %v4257_v39 = vld [vmem:[#allocation7 + $0x58] sm:$0xff]  ;;  %3247 = vmatpush.bf16.msra.mxu2 %v4249_v37 }
 0x375   :  { %v1959_v14 = vpop.f32.mrf.mxu2  ;;  %v2048_v6 = vpop.f32.mrf.mxu3  ;;  %3336 = vmatpush.bf16.msra.mxu3 %v4257_v39 }
 0x376   :  { %v1960_v16 = vadd.f32 %v1959_v14, %v5615_v46  ;;  %v1783_v63 = vpop.f32.mrf.mxu0  ;;  %v1872_v35 = vpop.f32.mrf.mxu1 }
 0x377   :  { %v1784_v61 = vadd.f32 %v1783_v63, %v5600_v44 }
 0x378   :  { %v2049_v30 = vadd.f32 %v2048_v6, %v1960_v16 }
 0x379   :  { %v1873_v59 = vadd.f32 %v1872_v35, %v1784_v61 }
 0x37a   :  { %v2116_v4 = vmax.f32 %v2049_v30, 0.0 }
 0x37b   :  { %v2117_v60 = vmax.f32 %v1873_v59, 0.0 }
 0x37d   :  { %v1961_v49 = vpop.f32.mrf.mxu2  ;;  %v2050_v12 = vpop.f32.mrf.mxu3  ;;  %v5781_v5 = vpack.c.bf16 %v2117_v60, %v2115_v28  ;;  %v4265_v60 = vld [vmem:[#allocation8 + $0x18] sm:$0xff] }
 0x37e   :  { %v1962_v50 = vadd.f32 %v1961_v49, %v5615_v46  ;;  %v1786_v21 = vpop.f32.mrf.mxu0  ;;  %v1875_v57 = vpop.f32.mrf.mxu1  ;;  %2973 = vmatpush.bf16.msra.mxu0 %v4265_v60 }
 0x37f   :  { %v1787_v3 = vadd.f32 %v1786_v21, %v5600_v44 }
 0x380   :  { %v2051_v56 = vadd.f32 %v2050_v12, %v1962_v50 }
 0x381   :  { %v1876_v52 = vadd.f32 %v1875_v57, %v1787_v3  ;;  %2363 = vmatmul.bf16.gmra.mxu0 %v5361_v15  ;;  %2452 = vmatmul.bf16.gmra.mxu1 %v5363_v43 }
 0x382   :  { %v2118_v22 = vmax.f32 %v2051_v56, 0.0  ;;  %2541 = vmatmul.bf16.gmra.mxu2 %v5361_v15  ;;  %2630 = vmatmul.bf16.gmra.mxu3 %v5363_v43  ;;  %v4273_v15 = vld [vmem:[#allocation8 + $0x58] sm:$0xff] }
 0x383   :  { %v2119_v49 = vmax.f32 %v1876_v52, 0.0  ;;  %3062 = vmatpush.bf16.msra.mxu1 %v4273_v15 }
 0x384   :  { %v5789_v14 = vpack.c.bf16 %v2118_v22, %v2116_v4 }
 0x385   :  { %v1964_v6 = vpop.f32.mrf.mxu2  ;;  %v2053_v16 = vpop.f32.mrf.mxu3 }
 0x386   :  { %v1965_v63 = vadd.f32 %v1964_v6, %v5615_v46  ;;  %v1788_v35 = vpop.f32.mrf.mxu0  ;;  %v1877_v61 = vpop.f32.mrf.mxu1 }
 0x387   :  { %v1789_v59 = vadd.f32 %v1788_v35, %v5600_v44 }
 0x388   :  { %v2054_v30 = vadd.f32 %v2053_v16, %v1965_v63 }
 0x389   :  { %v1878_v28 = vadd.f32 %v1877_v61, %v1789_v59 }
 0x38a   :  { %v2120_v52 = vmax.f32 %v2054_v30, 0.0  ;;  %v2159_v30 = vld [vmem:[%s6092_s8] sm:$0x3] }
 0x38b   :  { %v2121_v43 = vmax.f32 %v1878_v28, 0.0 }
 0x38d   :  { %v1966_v12 = vpop.f32.mrf.mxu2  ;;  %v2055_v50 = vpop.f32.mrf.mxu3  ;;  %v5793_v21 = vpack.c.bf16 %v2121_v43, %v2119_v49  ;;  %v5808_v43 = vperm.slane %v2159_v30, 0 }
 0x38e   :  { %v1967_v57 = vadd.f32 %v1966_v12, %v5615_v46  ;;  %v1791_v3 = vpop.f32.mrf.mxu0  ;;  %v1880_v56 = vpop.f32.mrf.mxu1 }
 0x38f   :  { %v1792_v4 = vadd.f32 %v1791_v3, %v5600_v44 }
 0x390   :  { %v2056_v22 = vadd.f32 %v2055_v50, %v1967_v57 }
 0x391   :  { %v1881_v37 = vadd.f32 %v1880_v56, %v1792_v4  ;;  %2368 = vmatmul.bf16.gmra.mxu0 %v5389_v47  ;;  %2457 = vmatmul.bf16.gmra.mxu1 %v5391_v48 }
 0x392   :  { %v2122_v39 = vmax.f32 %v2056_v22, 0.0  ;;  %2546 = vmatmul.bf16.gmra.mxu2 %v5389_v47  ;;  %2635 = vmatmul.bf16.gmra.mxu3 %v5391_v48 }
 0x393   :  { %v2123_v49 = vmax.f32 %v1881_v37, 0.0 }
 0x394   :  { %v5801_v6 = vpack.c.bf16 %v2122_v39, %v2120_v52  ;;  %v5818_v39 = vperm.slane %v2159_v30, 1 }
 0x395   :  { %v1969_v16 = vpop.f32.mrf.mxu2  ;;  %v2058_v63 = vpop.f32.mrf.mxu3 }
 0x396   :  { %6277 = vst [vmem:[#allocation20_spill] sm:$0xff] %v5801_v6  ;;  %v1970_v35 = vadd.f32 %v1969_v16, %v5615_v46  ;;  %v1793_v61 = vpop.f32.mrf.mxu0  ;;  %v1882_v59 = vpop.f32.mrf.mxu1  ;;  %v4248_v16 = vld [vmem:[#allocation7 + $0x10] sm:$0xff] }
 0x397   :  { %v1794_v28 = vadd.f32 %v1793_v61, %v5600_v44  ;;  %3248 = vmatpush.bf16.msra.mxu2 %v4248_v16 }
 0x398   :  { %v2059_v60 = vadd.f32 %v2058_v63, %v1970_v35 }
 0x399   :  { %v1883_v15 = vadd.f32 %v1882_v59, %v1794_v28 }
 0x39a   :  { %v2124_v37 = vmax.f32 %v2059_v60, 0.0 }
 0x39b   :  { %v2125_v47 = vmax.f32 %v1883_v15, 0.0 }
 0x39d   :  { %v1971_v48 = vpop.f32.mrf.mxu2  ;;  %v2060_v12 = vpop.f32.mrf.mxu3  ;;  %v5810_v50 = vpack.c.bf16 %v2125_v47, %v2123_v49  ;;  %v4264_v47 = vld [vmem:[#allocation8 + $0x10] sm:$0xff] }
 0x39e   :  { %v1972_v57 = vadd.f32 %v1971_v48, %v5615_v46  ;;  %v2334_v3 = vpop.f32.mrf.mxu0  ;;  %v2423_v56 = vpop.f32.mrf.mxu1  ;;  %v4256_v46 = vld [vmem:[#allocation7 + $0x50] sm:$0xff]  ;;  %2974 = vmatpush.bf16.msra.mxu0 %v4264_v47 }
 0x39f   :  { %6278 = vst [vmem:[#allocation21_spill] sm:$0xff] %v5810_v50  ;;  %v2335_v44 = vadd.f32 %v2334_v3, %v5808_v43  ;;  %3337 = vmatpush.bf16.msra.mxu3 %v4256_v46 }
 0x3a0   :  { %v2061_v4 = vadd.f32 %v2060_v12, %v1972_v57 }
 0x3a1   :  { %v2424_v22 = vadd.f32 %v2423_v56, %v2335_v44  ;;  %2373 = vmatmul.bf16.gmra.mxu0 %v5417_v1  ;;  %2462 = vmatmul.bf16.gmra.mxu1 %v5419_v2 }
 0x3a2   :  { %v2126_v52 = vmax.f32 %v2061_v4, 0.0  ;;  %2551 = vmatmul.bf16.gmra.mxu2 %v5417_v1  ;;  %2640 = vmatmul.bf16.gmra.mxu3 %v5419_v2  ;;  %v4272_v2 = vld [vmem:[#allocation8 + $0x50] sm:$0xff] }
 0x3a3   :  { %v2681_v30 = vmax.f32 %v2424_v22, 0.0  ;;  %3063 = vmatpush.bf16.msra.mxu1 %v4272_v2 }
 0x3a4   :  { %v5820_v63 = vpack.c.bf16 %v2126_v52, %v2124_v37 }
 0x3a5   :  { %v2512_v35 = vpop.f32.mrf.mxu2  ;;  %v2601_v61 = vpop.f32.mrf.mxu3 }
 0x3a6   :  { %6279 = vst [vmem:[#allocation24_spill] sm:$0xff] %v5820_v63  ;;  %v2513_v59 = vadd.f32 %v2512_v35, %v5818_v39  ;;  %v2336_v28 = vpop.f32.mrf.mxu0  ;;  %v2425_v15 = vpop.f32.mrf.mxu1  ;;  %v6284_v63 = vld [vmem:[#allocation19_spill] sm:$0xff] }
 0x3a7   :  { %v2337_v60 = vadd.f32 %v2336_v28, %v5808_v43 }
 0x3a8   :  { %v2602_v49 = vadd.f32 %v2601_v61, %v2513_v59 }
 0x3a9   :  { %v2426_v1 = vadd.f32 %v2425_v15, %v2337_v60 }
 0x3aa   :  { %v2682_v22 = vmax.f32 %v2602_v49, 0.0 }
 0x3ab   :  { %v2683_v48 = vmax.f32 %v2426_v1, 0.0 }
 0x3ad   :  { %v5824_v12 = vpack.c.bf16 %v2683_v48, %v2681_v30  ;;  %v2514_v57 = vpop.f32.mrf.mxu2  ;;  %v2603_v3 = vpop.f32.mrf.mxu3 }
 0x3ae   :  { %v2515_v56 = vadd.f32 %v2514_v57, %v5818_v39  ;;  %v2339_v44 = vpop.f32.mrf.mxu0  ;;  %v2428_v4 = vpop.f32.mrf.mxu1 }
 0x3af   :  { %v2340_v37 = vadd.f32 %v2339_v44, %v5808_v43 }
 0x3b0   :  { %v2604_v52 = vadd.f32 %v2603_v3, %v2515_v56 }
 0x3b1   :  { %v2429_v16 = vadd.f32 %v2428_v4, %v2340_v37  ;;  %2378 = vmatmul.bf16.gmra.mxu0 %v5445_v31  ;;  %2467 = vmatmul.bf16.gmra.mxu1 %v5447_v26 }
 0x3b2   :  { %v2684_v46 = vmax.f32 %v2604_v52, 0.0  ;;  %2556 = vmatmul.bf16.gmra.mxu2 %v5445_v31  ;;  %2645 = vmatmul.bf16.gmra.mxu3 %v5447_v26  ;;  %v6280_v52 = vld [vmem:[#allocation15_spill] sm:$0xff] }
 0x3b3   :  { %v2685_v30 = vmax.f32 %v2429_v16, 0.0  ;;  %v4247_v16 = vld [vmem:[#allocation7 + $0x8] sm:$0xff] }
 0x3b4   :  { %v5832_v35 = vpack.c.bf16 %v2684_v46, %v2682_v22  ;;  %3249 = vmatpush.bf16.msra.mxu2 %v4247_v16 }
 0x3b5   :  { %v2517_v61 = vpop.f32.mrf.mxu2  ;;  %v2606_v59 = vpop.f32.mrf.mxu3 }
 0x3b6   :  { %v2518_v28 = vadd.f32 %v2517_v61, %v5818_v39  ;;  %v2341_v15 = vpop.f32.mrf.mxu0  ;;  %v2430_v60 = vpop.f32.mrf.mxu1  ;;  %v4255_v61 = vld [vmem:[#allocation7 + $0x48] sm:$0xff] }
 0x3b7   :  { %v2342_v1 = vadd.f32 %v2341_v15, %v5808_v43  ;;  %3338 = vmatpush.bf16.msra.mxu3 %v4255_v61 }
 0x3b8   :  { %v2607_v47 = vadd.f32 %v2606_v59, %v2518_v28 }
 0x3b9   :  { %v2431_v2 = vadd.f32 %v2430_v60, %v2342_v1 }
 0x3ba   :  { %v2686_v22 = vmax.f32 %v2607_v47, 0.0 }
 0x3bb   :  { %v2687_v48 = vmax.f32 %v2431_v2, 0.0 }
 0x3bd   :  { %v2519_v49 = vpop.f32.mrf.mxu2  ;;  %v2608_v57 = vpop.f32.mrf.mxu3  ;;  %v5836_v3 = vpack.c.bf16 %v2687_v48, %v2685_v30 }
 0x3be   :  { %v2520_v31 = vadd.f32 %v2519_v49, %v5818_v39  ;;  %v2344_v26 = vpop.f32.mrf.mxu0  ;;  %v2433_v56 = vpop.f32.mrf.mxu1  ;;  %v4263_v49 = vld [vmem:[#allocation8 + $0x8] sm:$0xff] }
 0x3bf   :  { %v2345_v44 = vadd.f32 %v2344_v26, %v5808_v43  ;;  %2975 = vmatpush.bf16.msra.mxu0 %v4263_v49 }
 0x3c0   :  { %v2609_v4 = vadd.f32 %v2608_v57, %v2520_v31 }
 0x3c1   :  { %v2434_v37 = vadd.f32 %v2433_v56, %v2345_v44  ;;  %2383 = vmatmul.bf16.gmra.mxu0 %v5473_v25  ;;  %2472 = vmatmul.bf16.gmra.mxu1 %v6280_v52 }
 0x3c2   :  { %v2688_v46 = vmax.f32 %v2609_v4, 0.0  ;;  %2561 = vmatmul.bf16.gmra.mxu2 %v5473_v25  ;;  %2650 = vmatmul.bf16.gmra.mxu3 %v6280_v52  ;;  %v4271_v25 = vld [vmem:[#allocation8 + $0x48] sm:$0xff] }
 0x3c3   :  { %v2689_v57 = vmax.f32 %v2434_v37, 0.0  ;;  %3064 = vmatpush.bf16.msra.mxu1 %v4271_v25 }
 0x3c4   :  { %v5844_v59 = vpack.c.bf16 %v2688_v46, %v2686_v22 }
 0x3c5   :  { %v2522_v28 = vpop.f32.mrf.mxu2  ;;  %v2611_v15 = vpop.f32.mrf.mxu3 }
 0x3c6   :  { %v2523_v60 = vadd.f32 %v2522_v28, %v5818_v39  ;;  %v2346_v1 = vpop.f32.mrf.mxu0  ;;  %v2435_v2 = vpop.f32.mrf.mxu1  ;;  %v6281_v28 = vld [vmem:[#allocation16_spill] sm:$0xff] }
 0x3c7   :  { %v2347_v30 = vadd.f32 %v2346_v1, %v5808_v43 }
 0x3c8   :  { %v2612_v47 = vadd.f32 %v2611_v15, %v2523_v60  ;;  %v6282_v15 = vld [vmem:[#allocation17_spill] sm:$0xff] }
 0x3c9   :  { %v2436_v48 = vadd.f32 %v2435_v2, %v2347_v30 }
 0x3ca   :  { %v2690_v37 = vmax.f32 %v2612_v47, 0.0 }
 0x3cb   :  { %v2691_v31 = vmax.f32 %v2436_v48, 0.0 }
 0x3cd   :  { %v2524_v26 = vpop.f32.mrf.mxu2  ;;  %v2613_v56 = vpop.f32.mrf.mxu3  ;;  %v5848_v44 = vpack.c.bf16 %v2691_v31, %v2689_v57 }
 0x3ce   :  { %v2525_v4 = vadd.f32 %v2524_v26, %v5818_v39  ;;  %v2349_v52 = vpop.f32.mrf.mxu0  ;;  %v2438_v22 = vpop.f32.mrf.mxu1 }
 0x3cf   :  { %v2350_v46 = vadd.f32 %v2349_v52, %v5808_v43 }
 0x3d0   :  { %v2614_v16 = vadd.f32 %v2613_v56, %v2525_v4 }
 0x3d1   :  { %v2439_v61 = vadd.f32 %v2438_v22, %v2350_v46  ;;  %2388 = vmatmul.bf16.gmra.mxu0 %v6281_v28  ;;  %2477 = vmatmul.bf16.gmra.mxu1 %v6282_v15 }
 0x3d2   :  { %v2692_v60 = vmax.f32 %v2614_v16, 0.0  ;;  %2566 = vmatmul.bf16.gmra.mxu2 %v6281_v28  ;;  %2655 = vmatmul.bf16.gmra.mxu3 %v6282_v15 }
 0x3d3   :  { %v2693_v56 = vmax.f32 %v2439_v61, 0.0  ;;  %v4246_v61 = vld [vmem:[#allocation7] sm:$0xff] }
 0x3d4   :  { %v5856_v1 = vpack.c.bf16 %v2692_v60, %v2690_v37  ;;  %3250 = vmatpush.bf16.msra.mxu2 %v4246_v61 }
 0x3d5   :  { %v2527_v2 = vpop.f32.mrf.mxu2  ;;  %v2616_v30 = vpop.f32.mrf.mxu3 }
 0x3d6   :  { %v2528_v48 = vadd.f32 %v2527_v2, %v5818_v39  ;;  %v2351_v49 = vpop.f32.mrf.mxu0  ;;  %v2440_v25 = vpop.f32.mrf.mxu1  ;;  %v6283_v2 = vld [vmem:[#allocation18_spill] sm:$0xff] }
 0x3d7   :  { %v2352_v57 = vadd.f32 %v2351_v49, %v5808_v43  ;;  %v4254_v49 = vld [vmem:[#allocation7 + $0x40] sm:$0xff] }
 0x3d8   :  { %v2617_v31 = vadd.f32 %v2616_v30, %v2528_v48  ;;  %3339 = vmatpush.bf16.msra.mxu3 %v4254_v49 }
 0x3d9   :  { %v2441_v26 = vadd.f32 %v2440_v25, %v2352_v57 }
 0x3da   :  { %v2694_v30 = vmax.f32 %v2617_v31, 0.0 }
 0x3db   :  { %v2695_v4 = vmax.f32 %v2441_v26, 0.0 }
 0x3dd   :  { %v2529_v47 = vpop.f32.mrf.mxu2  ;;  %v2618_v52 = vpop.f32.mrf.mxu3  ;;  %v5860_v22 = vpack.c.bf16 %v2695_v4, %v2693_v56 }
 0x3de   :  { %v2530_v46 = vadd.f32 %v2529_v47, %v5818_v39  ;;  %v2354_v16 = vpop.f32.mrf.mxu0  ;;  %v2443_v28 = vpop.f32.mrf.mxu1 }
 0x3df   :  { %v2355_v15 = vadd.f32 %v2354_v16, %v5808_v43  ;;  %v4262_v16 = vld [vmem:[#allocation8] sm:$0xff] }
 0x3e0   :  { %v2619_v37 = vadd.f32 %v2618_v52, %v2530_v46  ;;  %2976 = vmatpush.bf16.msra.mxu0 %v4262_v16 }
 0x3e1   :  { %v2444_v60 = vadd.f32 %v2443_v28, %v2355_v15  ;;  %2393 = vmatmul.bf16.gmra.mxu0 %v6283_v2  ;;  %2482 = vmatmul.bf16.gmra.mxu1 %v6284_v63  ;;  %v4270_v28 = vld [vmem:[#allocation8 + $0x40] sm:$0xff] }
 0x3e2   :  { %v2696_v48 = vmax.f32 %v2619_v37, 0.0  ;;  %2571 = vmatmul.bf16.gmra.mxu2 %v6283_v2  ;;  %2660 = vmatmul.bf16.gmra.mxu3 %v6284_v63 }
 0x3e3   :  { %v2697_v15 = vmax.f32 %v2444_v60, 0.0  ;;  %3065 = vmatpush.bf16.msra.mxu1 %v4270_v28 }
 0x3e4   :  { %v5868_v25 = vpack.c.bf16 %v2696_v48, %v2694_v30 }
 0x3e5   :  { %v2532_v57 = vpop.f32.mrf.mxu2  ;;  %v2621_v26 = vpop.f32.mrf.mxu3 }
 0x3e6   :  { %v2533_v56 = vadd.f32 %v2532_v57, %v5818_v39  ;;  %v2356_v4 = vpop.f32.mrf.mxu0  ;;  %v2445_v47 = vpop.f32.mrf.mxu1 }
 0x3e7   :  { %v2357_v52 = vadd.f32 %v2356_v4, %v5808_v43 }
 0x3e8   :  { %v2622_v31 = vadd.f32 %v2621_v26, %v2533_v56  ;;  %v6285_v26 = vld [vmem:[#allocation22_spill] sm:$0xff]  ;;  %v6286_v56 = vld [vmem:[#allocation23_spill] sm:$0xff] }
 0x3e9   :  { %v2446_v46 = vadd.f32 %v2445_v47, %v2357_v52 }
 0x3ea   :  { %v2698_v60 = vmax.f32 %v2622_v31, 0.0 }
 0x3eb   :  { %v2699_v63 = vmax.f32 %v2446_v46, 0.0 }
 0x3ed   :  { %v2534_v37 = vpop.f32.mrf.mxu2  ;;  %v2623_v2 = vpop.f32.mrf.mxu3  ;;  %v5872_v30 = vpack.c.bf16 %v2699_v63, %v2697_v15 }
 0x3ee   :  { %v2535_v48 = vadd.f32 %v2534_v37, %v5818_v39  ;;  %v2359_v61 = vpop.f32.mrf.mxu0  ;;  %v2448_v49 = vpop.f32.mrf.mxu1 }
 0x3ef   :  { %v2360_v57 = vadd.f32 %v2359_v61, %v5808_v43 }
 0x3f0   :  { %v2624_v50 = vadd.f32 %v2623_v2, %v2535_v48 }
 0x3f1   :  { %v2449_v4 = vadd.f32 %v2448_v49, %v2360_v57  ;;  %2398 = vmatmul.bf16.gmra.mxu0 %v6285_v26  ;;  %2487 = vmatmul.bf16.gmra.mxu1 %v6286_v56 }
 0x3f2   :  { %v2700_v47 = vmax.f32 %v2624_v50, 0.0  ;;  %2576 = vmatmul.bf16.gmra.mxu2 %v6285_v26  ;;  %2665 = vmatmul.bf16.gmra.mxu3 %v6286_v56 }
 0x3f3   :  { %v2701_v61 = vmax.f32 %v2449_v4, 0.0 }
 0x3f4   :  { %v5880_v52 = vpack.c.bf16 %v2700_v47, %v2698_v60 }
 0x3f5   :  { %v2537_v46 = vpop.f32.mrf.mxu2  ;;  %v2626_v16 = vpop.f32.mrf.mxu3 }
 0x3f6   :  { %v2538_v28 = vadd.f32 %v2537_v46, %v5818_v39  ;;  %v2361_v15 = vpop.f32.mrf.mxu0  ;;  %v2450_v63 = vpop.f32.mrf.mxu1 }
 0x3f7   :  { %v2362_v37 = vadd.f32 %v2361_v15, %v5808_v43 }
 0x3f8   :  { %v2627_v2 = vadd.f32 %v2626_v16, %v2538_v28 }
 0x3f9   :  { %v2451_v48 = vadd.f32 %v2450_v63, %v2362_v37 }
 0x3fa   :  { %v2702_v16 = vmax.f32 %v2627_v2, 0.0 }
 0x3fb   :  { %v2703_v49 = vmax.f32 %v2451_v48, 0.0 }
 0x3fd   :  { %v2539_v31 = vpop.f32.mrf.mxu2  ;;  %v2628_v50 = vpop.f32.mrf.mxu3  ;;  %v5884_v57 = vpack.c.bf16 %v2703_v49, %v2701_v61 }
 0x3fe   :  { %v2540_v26 = vadd.f32 %v2539_v31, %v5818_v39  ;;  %v2364_v56 = vpop.f32.mrf.mxu0  ;;  %v2453_v60 = vpop.f32.mrf.mxu1 }
 0x3ff   :  { %v2365_v47 = vadd.f32 %v2364_v56, %v5808_v43 }
 0x400   :  { %v2629_v6 = vadd.f32 %v2628_v50, %v2540_v26 }
 0x401   :  { %v2454_v46 = vadd.f32 %v2453_v60, %v2365_v47  ;;  %2403 = vmatmul.bf16.gmra.mxu0 %v5585_v0  ;;  %2492 = vmatmul.bf16.gmra.mxu1 %v5587_v24 }
 0x402   :  { %v2704_v28 = vmax.f32 %v2629_v6, 0.0  ;;  %2581 = vmatmul.bf16.gmra.mxu2 %v5585_v0  ;;  %2670 = vmatmul.bf16.gmra.mxu3 %v5587_v24 }
 0x403   :  { %v2705_v26 = vmax.f32 %v2454_v46, 0.0 }
 0x404   :  { %v5892_v4 = vpack.c.bf16 %v2704_v28, %v2702_v16 }
 0x405   :  { %v2542_v15 = vpop.f32.mrf.mxu2  ;;  %v2631_v63 = vpop.f32.mrf.mxu3 }
 0x406   :  { %v2543_v37 = vadd.f32 %v2542_v15, %v5818_v39  ;;  %v2366_v48 = vpop.f32.mrf.mxu0  ;;  %v2455_v61 = vpop.f32.mrf.mxu1 }
 0x407   :  { %v2367_v49 = vadd.f32 %v2366_v48, %v5808_v43 }
 0x408   :  { %v2632_v31 = vadd.f32 %v2631_v63, %v2543_v37 }
 0x409   :  { %v2456_v50 = vadd.f32 %v2455_v61, %v2367_v49 }
 0x40a   :  { %v2706_v63 = vmax.f32 %v2632_v31, 0.0 }
 0x40b   :  { %v2707_v56 = vmax.f32 %v2456_v50, 0.0 }
 0x40d   :  { %v2544_v2 = vpop.f32.mrf.mxu2  ;;  %v2633_v6 = vpop.f32.mrf.mxu3  ;;  %v5896_v60 = vpack.c.bf16 %v2707_v56, %v2705_v26 }
 0x40e   :  { %v2545_v0 = vadd.f32 %v2544_v2, %v5818_v39  ;;  %v2369_v24 = vpop.f32.mrf.mxu0  ;;  %v2458_v47 = vpop.f32.mrf.mxu1 }
 0x40f   :  { %v2370_v16 = vadd.f32 %v2369_v24, %v5808_v43 }
 0x410   :  { %v2634_v28 = vadd.f32 %v2633_v6, %v2545_v0 }
 0x411   :  { %v2459_v15 = vadd.f32 %v2458_v47, %v2370_v16  ;;  %2408 = vmatmul.bf16.gmra.mxu0 %v5619_v58  ;;  %2497 = vmatmul.bf16.gmra.mxu1 %v5621_v8 }
 0x412   :  { %v2708_v37 = vmax.f32 %v2634_v28, 0.0  ;;  %2586 = vmatmul.bf16.gmra.mxu2 %v5619_v58  ;;  %2675 = vmatmul.bf16.gmra.mxu3 %v5621_v8 }
 0x413   :  { %v2709_v0 = vmax.f32 %v2459_v15, 0.0 }
 0x414   :  { %v5904_v46 = vpack.c.bf16 %v2708_v37, %v2706_v63 }
 0x415   :  { %v2547_v48 = vpop.f32.mrf.mxu2  ;;  %v2636_v61 = vpop.f32.mrf.mxu3 }
 0x416   :  { %v2548_v49 = vadd.f32 %v2547_v48, %v5818_v39  ;;  %v2371_v50 = vpop.f32.mrf.mxu0  ;;  %v2460_v26 = vpop.f32.mrf.mxu1 }
 0x417   :  { %v2372_v56 = vadd.f32 %v2371_v50, %v5808_v43 }
 0x418   :  { %v2637_v2 = vadd.f32 %v2636_v61, %v2548_v49 }
 0x419   :  { %v2461_v6 = vadd.f32 %v2460_v26, %v2372_v56 }
 0x41a   :  { %v2710_v61 = vmax.f32 %v2637_v2, 0.0 }
 0x41b   :  { %v2711_v24 = vmax.f32 %v2461_v6, 0.0 }
 0x41d   :  { %v2549_v31 = vpop.f32.mrf.mxu2  ;;  %v2638_v47 = vpop.f32.mrf.mxu3  ;;  %v5908_v16 = vpack.c.bf16 %v2711_v24, %v2709_v0 }
 0x41e   :  { %v2550_v58 = vadd.f32 %v2549_v31, %v5818_v39  ;;  %v2374_v8 = vpop.f32.mrf.mxu0  ;;  %v2463_v28 = vpop.f32.mrf.mxu1 }
 0x41f   :  { %v2375_v63 = vadd.f32 %v2374_v8, %v5808_v43 }
 0x420   :  { %v2639_v37 = vadd.f32 %v2638_v47, %v2550_v58 }
 0x421   :  { %v2464_v48 = vadd.f32 %v2463_v28, %v2375_v63  ;;  %2977 = vmatmul.bf16.vlgmr.msra.gmra.mxu0 %v5824_v12  ;;  %3066 = vmatmul.bf16.vlgmr.msra.gmra.mxu1 %v5832_v35 }
 0x422   :  { %v2712_v49 = vmax.f32 %v2639_v37, 0.0  ;;  %3251 = vmatmul.bf16.vlgmr.msra.gmra.mxu2 %v5625_v23  ;;  %3340 = vmatmul.bf16.vlgmr.msra.gmra.mxu3 %v5633_v11 }
 0x423   :  { %v2713_v47 = vmax.f32 %v2464_v48, 0.0 }
 0x424   :  { %v5916_v15 = vpack.c.bf16 %v2712_v49, %v2710_v61 }
 0x425   :  { %v2552_v50 = vpop.f32.mrf.mxu2  ;;  %v2641_v26 = vpop.f32.mrf.mxu3 }
 0x426   :  { %v2553_v56 = vadd.f32 %v2552_v50, %v5818_v39  ;;  %v2376_v6 = vpop.f32.mrf.mxu0  ;;  %v2465_v0 = vpop.f32.mrf.mxu1 }
 0x427   :  { %v2377_v24 = vadd.f32 %v2376_v6, %v5808_v43 }
 0x428   :  { %v2642_v31 = vadd.f32 %v2641_v26, %v2553_v56 }
 0x429   :  { %v2466_v12 = vadd.f32 %v2465_v0, %v2377_v24 }
 0x42a   :  { %v2714_v49 = vmax.f32 %v2642_v31, 0.0 }
 0x42b   :  { %v2715_v35 = vmax.f32 %v2466_v12, 0.0 }
 0x42d   :  { %v2554_v2 = vpop.f32.mrf.mxu2  ;;  %v2643_v58 = vpop.f32.mrf.mxu3  ;;  %v5920_v8 = vpack.c.bf16 %v2715_v35, %v2713_v47 }
 0x42e   :  { %v2555_v23 = vadd.f32 %v2554_v2, %v5818_v39  ;;  %v2379_v11 = vpop.f32.mrf.mxu0  ;;  %v2468_v28 = vpop.f32.mrf.mxu1 }
 0x42f   :  { %v2380_v63 = vadd.f32 %v2379_v11, %v5808_v43 }
 0x430   :  { %v2644_v37 = vadd.f32 %v2643_v58, %v2555_v23 }
 0x431   :  { %v2469_v61 = vadd.f32 %v2468_v28, %v2380_v63  ;;  %2982 = vmatmul.bf16.gmra.mxu0 %v5836_v3  ;;  %3071 = vmatmul.bf16.gmra.mxu1 %v5844_v59 }
 0x432   :  { %v2716_v50 = vmax.f32 %v2644_v37, 0.0  ;;  %3256 = vmatmul.bf16.gmra.mxu2 %v5637_v19  ;;  %3345 = vmatmul.bf16.gmra.mxu3 %v5645_v54 }
 0x433   :  { %v2717_v35 = vmax.f32 %v2469_v61, 0.0 }
 0x434   :  { %v5928_v48 = vpack.c.bf16 %v2716_v50, %v2714_v49 }
 0x435   :  { %v2557_v26 = vpop.f32.mrf.mxu2  ;;  %v2646_v56 = vpop.f32.mrf.mxu3 }
 0x436   :  { %v2558_v6 = vadd.f32 %v2557_v26, %v5818_v39  ;;  %v2381_v0 = vpop.f32.mrf.mxu0  ;;  %v2470_v24 = vpop.f32.mrf.mxu1 }
 0x437   :  { %v2382_v12 = vadd.f32 %v2381_v0, %v5808_v43 }
 0x438   :  { %v2647_v47 = vadd.f32 %v2646_v56, %v2558_v6 }
 0x439   :  { %v2471_v3 = vadd.f32 %v2470_v24, %v2382_v12 }
 0x43a   :  { %v2718_v37 = vmax.f32 %v2647_v47, 0.0 }
 0x43b   :  { %v2719_v59 = vmax.f32 %v2471_v3, 0.0 }
 0x43d   :  { %v2559_v31 = vpop.f32.mrf.mxu2  ;;  %v2648_v2 = vpop.f32.mrf.mxu3  ;;  %v5932_v58 = vpack.c.bf16 %v2719_v59, %v2717_v35 }
 0x43e   :  { %v2560_v19 = vadd.f32 %v2559_v31, %v5818_v39  ;;  %v2384_v54 = vpop.f32.mrf.mxu0  ;;  %v2473_v23 = vpop.f32.mrf.mxu1 }
 0x43f   :  { %v2385_v11 = vadd.f32 %v2384_v54, %v5808_v43 }
 0x440   :  { %v2649_v28 = vadd.f32 %v2648_v2, %v2560_v19 }
 0x441   :  { %v2474_v63 = vadd.f32 %v2473_v23, %v2385_v11  ;;  %2987 = vmatmul.bf16.gmra.mxu0 %v5848_v44  ;;  %3076 = vmatmul.bf16.gmra.mxu1 %v5856_v1 }
 0x442   :  { %v2720_v49 = vmax.f32 %v2649_v28, 0.0  ;;  %3261 = vmatmul.bf16.gmra.mxu2 %v5649_v9  ;;  %3350 = vmatmul.bf16.gmra.mxu3 %v5657_v13 }
 0x443   :  { %v2721_v3 = vmax.f32 %v2474_v63, 0.0 }
 0x444   :  { %v5940_v61 = vpack.c.bf16 %v2720_v49, %v2718_v37 }
 0x445   :  { %v2562_v50 = vpop.f32.mrf.mxu2  ;;  %v2651_v26 = vpop.f32.mrf.mxu3 }
 0x446   :  { %v2563_v56 = vadd.f32 %v2562_v50, %v5818_v39  ;;  %v2386_v6 = vpop.f32.mrf.mxu0  ;;  %v2475_v0 = vpop.f32.mrf.mxu1 }
 0x447   :  { %v2387_v24 = vadd.f32 %v2386_v6, %v5808_v43 }
 0x448   :  { %v2652_v12 = vadd.f32 %v2651_v26, %v2563_v56 }
 0x449   :  { %v2476_v44 = vadd.f32 %v2475_v0, %v2387_v24 }
 0x44a   :  { %v2722_v23 = vmax.f32 %v2652_v12, 0.0 }
 0x44b   :  { %v2723_v1 = vmax.f32 %v2476_v44, 0.0 }
 0x44d   :  { %v2564_v47 = vpop.f32.mrf.mxu2  ;;  %v2653_v35 = vpop.f32.mrf.mxu3  ;;  %v5944_v59 = vpack.c.bf16 %v2723_v1, %v2721_v3 }
 0x44e   :  { %v2565_v9 = vadd.f32 %v2564_v47, %v5818_v39  ;;  %v2389_v13 = vpop.f32.mrf.mxu0  ;;  %v2478_v31 = vpop.f32.mrf.mxu1 }
 0x44f   :  { %v2390_v2 = vadd.f32 %v2389_v13, %v5808_v43 }
 0x450   :  { %v2654_v19 = vadd.f32 %v2653_v35, %v2565_v9 }
 0x451   :  { %v2479_v54 = vadd.f32 %v2478_v31, %v2390_v2  ;;  %2992 = vmatmul.bf16.gmra.mxu0 %v5860_v22  ;;  %3081 = vmatmul.bf16.gmra.mxu1 %v5868_v25 }
 0x452   :  { %v2724_v11 = vmax.f32 %v2654_v19, 0.0  ;;  %3266 = vmatmul.bf16.gmra.mxu2 %v5661_v29  ;;  %3355 = vmatmul.bf16.gmra.mxu3 %v5669_v38 }
 0x453   :  { %v2725_v0 = vmax.f32 %v2479_v54, 0.0 }
 0x454   :  { %v5952_v28 = vpack.c.bf16 %v2724_v11, %v2722_v23 }
 0x455   :  { %v2567_v63 = vpop.f32.mrf.mxu2  ;;  %v2656_v37 = vpop.f32.mrf.mxu3 }
 0x456   :  { %v2568_v49 = vadd.f32 %v2567_v63, %v5818_v39  ;;  %v2391_v50 = vpop.f32.mrf.mxu0  ;;  %v2480_v26 = vpop.f32.mrf.mxu1 }
 0x457   :  { %v2392_v56 = vadd.f32 %v2391_v50, %v5808_v43 }
 0x458   :  { %v2657_v6 = vadd.f32 %v2656_v37, %v2568_v49 }
 0x459   :  { %v2481_v22 = vadd.f32 %v2480_v26, %v2392_v56 }
 0x45a   :  { %v2726_v9 = vmax.f32 %v2657_v6, 0.0 }
 0x45b   :  { %v2727_v25 = vmax.f32 %v2481_v22, 0.0 }
 0x45d   :  { %v2569_v24 = vpop.f32.mrf.mxu2  ;;  %v2658_v12 = vpop.f32.mrf.mxu3  ;;  %v5956_v44 = vpack.c.bf16 %v2727_v25, %v2725_v0 }
 0x45e   :  { %v2570_v29 = vadd.f32 %v2569_v24, %v5818_v39  ;;  %v2394_v38 = vpop.f32.mrf.mxu0  ;;  %v2483_v3 = vpop.f32.mrf.mxu1 }
 0x45f   :  { %v2395_v1 = vadd.f32 %v2394_v38, %v5808_v43 }
 0x460   :  { %v2659_v47 = vadd.f32 %v2658_v12, %v2570_v29 }
 0x461   :  { %v2484_v35 = vadd.f32 %v2483_v3, %v2395_v1  ;;  %2997 = vmatmul.bf16.gmra.mxu0 %v5872_v30  ;;  %3086 = vmatmul.bf16.gmra.mxu1 %v5880_v52 }
 0x462   :  { %v2728_v13 = vmax.f32 %v2659_v47, 0.0  ;;  %3271 = vmatmul.bf16.gmra.mxu2 %v5673_v40  ;;  %3360 = vmatmul.bf16.gmra.mxu3 %v5681_v36 }
 0x463   :  { %v2729_v49 = vmax.f32 %v2484_v35, 0.0 }
 0x464   :  { %v5964_v31 = vpack.c.bf16 %v2728_v13, %v2726_v9 }
 0x465   :  { %v2572_v2 = vpop.f32.mrf.mxu2  ;;  %v2661_v19 = vpop.f32.mrf.mxu3 }
 0x466   :  { %v2573_v54 = vadd.f32 %v2572_v2, %v5818_v39  ;;  %v2396_v23 = vpop.f32.mrf.mxu0  ;;  %v2485_v11 = vpop.f32.mrf.mxu1 }
 0x467   :  { %v2397_v63 = vadd.f32 %v2396_v23, %v5808_v43 }
 0x468   :  { %v2662_v37 = vadd.f32 %v2661_v19, %v2573_v54 }
 0x469   :  { %v2486_v30 = vadd.f32 %v2485_v11, %v2397_v63 }
 0x46a   :  { %v2730_v24 = vmax.f32 %v2662_v37, 0.0 }
 0x46b   :  { %v2731_v52 = vmax.f32 %v2486_v30, 0.0 }
 0x46d   :  { %v2574_v50 = vpop.f32.mrf.mxu2  ;;  %v2663_v26 = vpop.f32.mrf.mxu3  ;;  %v5968_v56 = vpack.c.bf16 %v2731_v52, %v2729_v49 }
 0x46e   :  { %v2575_v40 = vadd.f32 %v2574_v50, %v5818_v39  ;;  %v2399_v36 = vpop.f32.mrf.mxu0  ;;  %v2488_v6 = vpop.f32.mrf.mxu1 }
 0x46f   :  { %v2400_v22 = vadd.f32 %v2399_v36, %v5808_v43 }
 0x470   :  { %v2664_v0 = vadd.f32 %v2663_v26, %v2575_v40 }
 0x471   :  { %v2489_v25 = vadd.f32 %v2488_v6, %v2400_v22  ;;  %3002 = vmatmul.bf16.gmra.mxu0 %v5884_v57  ;;  %3091 = vmatmul.bf16.gmra.mxu1 %v5892_v4 }
 0x472   :  { %v2732_v12 = vmax.f32 %v2664_v0, 0.0  ;;  %3276 = vmatmul.bf16.gmra.mxu2 %v5685_v34  ;;  %3365 = vmatmul.bf16.gmra.mxu3 %v5693_v20 }
 0x473   :  { %v2733_v2 = vmax.f32 %v2489_v25, 0.0 }
 0x474   :  { %v5976_v29 = vpack.c.bf16 %v2732_v12, %v2730_v24 }
 0x475   :  { %v2577_v38 = vpop.f32.mrf.mxu2  ;;  %v2666_v3 = vpop.f32.mrf.mxu3 }
 0x476   :  { %v2578_v1 = vadd.f32 %v2577_v38, %v5818_v39  ;;  %v2401_v47 = vpop.f32.mrf.mxu0  ;;  %v2490_v35 = vpop.f32.mrf.mxu1 }
 0x477   :  { %v2402_v9 = vadd.f32 %v2401_v47, %v5808_v43 }
 0x478   :  { %v2667_v13 = vadd.f32 %v2666_v3, %v2578_v1 }
 0x479   :  { %v2491_v57 = vadd.f32 %v2490_v35, %v2402_v9 }
 0x47a   :  { %v2734_v49 = vmax.f32 %v2667_v13, 0.0 }
 0x47b   :  { %v2735_v4 = vmax.f32 %v2491_v57, 0.0 }
 0x47d   :  { %v2579_v19 = vpop.f32.mrf.mxu2  ;;  %v2668_v54 = vpop.f32.mrf.mxu3  ;;  %v5980_v23 = vpack.c.bf16 %v2735_v4, %v2733_v2 }
 0x47e   :  { %v2580_v34 = vadd.f32 %v2579_v19, %v5818_v39  ;;  %v2404_v20 = vpop.f32.mrf.mxu0  ;;  %v2493_v11 = vpop.f32.mrf.mxu1 }
 0x47f   :  { %v2405_v63 = vadd.f32 %v2404_v20, %v5808_v43 }
 0x480   :  { %v2669_v37 = vadd.f32 %v2668_v54, %v2580_v34 }
 0x481   :  { %v2494_v30 = vadd.f32 %v2493_v11, %v2405_v63  ;;  %3007 = vmatmul.bf16.gmra.mxu0 %v5896_v60  ;;  %3096 = vmatmul.bf16.gmra.mxu1 %v5904_v46 }
 0x482   :  { %v2736_v52 = vmax.f32 %v2669_v37, 0.0  ;;  %3281 = vmatmul.bf16.gmra.mxu2 %v5697_v7  ;;  %3370 = vmatmul.bf16.gmra.mxu3 %v5705_v10 }
 0x483   :  { %v2737_v24 = vmax.f32 %v2494_v30, 0.0 }
 0x484   :  { %v5988_v50 = vpack.c.bf16 %v2736_v52, %v2734_v49 }
 0x485   :  { %v2582_v26 = vpop.f32.mrf.mxu2  ;;  %v2671_v40 = vpop.f32.mrf.mxu3 }
 0x486   :  { %v2583_v36 = vadd.f32 %v2582_v26, %v5818_v39  ;;  %v2406_v6 = vpop.f32.mrf.mxu0  ;;  %v2495_v22 = vpop.f32.mrf.mxu1 }
 0x487   :  { %v2407_v0 = vadd.f32 %v2406_v6, %v5808_v43 }
 0x488   :  { %v2672_v25 = vadd.f32 %v2671_v40, %v2583_v36 }
 0x489   :  { %v2496_v60 = vadd.f32 %v2495_v22, %v2407_v0 }
 0x48a   :  { %v2738_v13 = vmax.f32 %v2672_v25, 0.0 }
 0x48b   :  { %v2739_v46 = vmax.f32 %v2496_v60, 0.0 }
 0x48d   :  { %v2584_v12 = vpop.f32.mrf.mxu2  ;;  %v2673_v38 = vpop.f32.mrf.mxu3  ;;  %v5992_v3 = vpack.c.bf16 %v2739_v46, %v2737_v24 }
 0x48e   :  { %v2585_v7 = vadd.f32 %v2584_v12, %v5818_v39  ;;  %v2409_v10 = vpop.f32.mrf.mxu0  ;;  %v2498_v1 = vpop.f32.mrf.mxu1 }
 0x48f   :  { %v2410_v47 = vadd.f32 %v2409_v10, %v5808_v43 }
 0x490   :  { %v2674_v35 = vadd.f32 %v2673_v38, %v2585_v7 }
 0x491   :  { %v2499_v9 = vadd.f32 %v2498_v1, %v2410_v47  ;;  %3012 = vmatmul.bf16.gmra.mxu0 %v5908_v16  ;;  %3101 = vmatmul.bf16.gmra.mxu1 %v5916_v15 }
 0x492   :  { %v2740_v57 = vmax.f32 %v2674_v35, 0.0  ;;  %3286 = vmatmul.bf16.gmra.mxu2 %v5709_v62  ;;  %3375 = vmatmul.bf16.gmra.mxu3 %v5717_v27 }
 0x493   :  { %v2741_v37 = vmax.f32 %v2499_v9, 0.0 }
 0x494   :  { %v6000_v2 = vpack.c.bf16 %v2740_v57, %v2738_v13 }
 0x495   :  { %v2587_v4 = vpop.f32.mrf.mxu2  ;;  %v2676_v19 = vpop.f32.mrf.mxu3 }
 0x496   :  { %v2588_v54 = vadd.f32 %v2587_v4, %v5818_v39  ;;  %v2411_v34 = vpop.f32.mrf.mxu0  ;;  %v2500_v20 = vpop.f32.mrf.mxu1 }
 0x497   :  { %v2412_v11 = vadd.f32 %v2411_v34, %v5808_v43 }
 0x498   :  { %v2677_v63 = vadd.f32 %v2676_v19, %v2588_v54 }
 0x499   :  { %v2501_v16 = vadd.f32 %v2500_v20, %v2412_v11 }
 0x49a   :  { %v2742_v36 = vmax.f32 %v2677_v63, 0.0 }
 0x49b   :  { %v2743_v15 = vmax.f32 %v2501_v16, 0.0 }
 0x49d   :  { %v2589_v30 = vpop.f32.mrf.mxu2  ;;  %v2678_v49 = vpop.f32.mrf.mxu3  ;;  %v6004_v52 = vpack.c.bf16 %v2743_v15, %v2741_v37 }
 0x49e   :  { %v2590_v62 = vadd.f32 %v2589_v30, %v5818_v39  ;;  %v2978_v27 = vpop.f32.mrf.mxu0  ;;  %v3067_v26 = vpop.f32.mrf.mxu1  ;;  %v6016_v39 = vld [vmem:[%s6095_s11] ss:$0 sm:$0xff]  ;;  %s4424_s11 = smov [#allocation10]  }
 0x49f   :  { %v3068_v43 = vadd.f32 %v3067_v26, %v2978_v27  ;;  %s3493_s24 = sshll.u32 %s4424_s11, 4  ;;  %s3494_s24 = int_to_ptr.vmem [resolvable:$true] %s3493_s24 }
 0x4a0   :  { %v2679_v40 = vadd.f32 %v2678_v49, %v2590_v62 }
 0x4a1   :  { %3017 = vmatmul.bf16.gmra.mxu0 %v5920_v8  ;;  %3106 = vmatmul.bf16.gmra.mxu1 %v5928_v48 }
 0x4a2   :  { %v2744_v6 = vmax.f32 %v2679_v40, 0.0  ;;  %3291 = vmatmul.bf16.gmra.mxu2 %v5721_v45  ;;  %3380 = vmatmul.bf16.gmra.mxu3 %v5729_v32 }
 0x4a4   :  { %v6011_v22 = vpack.c.bf16 %v2744_v6, %v2742_v36 }
 0x4a5   :  { %v3252_v0 = vpop.f32.mrf.mxu2  ;;  %v3341_v25 = vpop.f32.mrf.mxu3 }
 0x4a6   :  { %v3253_v60 = vadd.f32 %v3252_v0, %v3068_v43  ;;  %v2980_v8 = vpop.f32.mrf.mxu0  ;;  %v3069_v24 = vpop.f32.mrf.mxu1 }
 0x4a7   :  { %v3070_v45 = vadd.f32 %v3069_v24, %v2980_v8 }
 0x4a8   :  { %v3342_v48 = vadd.f32 %v3341_v25, %v3253_v60 }
 0x4aa   :  { %v3425_v46 = vadd.f32 %v6016_v39, %v3342_v48 }
 0x4ac   :  { %3457 = vst [vmem:[#allocation10] sm:$0xff] %v3425_v46 }
 0x4ad   :  { %v3254_v12 = vpop.f32.mrf.mxu2  ;;  %v3343_v32 = vpop.f32.mrf.mxu3 }
 0x4ae   :  { %v3255_v38 = vadd.f32 %v3254_v12, %v3070_v45  ;;  %v2983_v7 = vpop.f32.mrf.mxu0  ;;  %v3072_v10 = vpop.f32.mrf.mxu1 }
 0x4af   :  { %v3073_v35 = vadd.f32 %v3072_v10, %v2983_v7 }
 0x4b0   :  { %v3344_v1 = vadd.f32 %v3343_v32, %v3255_v38 }
 0x4b1   :  { %3022 = vmatmul.bf16.gmra.mxu0 %v5932_v58  ;;  %3111 = vmatmul.bf16.gmra.mxu1 %v5940_v61 }
 0x4b2   :  { %v3426_v47 = vadd.f32 %v6016_v39, %v3344_v1  ;;  %3296 = vmatmul.bf16.gmra.mxu2 %v5733_v18  ;;  %3385 = vmatmul.bf16.gmra.mxu3 %v5741_v17 }
 0x4b4   :  { %3458 = vst [vmem:[#allocation10 + $0x8] sm:$0xff] %v3426_v47 }
 0x4b5   :  { %v3257_v9 = vpop.f32.mrf.mxu2  ;;  %v3346_v13 = vpop.f32.mrf.mxu3 }
 0x4b6   :  { %v3258_v57 = vadd.f32 %v3257_v9, %v3073_v35  ;;  %v2985_v4 = vpop.f32.mrf.mxu0  ;;  %v3074_v19 = vpop.f32.mrf.mxu1 }
 0x4b7   :  { %v3075_v58 = vadd.f32 %v3074_v19, %v2985_v4 }
 0x4b8   :  { %v3347_v54 = vadd.f32 %v3346_v13, %v3258_v57 }
 0x4ba   :  { %v3427_v34 = vadd.f32 %v6016_v39, %v3347_v54 }
 0x4bc   :  { %3459 = vst [vmem:[#allocation10 + $0x10] sm:$0xff] %v3427_v34 }
 0x4bd   :  { %v3259_v20 = vpop.f32.mrf.mxu2  ;;  %v3348_v61 = vpop.f32.mrf.mxu3 }
 0x4be   :  { %v3260_v11 = vadd.f32 %v3259_v20, %v3075_v58  ;;  %v2988_v63 = vpop.f32.mrf.mxu0  ;;  %v3077_v16 = vpop.f32.mrf.mxu1 }
 0x4bf   :  { %v3078_v37 = vadd.f32 %v3077_v16, %v2988_v63 }
 0x4c0   :  { %v3349_v18 = vadd.f32 %v3348_v61, %v3260_v11 }
 0x4c1   :  { %3027 = vmatmul.bf16.gmra.mxu0 %v5944_v59  ;;  %3116 = vmatmul.bf16.gmra.mxu1 %v5952_v28 }
 0x4c2   :  { %v3428_v17 = vadd.f32 %v6016_v39, %v3349_v18  ;;  %3301 = vmatmul.bf16.gmra.mxu2 %v5745_v33  ;;  %3390 = vmatmul.bf16.gmra.mxu3 %v5753_v53 }
 0x4c4   :  { %3460 = vst [vmem:[#allocation10 + $0x18] sm:$0xff] %v3428_v17 }
 0x4c5   :  { %v3262_v15 = vpop.f32.mrf.mxu2  ;;  %v3351_v30 = vpop.f32.mrf.mxu3 }
 0x4c6   :  { %v3263_v49 = vadd.f32 %v3262_v15, %v3078_v37  ;;  %v2990_v62 = vpop.f32.mrf.mxu0  ;;  %v3079_v27 = vpop.f32.mrf.mxu1 }
 0x4c7   :  { %v3080_v59 = vadd.f32 %v3079_v27, %v2990_v62 }
 0x4c8   :  { %v3352_v26 = vadd.f32 %v3351_v30, %v3263_v49 }
 0x4ca   :  { %v3429_v40 = vadd.f32 %v6016_v39, %v3352_v26  ;;  %v6287_v26 = vld [vmem:[#allocation20_spill] sm:$0xff] }
 0x4cc   :  { %3461 = vst [vmem:[#allocation10 + $0x20] sm:$0xff] %v3429_v40 }
 0x4cd   :  { %v3264_v36 = vpop.f32.mrf.mxu2  ;;  %v3353_v28 = vpop.f32.mrf.mxu3 }
 0x4ce   :  { %v3265_v6 = vadd.f32 %v3264_v36, %v3080_v59  ;;  %v2993_v43 = vpop.f32.mrf.mxu0  ;;  %v3082_v0 = vpop.f32.mrf.mxu1 }
 0x4cf   :  { %v3083_v25 = vadd.f32 %v3082_v0, %v2993_v43 }
 0x4d0   :  { %v3354_v33 = vadd.f32 %v3353_v28, %v3265_v6 }
 0x4d1   :  { %3032 = vmatmul.bf16.gmra.mxu0 %v5956_v44  ;;  %3121 = vmatmul.bf16.gmra.mxu1 %v5964_v31 }
 0x4d2   :  { %v3430_v53 = vadd.f32 %v6016_v39, %v3354_v33  ;;  %3306 = vmatmul.bf16.gmra.mxu2 %v5757_v51  ;;  %3395 = vmatmul.bf16.gmra.mxu3 %v5765_v41 }
 0x4d4   :  { %3462 = vst [vmem:[#allocation10 + $0x28] sm:$0xff] %v3430_v53 }
 0x4d5   :  { %v3267_v60 = vpop.f32.mrf.mxu2  ;;  %v3356_v8 = vpop.f32.mrf.mxu3 }
 0x4d6   :  { %v3268_v24 = vadd.f32 %v3267_v60, %v3083_v25  ;;  %v2995_v48 = vpop.f32.mrf.mxu0  ;;  %v3084_v46 = vpop.f32.mrf.mxu1 }
 0x4d7   :  { %v3085_v44 = vadd.f32 %v3084_v46, %v2995_v48  ;;  %v6288_v48 = vld [vmem:[#allocation21_spill] sm:$0xff]  ;;  %v6289_v46 = vld [vmem:[#allocation24_spill] sm:$0xff] }
 0x4d8   :  { %v3357_v45 = vadd.f32 %v3356_v8, %v3268_v24 }
 0x4da   :  { %v3431_v12 = vadd.f32 %v6016_v39, %v3357_v45 }
 0x4dc   :  { %3463 = vst [vmem:[#allocation10 + $0x30] sm:$0xff] %v3431_v12 }
 0x4dd   :  { %v3269_v32 = vpop.f32.mrf.mxu2  ;;  %v3358_v31 = vpop.f32.mrf.mxu3 }
 0x4de   :  { %v3270_v38 = vadd.f32 %v3269_v32, %v3085_v44  ;;  %v2998_v7 = vpop.f32.mrf.mxu0  ;;  %v3087_v10 = vpop.f32.mrf.mxu1 }
 0x4df   :  { %v3088_v1 = vadd.f32 %v3087_v10, %v2998_v7 }
 0x4e0   :  { %v3359_v51 = vadd.f32 %v3358_v31, %v3270_v38 }
 0x4e1   :  { %3037 = vmatmul.bf16.gmra.mxu0 %v5968_v56  ;;  %3126 = vmatmul.bf16.gmra.mxu1 %v5976_v29 }
 0x4e2   :  { %v3432_v41 = vadd.f32 %v6016_v39, %v3359_v51  ;;  %3311 = vmatmul.bf16.gmra.mxu2 %v5769_v55  ;;  %3400 = vmatmul.bf16.gmra.mxu3 %v5777_v42 }
 0x4e4   :  { %3464 = vst [vmem:[#allocation10 + $0x38] sm:$0xff] %v3432_v41 }
 0x4e5   :  { %v3272_v47 = vpop.f32.mrf.mxu2  ;;  %v3361_v35 = vpop.f32.mrf.mxu3 }
 0x4e6   :  { %v3273_v9 = vadd.f32 %v3272_v47, %v3088_v1  ;;  %v3000_v13 = vpop.f32.mrf.mxu0  ;;  %v3089_v57 = vpop.f32.mrf.mxu1 }
 0x4e7   :  { %v3090_v56 = vadd.f32 %v3089_v57, %v3000_v13 }
 0x4e8   :  { %v3362_v4 = vadd.f32 %v3361_v35, %v3273_v9 }
 0x4ea   :  { %v3433_v19 = vadd.f32 %v6016_v39, %v3362_v4 }
 0x4ec   :  { %3465 = vst [vmem:[#allocation10 + $0x40] sm:$0xff] %v3433_v19 }
 0x4ed   :  { %v3274_v54 = vpop.f32.mrf.mxu2  ;;  %v3363_v29 = vpop.f32.mrf.mxu3 }
 0x4ee   :  { %v3275_v34 = vadd.f32 %v3274_v54, %v3090_v56  ;;  %v3003_v58 = vpop.f32.mrf.mxu0  ;;  %v3092_v20 = vpop.f32.mrf.mxu1 }
 0x4ef   :  { %v3093_v61 = vadd.f32 %v3092_v20, %v3003_v58 }
 0x4f0   :  { %v3364_v55 = vadd.f32 %v3363_v29, %v3275_v34 }
 0x4f1   :  { %3042 = vmatmul.bf16.gmra.mxu0 %v5980_v23  ;;  %3131 = vmatmul.bf16.gmra.mxu1 %v5988_v50 }
 0x4f2   :  { %v3434_v42 = vadd.f32 %v6016_v39, %v3364_v55  ;;  %3316 = vmatmul.bf16.gmra.mxu2 %v5781_v5  ;;  %3405 = vmatmul.bf16.gmra.mxu3 %v5789_v14 }
 0x4f4   :  { %3466 = vst [vmem:[#allocation10 + $0x48] sm:$0xff] %v3434_v42 }
 0x4f5   :  { %v3277_v11 = vpop.f32.mrf.mxu2  ;;  %v3366_v63 = vpop.f32.mrf.mxu3 }
 0x4f6   :  { %v3278_v16 = vadd.f32 %v3277_v11, %v3093_v61  ;;  %v3005_v18 = vpop.f32.mrf.mxu0  ;;  %v3094_v17 = vpop.f32.mrf.mxu1 }
 0x4f7   :  { %v3095_v23 = vadd.f32 %v3094_v17, %v3005_v18 }
 0x4f8   :  { %v3367_v37 = vadd.f32 %v3366_v63, %v3278_v16 }
 0x4fa   :  { %v3435_v15 = vadd.f32 %v6016_v39, %v3367_v37 }
 0x4fc   :  { %3467 = vst [vmem:[#allocation10 + $0x50] sm:$0xff] %v3435_v15 }
 0x4fd   :  { %v3279_v30 = vpop.f32.mrf.mxu2  ;;  %v3368_v50 = vpop.f32.mrf.mxu3 }
 0x4fe   :  { %v3280_v49 = vadd.f32 %v3279_v30, %v3095_v23  ;;  %v3008_v62 = vpop.f32.mrf.mxu0  ;;  %v3097_v27 = vpop.f32.mrf.mxu1 }
 0x4ff   :  { %v3098_v40 = vadd.f32 %v3097_v27, %v3008_v62 }
 0x500   :  { %v3369_v5 = vadd.f32 %v3368_v50, %v3280_v49 }
 0x501   :  { %3047 = vmatmul.bf16.gmra.mxu0 %v5992_v3  ;;  %3136 = vmatmul.bf16.gmra.mxu1 %v6000_v2 }
 0x502   :  { %v3436_v14 = vadd.f32 %v6016_v39, %v3369_v5  ;;  %3321 = vmatmul.bf16.gmra.mxu2 %v5793_v21  ;;  %3410 = vmatmul.bf16.gmra.mxu3 %v6287_v26 }
 0x504   :  { %3468 = vst [vmem:[#allocation10 + $0x58] sm:$0xff] %v3436_v14 }
 0x505   :  { %v3282_v59 = vpop.f32.mrf.mxu2  ;;  %v3371_v36 = vpop.f32.mrf.mxu3 }
 0x506   :  { %v3283_v28 = vadd.f32 %v3282_v59, %v3098_v40  ;;  %v3010_v6 = vpop.f32.mrf.mxu0  ;;  %v3099_v43 = vpop.f32.mrf.mxu1 }
 0x507   :  { %v3100_v3 = vadd.f32 %v3099_v43, %v3010_v6 }
 0x508   :  { %v3372_v0 = vadd.f32 %v3371_v36, %v3283_v28 }
 0x50a   :  { %v3437_v33 = vadd.f32 %v6016_v39, %v3372_v0 }
 0x50c   :  { %3469 = vst [vmem:[#allocation10 + $0x60] sm:$0xff] %v3437_v33 }
 0x50d   :  { %v3284_v53 = vpop.f32.mrf.mxu2  ;;  %v3373_v2 = vpop.f32.mrf.mxu3 }
 0x50e   :  { %v3285_v25 = vadd.f32 %v3284_v53, %v3100_v3  ;;  %v3013_v60 = vpop.f32.mrf.mxu0  ;;  %v3102_v8 = vpop.f32.mrf.mxu1 }
 0x50f   :  { %v3103_v45 = vadd.f32 %v3102_v8, %v3013_v60 }
 0x510   :  { %v3374_v21 = vadd.f32 %v3373_v2, %v3285_v25 }
 0x511   :  { %3052 = vmatmul.bf16.gmra.mxu0 %v6004_v52  ;;  %3141 = vmatmul.bf16.gmra.mxu1 %v6011_v22 }
 0x512   :  { %v3438_v24 = vadd.f32 %v6016_v39, %v3374_v21  ;;  %3326 = vmatmul.bf16.gmra.mxu2 %v6288_v48  ;;  %3415 = vmatmul.bf16.gmra.mxu3 %v6289_v46 }
 0x514   :  { %3470 = vst [vmem:[#allocation10 + $0x68] sm:$0xff] %v3438_v24 }
 0x515   :  { %v3287_v12 = vpop.f32.mrf.mxu2  ;;  %v3376_v44 = vpop.f32.mrf.mxu3 }
 0x516   :  { %v3288_v32 = vadd.f32 %v3287_v12, %v3103_v45  ;;  %v3015_v31 = vpop.f32.mrf.mxu0  ;;  %v3104_v38 = vpop.f32.mrf.mxu1 }
 0x517   :  { %v3105_v52 = vadd.f32 %v3104_v38, %v3015_v31 }
 0x518   :  { %v3377_v7 = vadd.f32 %v3376_v44, %v3288_v32 }
 0x51a   :  { %v3439_v10 = vadd.f32 %v6016_v39, %v3377_v7 }
 0x51c   :  { %3471 = vst [vmem:[#allocation10 + $0x70] sm:$0xff] %v3439_v10 }
 0x51d   :  { %v3289_v51 = vpop.f32.mrf.mxu2  ;;  %v3378_v22 = vpop.f32.mrf.mxu3 }
 0x51e   :  { %v3290_v41 = vadd.f32 %v3289_v51, %v3105_v52  ;;  %v3018_v1 = vpop.f32.mrf.mxu0  ;;  %v3107_v47 = vpop.f32.mrf.mxu1 }
 0x51f   :  { %v3108_v13 = vadd.f32 %v3107_v47, %v3018_v1 }
 0x520   :  { %v3379_v35 = vadd.f32 %v3378_v22, %v3290_v41 }
 0x522   :  { %v3440_v9 = vadd.f32 %v6016_v39, %v3379_v35 }
 0x524   :  { %3472 = vst [vmem:[#allocation10 + $0x78] sm:$0xff] %v3440_v9 }
 0x525   :  { %v3292_v57 = vpop.f32.mrf.mxu2  ;;  %v3381_v4 = vpop.f32.mrf.mxu3 }
 0x526   :  { %v3293_v19 = vadd.f32 %v3292_v57, %v3108_v13  ;;  %v3020_v56 = vpop.f32.mrf.mxu0  ;;  %v3109_v54 = vpop.f32.mrf.mxu1 }
 0x527   :  { %v3110_v58 = vadd.f32 %v3109_v54, %v3020_v56 }
 0x528   :  { %v3382_v29 = vadd.f32 %v3381_v4, %v3293_v19 }
 0x52a   :  { %v3441_v34 = vadd.f32 %v6016_v39, %v3382_v29 }
 0x52c   :  { %3473 = vst [vmem:[#allocation10 + $0x80] sm:$0xff] %v3441_v34 }
 0x52d   :  { %v3294_v20 = vpop.f32.mrf.mxu2  ;;  %v3383_v55 = vpop.f32.mrf.mxu3 }
 0x52e   :  { %v3295_v42 = vadd.f32 %v3294_v20, %v3110_v58  ;;  %v3023_v61 = vpop.f32.mrf.mxu0  ;;  %v3112_v11 = vpop.f32.mrf.mxu1 }
 0x52f   :  { %v3113_v18 = vadd.f32 %v3112_v11, %v3023_v61 }
 0x530   :  { %v3384_v63 = vadd.f32 %v3383_v55, %v3295_v42 }
 0x532   :  { %v3442_v16 = vadd.f32 %v6016_v39, %v3384_v63 }
 0x534   :  { %3474 = vst [vmem:[#allocation10 + $0x88] sm:$0xff] %v3442_v16 }
 0x535   :  { %v3297_v17 = vpop.f32.mrf.mxu2  ;;  %v3386_v37 = vpop.f32.mrf.mxu3 }
 0x536   :  { %v3298_v15 = vadd.f32 %v3297_v17, %v3113_v18  ;;  %v3025_v23 = vpop.f32.mrf.mxu0  ;;  %v3114_v30 = vpop.f32.mrf.mxu1 }
 0x537   :  { %v3115_v62 = vadd.f32 %v3114_v30, %v3025_v23 }
 0x538   :  { %v3387_v50 = vadd.f32 %v3386_v37, %v3298_v15 }
 0x53a   :  { %v3443_v49 = vadd.f32 %v6016_v39, %v3387_v50 }
 0x53c   :  { %3475 = vst [vmem:[#allocation10 + $0x90] sm:$0xff] %v3443_v49 }
 0x53d   :  { %v3299_v27 = vpop.f32.mrf.mxu2  ;;  %v3388_v5 = vpop.f32.mrf.mxu3 }
 0x53e   :  { %v3300_v14 = vadd.f32 %v3299_v27, %v3115_v62  ;;  %v3028_v26 = vpop.f32.mrf.mxu0  ;;  %v3117_v40 = vpop.f32.mrf.mxu1 }
 0x53f   :  { %v3118_v28 = vadd.f32 %v3117_v40, %v3028_v26 }
 0x540   :  { %v3389_v59 = vadd.f32 %v3388_v5, %v3300_v14 }
 0x542   :  { %v3444_v36 = vadd.f32 %v6016_v39, %v3389_v59 }
 0x544   :  { %3476 = vst [vmem:[#allocation10 + $0x98] sm:$0xff] %v3444_v36 }
 0x545   :  { %v3302_v6 = vpop.f32.mrf.mxu2  ;;  %v3391_v43 = vpop.f32.mrf.mxu3 }
 0x546   :  { %v3303_v0 = vadd.f32 %v3302_v6, %v3118_v28  ;;  %v3030_v33 = vpop.f32.mrf.mxu0  ;;  %v3119_v3 = vpop.f32.mrf.mxu1 }
 0x547   :  { %v3120_v25 = vadd.f32 %v3119_v3, %v3030_v33 }
 0x548   :  { %v3392_v53 = vadd.f32 %v3391_v43, %v3303_v0 }
 0x54a   :  { %v3445_v2 = vadd.f32 %v6016_v39, %v3392_v53 }
 0x54c   :  { %3477 = vst [vmem:[#allocation10 + $0xa0] sm:$0xff] %v3445_v2 }
 0x54d   :  { %v3304_v60 = vpop.f32.mrf.mxu2  ;;  %v3393_v8 = vpop.f32.mrf.mxu3 }
 0x54e   :  { %v3305_v21 = vadd.f32 %v3304_v60, %v3120_v25  ;;  %v3033_v24 = vpop.f32.mrf.mxu0  ;;  %v3122_v48 = vpop.f32.mrf.mxu1 }
 0x54f   :  { %v3123_v12 = vadd.f32 %v3122_v48, %v3033_v24 }
 0x550   :  { %v3394_v46 = vadd.f32 %v3393_v8, %v3305_v21 }
 0x552   :  { %v3446_v45 = vadd.f32 %v6016_v39, %v3394_v46 }
 0x554   :  { %3478 = vst [vmem:[#allocation10 + $0xa8] sm:$0xff] %v3446_v45 }
 0x555   :  { %v3307_v44 = vpop.f32.mrf.mxu2  ;;  %v3396_v32 = vpop.f32.mrf.mxu3 }
 0x556   :  { %v3308_v31 = vadd.f32 %v3307_v44, %v3123_v12  ;;  %v3035_v38 = vpop.f32.mrf.mxu0  ;;  %v3124_v7 = vpop.f32.mrf.mxu1 }
 0x557   :  { %v3125_v51 = vadd.f32 %v3124_v7, %v3035_v38 }
 0x558   :  { %v3397_v10 = vadd.f32 %v3396_v32, %v3308_v31 }
 0x55a   :  { %v3447_v52 = vadd.f32 %v6016_v39, %v3397_v10 }
 0x55c   :  { %3479 = vst [vmem:[#allocation10 + $0xb0] sm:$0xff] %v3447_v52 }
 0x55d   :  { %v3309_v22 = vpop.f32.mrf.mxu2  ;;  %v3398_v41 = vpop.f32.mrf.mxu3 }
 0x55e   :  { %v3310_v1 = vadd.f32 %v3309_v22, %v3125_v51  ;;  %v3038_v47 = vpop.f32.mrf.mxu0  ;;  %v3127_v35 = vpop.f32.mrf.mxu1 }
 0x55f   :  { %v3128_v57 = vadd.f32 %v3127_v35, %v3038_v47 }
 0x560   :  { %v3399_v9 = vadd.f32 %v3398_v41, %v3310_v1 }
 0x562   :  { %v3448_v13 = vadd.f32 %v6016_v39, %v3399_v9 }
 0x564   :  { %3480 = vst [vmem:[#allocation10 + $0xb8] sm:$0xff] %v3448_v13 }
 0x565   :  { %v3312_v4 = vpop.f32.mrf.mxu2  ;;  %v3401_v19 = vpop.f32.mrf.mxu3 }
 0x566   :  { %v3313_v56 = vadd.f32 %v3312_v4, %v3128_v57  ;;  %v3040_v54 = vpop.f32.mrf.mxu0  ;;  %v3129_v29 = vpop.f32.mrf.mxu1 }
 0x567   :  { %v3130_v20 = vadd.f32 %v3129_v29, %v3040_v54 }
 0x568   :  { %v3402_v34 = vadd.f32 %v3401_v19, %v3313_v56 }
 0x56a   :  { %v3449_v58 = vadd.f32 %v6016_v39, %v3402_v34 }
 0x56c   :  { %3481 = vst [vmem:[#allocation10 + $0xc0] sm:$0xff] %v3449_v58 }
 0x56d   :  { %v3314_v55 = vpop.f32.mrf.mxu2  ;;  %v3403_v42 = vpop.f32.mrf.mxu3 }
 0x56e   :  { %v3315_v61 = vadd.f32 %v3314_v55, %v3130_v20  ;;  %v3043_v11 = vpop.f32.mrf.mxu0  ;;  %v3132_v63 = vpop.f32.mrf.mxu1 }
 0x56f   :  { %v3133_v17 = vadd.f32 %v3132_v63, %v3043_v11 }
 0x570   :  { %v3404_v16 = vadd.f32 %v3403_v42, %v3315_v61 }
 0x572   :  { %v3450_v18 = vadd.f32 %v6016_v39, %v3404_v16 }
 0x574   :  { %3482 = vst [vmem:[#allocation10 + $0xc8] sm:$0xff] %v3450_v18 }
 0x575   :  { %v3317_v37 = vpop.f32.mrf.mxu2  ;;  %v3406_v15 = vpop.f32.mrf.mxu3 }
 0x576   :  { %v3318_v23 = vadd.f32 %v3317_v37, %v3133_v17  ;;  %v3045_v30 = vpop.f32.mrf.mxu0  ;;  %v3134_v50 = vpop.f32.mrf.mxu1 }
 0x577   :  { %v3135_v27 = vadd.f32 %v3134_v50, %v3045_v30 }
 0x578   :  { %v3407_v49 = vadd.f32 %v3406_v15, %v3318_v23 }
 0x57a   :  { %v3451_v62 = vadd.f32 %v6016_v39, %v3407_v49 }
 0x57c   :  { %3483 = vst [vmem:[#allocation10 + $0xd0] sm:$0xff] %v3451_v62 }
 0x57d   :  { %v3319_v5 = vpop.f32.mrf.mxu2  ;;  %v3408_v14 = vpop.f32.mrf.mxu3 }
 0x57e   :  { %v3320_v26 = vadd.f32 %v3319_v5, %v3135_v27  ;;  %v3048_v40 = vpop.f32.mrf.mxu0  ;;  %v3137_v59 = vpop.f32.mrf.mxu1 }
 0x57f   :  { %v3138_v6 = vadd.f32 %v3137_v59, %v3048_v40 }
 0x580   :  { %v3409_v36 = vadd.f32 %v3408_v14, %v3320_v26 }
 0x582   :  { %v3452_v28 = vadd.f32 %v6016_v39, %v3409_v36 }
 0x584   :  { %3484 = vst [vmem:[#allocation10 + $0xd8] sm:$0xff] %v3452_v28 }
 0x585   :  { %v3322_v43 = vpop.f32.mrf.mxu2  ;;  %v3411_v0 = vpop.f32.mrf.mxu3 }
 0x586   :  { %v3323_v33 = vadd.f32 %v3322_v43, %v3138_v6  ;;  %v3050_v3 = vpop.f32.mrf.mxu0  ;;  %v3139_v53 = vpop.f32.mrf.mxu1 }
 0x587   :  { %v3140_v60 = vadd.f32 %v3139_v53, %v3050_v3 }
 0x588   :  { %v3412_v2 = vadd.f32 %v3411_v0, %v3323_v33 }
 0x58a   :  { %v3453_v25 = vadd.f32 %v6016_v39, %v3412_v2 }
 0x58c   :  { %3485 = vst [vmem:[#allocation10 + $0xe0] sm:$0xff] %v3453_v25 }
 0x58d   :  { %v3324_v8 = vpop.f32.mrf.mxu2  ;;  %v3413_v21 = vpop.f32.mrf.mxu3 }
 0x58e   :  { %v3325_v24 = vadd.f32 %v3324_v8, %v3140_v60  ;;  %v3053_v48 = vpop.f32.mrf.mxu0  ;;  %v3142_v46 = vpop.f32.mrf.mxu1 }
 0x58f   :  { %v3143_v44 = vadd.f32 %v3142_v46, %v3053_v48 }
 0x590   :  { %v3414_v45 = vadd.f32 %v3413_v21, %v3325_v24 }
 0x592   :  { %v3454_v12 = vadd.f32 %v6016_v39, %v3414_v45 }
 0x594   :  { %3486 = vst [vmem:[#allocation10 + $0xe8] sm:$0xff] %v3454_v12 }
 0x595   :  { %v3327_v32 = vpop.f32.mrf.mxu2  ;;  %v3416_v31 = vpop.f32.mrf.mxu3 }
 0x596   :  { %v3328_v38 = vadd.f32 %v3327_v32, %v3143_v44  ;;  %v3055_v10 = vpop.f32.mrf.mxu0  ;;  %v3144_v52 = vpop.f32.mrf.mxu1 }
 0x597   :  { %v3145_v22 = vadd.f32 %v3144_v52, %v3055_v10 }
 0x598   :  { %v3417_v7 = vadd.f32 %v3416_v31, %v3328_v38 }
 0x59a   :  { %v3455_v51 = vadd.f32 %v6016_v39, %v3417_v7 }
 0x59c   :  { %3487 = vst [vmem:[#allocation10 + $0xf0] sm:$0xff] %v3455_v51 }
 0x59d   :  { %v3329_v41 = vpop.f32.mrf.mxu2  ;;  %v3418_v47 = vpop.f32.mrf.mxu3 }
 0x59e   :  { %v3330_v1 = vadd.f32 %v3329_v41, %v3145_v22 }
 0x5a0   :  { %v3419_v35 = vadd.f32 %v3418_v47, %v3330_v1 }
 0x5a2   :  { %v3456_v9 = vadd.f32 %v6016_v39, %v3419_v35 }
 0x5a4   :  { %3488 = vst [vmem:[#allocation10 + $0xf8] sm:$0xff] %v3456_v9 }
 0x5a5   :  { %3501 = dma.vmem_to_hbm [thread:$0]  %s3494_s24, 4096, %s3496_s3, [#allocation4], %s4417_s29, %s4417_s29, %s4418_s30  }
 0x5a6   :  { %4414 = dma.done.wait [#allocation4], 4096  }
 0x5a7   :  { %4415 = vsyncadd [#allocation4], 4294963200 }
 0x5a8   :  { %3506 = vsyncpa [#allocation3], 1 }
 0x5a9   :  { %3507 = vsyncpa [#allocation6], 1 }
 0x5aa   :  { %3508 = vsyncpa [#allocation9], 1 }
 0x5ab   :  { %3509 = vsyncpa [#allocation4], 1 }

</bundles_post_ra>
